<compile_context>
chip_gen: v5e
topology: v5e:2x2
jax: 0.10.0
libtpu: 0.0.40
codegen_flags: <defaults>
</compile_context>

<pallas_src>
import jax
import jax.numpy as jnp
from jax.experimental import pallas as pl
from jax.experimental.pallas import tpu as pltpu

# ----------------------------- config -------------------------------------
D = 8                  # number of pts_linears
W = 128                # hidden width (PyTorch default 256; small here)
W2 = W // 2
INPUT_CH = 3           # input_ch
INPUT_CH_VIEWS = 3     # input_ch_views
INPUT_APP = 8          # input_app (app_enc=True)
SKIPS = (4,)           # skips
SKIP_CONSUMERS = tuple(s + 1 for s in SKIPS)   # layers that consume cat([pts, h])

PAD_PTS = 8            # pts padded 3 -> 8   (sublane-aligned K for the MXU)
PAD_VA = 16            # views+app padded 11 -> 16
TM = 512               # rows (rays) per grid step (sweep 512-2048)

assert (D - 1) not in SKIPS, "skip at last pts layer not handled"
assert all(0 < c < D for c in SKIP_CONSUMERS)


# ----------------------------- kernel --------------------------------------
def _nerf_kernel(pts_ref, va_ref, *rest):
    # rest = (packed weight/bias refs ..., out_ref)
    out_ref = rest[-1]
    it = iter(rest[:-1])

    pts = pts_ref[...]            # (TM, PAD_PTS) bf16, zero past INPUT_CH
    va = va_ref[...]              # (TM, PAD_VA)  bf16, [views | app | zeros]

    h = None                      # f32 activation
    for i in range(D):
        if i in SKIP_CONSUMERS:
            # Layer consuming torch.cat([input_pts, h], -1): weight was pre-split
            # host-side into an 8-row (zero padded) pts block and a W-row h block.
            w_p = next(it)[...]   # (PAD_PTS, W) bf16
            w_h = next(it)[...]   # (W, W)       bf16
            b = next(it)[...]     # (1, W)       f32
            z = (jnp.dot(pts, w_p, preferred_element_type=jnp.float32)
                 + jnp.dot(h.astype(jnp.bfloat16), w_h,
                           preferred_element_type=jnp.float32)
                 + b)
        else:
            w = next(it)[...]     # (PAD_PTS or W, W) bf16
            b = next(it)[...]     # (1, W) f32
            x = pts if i == 0 else h.astype(jnp.bfloat16)
            z = jnp.dot(x, w, preferred_element_type=jnp.float32) + b
        h = jnp.maximum(z, 0.0)   # F.relu (f32)

    h_bf = h.astype(jnp.bfloat16)

    # use_viewdirs=True branch: feature_linear
    wf = next(it)[...]
    b_f = next(it)[...]
    feature = jnp.dot(h_bf, wf, preferred_element_type=jnp.float32) + b_f

    # views_linears[0] over torch.cat([feature, views, app], -1), pre-split weights
    wv_feat = next(it)[...]       # (W, W2)      bf16
    wv_va = next(it)[...]         # (PAD_VA, W2) bf16 (zero padded)
    bv = next(it)[...]            # (1, W2)      f32
    hv = (jnp.dot(feature.astype(jnp.bfloat16), wv_feat,
                  preferred_element_type=jnp.float32)
          + jnp.dot(va, wv_va, preferred_element_type=jnp.float32)
          + bv)
    hv = jnp.maximum(hv, 0.0)

    # fused rgb / alpha head -> out[:, :3] = rgb, out[:, 3] = alpha, one store
    w_out_hv = next(it)[...]      # (W2, 4) bf16: cols 0..2 = rgb weights
    w_out_h = next(it)[...]       # (W, 4)  bf16: col 3 = alpha weights
    b_out = next(it)[...]         # (1, 4)  f32: [rgb bias | alpha bias]
    out = (jnp.dot(hv.astype(jnp.bfloat16), w_out_hv,
                   preferred_element_type=jnp.float32)
           + jnp.dot(h_bf, w_out_h, preferred_element_type=jnp.float32)
           + b_out)
    out_ref[...] = out


# ----------------------------- host-side packing ----------------------------
def _pack_params(params):
    """Cast/pad/split PyTorch-layout params into the kernel's flat weight list."""
    bf16 = jnp.bfloat16
    packed = []

    for i, (w, b) in enumerate(params["pts"]):
        if i == 0:
            w_pad = jnp.zeros((PAD_PTS, W), jnp.float32).at[:INPUT_CH].set(w)
            packed += [w_pad.astype(bf16), b]
        elif i in SKIP_CONSUMERS:
            # rows 0:3 act on pts, rows 3:3+W act on h (torch.cat([pts, h]) order)
            w_p = jnp.zeros((PAD_PTS, W), jnp.float32).at[:INPUT_CH].set(
                w[:INPUT_CH])
            packed += [w_p.astype(bf16), w[INPUT_CH:].astype(bf16), b]
        else:
            packed += [w.astype(bf16), b]

    wf, b_f = params["feature"]
    packed += [wf.astype(bf16), b_f]

    # views weight rows: [feature (W) | views (3) | app (8)]
    wv, bv = params["views"]
    wv_feat = wv[:W]
    wv_va = jnp.zeros((PAD_VA, W2), jnp.float32)
    wv_va = wv_va.at[:INPUT_CH_VIEWS].set(wv[W:W + INPUT_CH_VIEWS])
    wv_va = wv_va.at[INPUT_CH_VIEWS:INPUT_CH_VIEWS + INPUT_APP].set(
        wv[W + INPUT_CH_VIEWS:])
    packed += [wv_feat.astype(bf16), wv_va.astype(bf16), bv]

    # fused rgb/alpha head
    wa, ba = params["alpha"]      # (W, 1), (1, 1)
    wr, br = params["rgb"]        # (W2, 3), (1, 3)
    w_out_hv = jnp.zeros((W2, 4), jnp.float32).at[:, :3].set(wr)
    w_out_h = jnp.zeros((W, 4), jnp.float32).at[:, 3:].set(wa)
    b_out = jnp.concatenate([br, ba], axis=-1)
    packed += [w_out_hv.astype(bf16), w_out_h.astype(bf16), b_out]
    return packed


# ----------------------------- wrapper --------------------------------------
def nerf_forward(x, app, params, *, tm=TM):
    N = x.shape[0]
    n_pad = pl.cdiv(N, tm) * tm

    # Zero-padded, bf16 kernel inputs: pts (3 -> 8 lanes), views+app (11 -> 16).
    pts_pad = jnp.zeros((n_pad, PAD_PTS), jnp.float32)
    pts_pad = pts_pad.at[:N, :INPUT_CH].set(x[:, :INPUT_CH]).astype(jnp.bfloat16)
    va = jnp.zeros((n_pad, PAD_VA), jnp.float32)
    va = va.at[:N, :INPUT_CH_VIEWS].set(x[:, INPUT_CH:INPUT_CH + INPUT_CH_VIEWS])
    va = va.at[:N, INPUT_CH_VIEWS:INPUT_CH_VIEWS + INPUT_APP].set(app)
    va = va.astype(jnp.bfloat16)

    packed = _pack_params(params)

    def row_spec(d):
        return pl.BlockSpec((tm, d), lambda i: (i, 0))

    # Grid-invariant weights: full-array blocks, same tile every step.
    # (Could add pipeline_mode=pl.Buffered(1) to halve their VMEM at huge TM.)
    weight_specs = [pl.BlockSpec(w.shape, lambda i: (0, 0)) for w in packed]
    in_specs = [row_spec(PAD_PTS), row_spec(PAD_VA)] + weight_specs
    out_spec = pl.BlockSpec((tm, 4), lambda i: (i, 0))

    # Advisory cost estimate so XLA can overlap surrounding ops.
    mats = [w for w in packed if w.dtype == jnp.bfloat16]
    flops = 2 * n_pad * sum(int(w.shape[0]) * int(w.shape[1]) for w in mats)
    bytes_accessed = (sum(int(a.size) * a.dtype.itemsize
                          for a in [pts_pad, va] + packed)
                      + n_pad * 4 * 4)
    cost = pl.CostEstimate(flops=flops, transcendentals=0,
                           bytes_accessed=int(bytes_accessed))

    out = pl.pallas_call(
        _nerf_kernel,
        out_shape=jax.ShapeDtypeStruct((n_pad, 4), jnp.float32),
        grid=(n_pad // tm,),
        in_specs=in_specs,
        out_specs=out_spec,
        compiler_params=pltpu.CompilerParams(
            dimension_semantics=("parallel",)),
        cost_estimate=cost,
    )(pts_pad, va, *packed)
    return out[:N]


# ----------------------------- params / reference ---------------------------
def _linear(key, fan_in, fan_out):
    # PyTorch default nn.Linear init: U(-1/sqrt(fan_in), 1/sqrt(fan_in)).
    k1, k2 = jax.random.split(key)
    lim = 1.0 / (fan_in ** 0.5)
    w = jax.random.uniform(k1, (fan_in, fan_out), jnp.float32, -lim, lim)
    b = jax.random.uniform(k2, (1, fan_out), jnp.float32, -lim, lim)
    return w, b


def init_params(key):
    keys = jax.random.split(key, D + 4)
    pts_layers = []
    fan_in = INPUT_CH
    for i in range(D):
        pts_layers.append(_linear(keys[i], fan_in, W))
        fan_in = W + INPUT_CH if i in SKIPS else W
    return {
        "pts": pts_layers,
        "feature": _linear(keys[D + 0], W, W),
        "alpha": _linear(keys[D + 1], W, 1),
        "views": _linear(keys[D + 2], W + INPUT_CH_VIEWS + INPUT_APP, W2),
        "rgb": _linear(keys[D + 3], W2, 3),
    }


def nerf_ref(x, app, params):
    # Pure-JAX f32 reference mirroring the PyTorch forward exactly (with concats).
    pts = x[:, :INPUT_CH]
    views = x[:, INPUT_CH:INPUT_CH + INPUT_CH_VIEWS]
    h = pts
    for i, (w, b) in enumerate(params["pts"]):
        h = jnp.maximum(h @ w + b, 0.0)
        if i in SKIPS:
            h = jnp.concatenate([pts, h], axis=-1)
    wa, ba = params["alpha"]
    alpha = h @ wa + ba
    wf, bf_ = params["feature"]
    feature = h @ wf + bf_
    h2 = jnp.concatenate([feature, views, app], axis=-1)
    wv, bv = params["views"]
    h2 = jnp.maximum(h2 @ wv + bv, 0.0)
    wr, br = params["rgb"]
    rgb = h2 @ wr + br
    return jnp.concatenate([rgb, alpha], axis=-1)


# ----------------------------- main ------------------------------------------
if __name__ == "__main__":
    key = jax.random.PRNGKey(0)
    kp, kx, ka = jax.random.split(key, 3)

    params = init_params(kp)
    N = 1024  # 2 grid steps at TM=512 (keeps both v7x TensorCores busy)
    x = jax.random.normal(kx, (N, INPUT_CH + INPUT_CH_VIEWS), jnp.float32)
    app = jax.random.normal(ka, (N, INPUT_APP), jnp.float32)

    out = jax.block_until_ready(nerf_forward(x, app, params))
    ref = jax.block_until_ready(nerf_ref(x, app, params))

    assert out.shape == (N, 4)
    max_err = float(jnp.max(jnp.abs(out - ref)))
    # bf16 matmul operands with f32 accumulation -> relaxed tolerance vs f32 ref.
    assert jnp.allclose(out, ref, atol=5e-2, rtol=5e-2), max_err

    print("KERNEL_OK")
</pallas_src>

<mosaic_0001>
module attributes {stable_mosaic.version = 11 : i64} {
  func.func @_nerf_kernel(%arg0: i32, %arg1: memref<512x8xbf16, #tpu.memory_space<vmem>>, %arg2: memref<512x16xbf16, #tpu.memory_space<vmem>>, %arg3: memref<8x128xbf16, #tpu.memory_space<vmem>>, %arg4: memref<1x128xf32, #tpu.memory_space<vmem>>, %arg5: memref<128x128xbf16, #tpu.memory_space<vmem>>, %arg6: memref<1x128xf32, #tpu.memory_space<vmem>>, %arg7: memref<128x128xbf16, #tpu.memory_space<vmem>>, %arg8: memref<1x128xf32, #tpu.memory_space<vmem>>, %arg9: memref<128x128xbf16, #tpu.memory_space<vmem>>, %arg10: memref<1x128xf32, #tpu.memory_space<vmem>>, %arg11: memref<128x128xbf16, #tpu.memory_space<vmem>>, %arg12: memref<1x128xf32, #tpu.memory_space<vmem>>, %arg13: memref<8x128xbf16, #tpu.memory_space<vmem>>, %arg14: memref<128x128xbf16, #tpu.memory_space<vmem>>, %arg15: memref<1x128xf32, #tpu.memory_space<vmem>>, %arg16: memref<128x128xbf16, #tpu.memory_space<vmem>>, %arg17: memref<1x128xf32, #tpu.memory_space<vmem>>, %arg18: memref<128x128xbf16, #tpu.memory_space<vmem>>, %arg19: memref<1x128xf32, #tpu.memory_space<vmem>>, %arg20: memref<128x128xbf16, #tpu.memory_space<vmem>>, %arg21: memref<1x128xf32, #tpu.memory_space<vmem>>, %arg22: memref<128x64xbf16, #tpu.memory_space<vmem>>, %arg23: memref<16x64xbf16, #tpu.memory_space<vmem>>, %arg24: memref<1x64xf32, #tpu.memory_space<vmem>>, %arg25: memref<64x4xbf16, #tpu.memory_space<vmem>>, %arg26: memref<128x4xbf16, #tpu.memory_space<vmem>>, %arg27: memref<1x4xf32, #tpu.memory_space<vmem>>, %arg28: memref<512x4xf32, #tpu.memory_space<vmem>>) attributes {dimension_semantics = [#tpu.dimension_semantics<parallel>], iteration_bounds = array<i64: 2>, scalar_prefetch = 0 : i64, scratch_operands = 0 : i64, tpu.core_type = #tpu.core_type<tc>, window_params = [{transform_indices = @transform_0, window_bounds = array<i64: 512, 8>}, {transform_indices = @transform_1, window_bounds = array<i64: 512, 16>}, {pipeline_mode = #tpu.pipeline_mode<synchronous>, transform_indices = @transform_2, window_bounds = array<i64: 8, 128>}, {pipeline_mode = #tpu.pipeline_mode<synchronous>, transform_indices = @transform_3, window_bounds = array<i64: 1, 128>}, {pipeline_mode = #tpu.pipeline_mode<synchronous>, transform_indices = @transform_4, window_bounds = array<i64: 128, 128>}, {pipeline_mode = #tpu.pipeline_mode<synchronous>, transform_indices = @transform_5, window_bounds = array<i64: 1, 128>}, {pipeline_mode = #tpu.pipeline_mode<synchronous>, transform_indices = @transform_6, window_bounds = array<i64: 128, 128>}, {pipeline_mode = #tpu.pipeline_mode<synchronous>, transform_indices = @transform_7, window_bounds = array<i64: 1, 128>}, {pipeline_mode = #tpu.pipeline_mode<synchronous>, transform_indices = @transform_8, window_bounds = array<i64: 128, 128>}, {pipeline_mode = #tpu.pipeline_mode<synchronous>, transform_indices = @transform_9, window_bounds = array<i64: 1, 128>}, {pipeline_mode = #tpu.pipeline_mode<synchronous>, transform_indices = @transform_10, window_bounds = array<i64: 128, 128>}, {pipeline_mode = #tpu.pipeline_mode<synchronous>, transform_indices = @transform_11, window_bounds = array<i64: 1, 128>}, {pipeline_mode = #tpu.pipeline_mode<synchronous>, transform_indices = @transform_12, window_bounds = array<i64: 8, 128>}, {pipeline_mode = #tpu.pipeline_mode<synchronous>, transform_indices = @transform_13, window_bounds = array<i64: 128, 128>}, {pipeline_mode = #tpu.pipeline_mode<synchronous>, transform_indices = @transform_14, window_bounds = array<i64: 1, 128>}, {pipeline_mode = #tpu.pipeline_mode<synchronous>, transform_indices = @transform_15, window_bounds = array<i64: 128, 128>}, {pipeline_mode = #tpu.pipeline_mode<synchronous>, transform_indices = @transform_16, window_bounds = array<i64: 1, 128>}, {pipeline_mode = #tpu.pipeline_mode<synchronous>, transform_indices = @transform_17, window_bounds = array<i64: 128, 128>}, {pipeline_mode = #tpu.pipeline_mode<synchronous>, transform_indices = @transform_18, window_bounds = array<i64: 1, 128>}, {pipeline_mode = #tpu.pipeline_mode<synchronous>, transform_indices = @transform_19, window_bounds = array<i64: 128, 128>}, {pipeline_mode = #tpu.pipeline_mode<synchronous>, transform_indices = @transform_20, window_bounds = array<i64: 1, 128>}, {pipeline_mode = #tpu.pipeline_mode<synchronous>, transform_indices = @transform_21, window_bounds = array<i64: 128, 64>}, {pipeline_mode = #tpu.pipeline_mode<synchronous>, transform_indices = @transform_22, window_bounds = array<i64: 16, 64>}, {pipeline_mode = #tpu.pipeline_mode<synchronous>, transform_indices = @transform_23, window_bounds = array<i64: 1, 64>}, {pipeline_mode = #tpu.pipeline_mode<synchronous>, transform_indices = @transform_24, window_bounds = array<i64: 64, 4>}, {pipeline_mode = #tpu.pipeline_mode<synchronous>, transform_indices = @transform_25, window_bounds = array<i64: 128, 4>}, {pipeline_mode = #tpu.pipeline_mode<synchronous>, transform_indices = @transform_26, window_bounds = array<i64: 1, 4>}, {transform_indices = @transform_27, window_bounds = array<i64: 512, 4>}]} {
    %c0 = arith.constant 0 : index
    %c0_0 = arith.constant 0 : index
    %0 = vector.load %arg1[%c0, %c0_0] : memref<512x8xbf16, #tpu.memory_space<vmem>>, vector<512x8xbf16>
    %c0_1 = arith.constant 0 : index
    %c0_2 = arith.constant 0 : index
    %1 = vector.load %arg2[%c0_1, %c0_2] : memref<512x16xbf16, #tpu.memory_space<vmem>>, vector<512x16xbf16>
    %c0_3 = arith.constant 0 : index
    %c0_4 = arith.constant 0 : index
    %2 = vector.load %arg3[%c0_3, %c0_4] : memref<8x128xbf16, #tpu.memory_space<vmem>>, vector<8x128xbf16>
    %c0_5 = arith.constant 0 : index
    %c0_6 = arith.constant 0 : index
    %3 = vector.load %arg4[%c0_5, %c0_6] : memref<1x128xf32, #tpu.memory_space<vmem>>, vector<1x128xf32>
    %cst = arith.constant dense<0.000000e+00> : vector<512x128xf32>
    %4 = tpu.matmul %0, %2, %cst {dimension_numbers = #tpu.dot_dimension_numbers<[1], [0], [0], [1], [0, 0, 1, 1], [], []>} : vector<512x8xbf16>, vector<8x128xbf16>, vector<512x128xf32> -> vector<512x128xf32>
    %5 = vector.broadcast %3 : vector<1x128xf32> to vector<512x128xf32>
    %6 = arith.addf %4, %5 : vector<512x128xf32>
    %cst_7 = arith.constant 0.000000e+00 : f32
    %7 = vector.broadcast %cst_7 : f32 to vector<512x128xf32>
    %8 = arith.maximumf %6, %7 : vector<512x128xf32>
    %c0_8 = arith.constant 0 : index
    %c0_9 = arith.constant 0 : index
    %9 = vector.load %arg5[%c0_8, %c0_9] : memref<128x128xbf16, #tpu.memory_space<vmem>>, vector<128x128xbf16>
    %c0_10 = arith.constant 0 : index
    %c0_11 = arith.constant 0 : index
    %10 = vector.load %arg6[%c0_10, %c0_11] : memref<1x128xf32, #tpu.memory_space<vmem>>, vector<1x128xf32>
    %11 = arith.truncf %8 : vector<512x128xf32> to vector<512x128xbf16>
    %cst_12 = arith.constant dense<0.000000e+00> : vector<512x128xf32>
    %12 = tpu.matmul %11, %9, %cst_12 {dimension_numbers = #tpu.dot_dimension_numbers<[1], [0], [0], [1], [0, 0, 1, 1], [], []>} : vector<512x128xbf16>, vector<128x128xbf16>, vector<512x128xf32> -> vector<512x128xf32>
    %13 = vector.broadcast %10 : vector<1x128xf32> to vector<512x128xf32>
    %14 = arith.addf %12, %13 : vector<512x128xf32>
    %cst_13 = arith.constant 0.000000e+00 : f32
    %15 = vector.broadcast %cst_13 : f32 to vector<512x128xf32>
    %16 = arith.maximumf %14, %15 : vector<512x128xf32>
    %c0_14 = arith.constant 0 : index
    %c0_15 = arith.constant 0 : index
    %17 = vector.load %arg7[%c0_14, %c0_15] : memref<128x128xbf16, #tpu.memory_space<vmem>>, vector<128x128xbf16>
    %c0_16 = arith.constant 0 : index
    %c0_17 = arith.constant 0 : index
    %18 = vector.load %arg8[%c0_16, %c0_17] : memref<1x128xf32, #tpu.memory_space<vmem>>, vector<1x128xf32>
    %19 = arith.truncf %16 : vector<512x128xf32> to vector<512x128xbf16>
    %cst_18 = arith.constant dense<0.000000e+00> : vector<512x128xf32>
    %20 = tpu.matmul %19, %17, %cst_18 {dimension_numbers = #tpu.dot_dimension_numbers<[1], [0], [0], [1], [0, 0, 1, 1], [], []>} : vector<512x128xbf16>, vector<128x128xbf16>, vector<512x128xf32> -> vector<512x128xf32>
    %21 = vector.broadcast %18 : vector<1x128xf32> to vector<512x128xf32>
    %22 = arith.addf %20, %21 : vector<512x128xf32>
    %cst_19 = arith.constant 0.000000e+00 : f32
    %23 = vector.broadcast %cst_19 : f32 to vector<512x128xf32>
    %24 = arith.maximumf %22, %23 : vector<512x128xf32>
    %c0_20 = arith.constant 0 : index
    %c0_21 = arith.constant 0 : index
    %25 = vector.load %arg9[%c0_20, %c0_21] : memref<128x128xbf16, #tpu.memory_space<vmem>>, vector<128x128xbf16>
    %c0_22 = arith.constant 0 : index
    %c0_23 = arith.constant 0 : index
    %26 = vector.load %arg10[%c0_22, %c0_23] : memref<1x128xf32, #tpu.memory_space<vmem>>, vector<1x128xf32>
    %27 = arith.truncf %24 : vector<512x128xf32> to vector<512x128xbf16>
    %cst_24 = arith.constant dense<0.000000e+00> : vector<512x128xf32>
    %28 = tpu.matmul %27, %25, %cst_24 {dimension_numbers = #tpu.dot_dimension_numbers<[1], [0], [0], [1], [0, 0, 1, 1], [], []>} : vector<512x128xbf16>, vector<128x128xbf16>, vector<512x128xf32> -> vector<512x128xf32>
    %29 = vector.broadcast %26 : vector<1x128xf32> to vector<512x128xf32>
    %30 = arith.addf %28, %29 : vector<512x128xf32>
    %cst_25 = arith.constant 0.000000e+00 : f32
    %31 = vector.broadcast %cst_25 : f32 to vector<512x128xf32>
    %32 = arith.maximumf %30, %31 : vector<512x128xf32>
    %c0_26 = arith.constant 0 : index
    %c0_27 = arith.constant 0 : index
    %33 = vector.load %arg11[%c0_26, %c0_27] : memref<128x128xbf16, #tpu.memory_space<vmem>>, vector<128x128xbf16>
    %c0_28 = arith.constant 0 : index
    %c0_29 = arith.constant 0 : index
    %34 = vector.load %arg12[%c0_28, %c0_29] : memref<1x128xf32, #tpu.memory_space<vmem>>, vector<1x128xf32>
    %35 = arith.truncf %32 : vector<512x128xf32> to vector<512x128xbf16>
    %cst_30 = arith.constant dense<0.000000e+00> : vector<512x128xf32>
    %36 = tpu.matmul %35, %33, %cst_30 {dimension_numbers = #tpu.dot_dimension_numbers<[1], [0], [0], [1], [0, 0, 1, 1], [], []>} : vector<512x128xbf16>, vector<128x128xbf16>, vector<512x128xf32> -> vector<512x128xf32>
    %37 = vector.broadcast %34 : vector<1x128xf32> to vector<512x128xf32>
    %38 = arith.addf %36, %37 : vector<512x128xf32>
    %cst_31 = arith.constant 0.000000e+00 : f32
    %39 = vector.broadcast %cst_31 : f32 to vector<512x128xf32>
    %40 = arith.maximumf %38, %39 : vector<512x128xf32>
    %c0_32 = arith.constant 0 : index
    %c0_33 = arith.constant 0 : index
    %41 = vector.load %arg13[%c0_32, %c0_33] : memref<8x128xbf16, #tpu.memory_space<vmem>>, vector<8x128xbf16>
    %c0_34 = arith.constant 0 : index
    %c0_35 = arith.constant 0 : index
    %42 = vector.load %arg14[%c0_34, %c0_35] : memref<128x128xbf16, #tpu.memory_space<vmem>>, vector<128x128xbf16>
    %c0_36 = arith.constant 0 : index
    %c0_37 = arith.constant 0 : index
    %43 = vector.load %arg15[%c0_36, %c0_37] : memref<1x128xf32, #tpu.memory_space<vmem>>, vector<1x128xf32>
    %cst_38 = arith.constant dense<0.000000e+00> : vector<512x128xf32>
    %44 = tpu.matmul %0, %41, %cst_38 {dimension_numbers = #tpu.dot_dimension_numbers<[1], [0], [0], [1], [0, 0, 1, 1], [], []>} : vector<512x8xbf16>, vector<8x128xbf16>, vector<512x128xf32> -> vector<512x128xf32>
    %45 = arith.truncf %40 : vector<512x128xf32> to vector<512x128xbf16>
    %cst_39 = arith.constant dense<0.000000e+00> : vector<512x128xf32>
    %46 = tpu.matmul %45, %42, %cst_39 {dimension_numbers = #tpu.dot_dimension_numbers<[1], [0], [0], [1], [0, 0, 1, 1], [], []>} : vector<512x128xbf16>, vector<128x128xbf16>, vector<512x128xf32> -> vector<512x128xf32>
    %47 = arith.addf %44, %46 : vector<512x128xf32>
    %48 = vector.broadcast %43 : vector<1x128xf32> to vector<512x128xf32>
    %49 = arith.addf %47, %48 : vector<512x128xf32>
    %cst_40 = arith.constant 0.000000e+00 : f32
    %50 = vector.broadcast %cst_40 : f32 to vector<512x128xf32>
    %51 = arith.maximumf %49, %50 : vector<512x128xf32>
    %c0_41 = arith.constant 0 : index
    %c0_42 = arith.constant 0 : index
    %52 = vector.load %arg16[%c0_41, %c0_42] : memref<128x128xbf16, #tpu.memory_space<vmem>>, vector<128x128xbf16>
    %c0_43 = arith.constant 0 : index
    %c0_44 = arith.constant 0 : index
    %53 = vector.load %arg17[%c0_43, %c0_44] : memref<1x128xf32, #tpu.memory_space<vmem>>, vector<1x128xf32>
    %54 = arith.truncf %51 : vector<512x128xf32> to vector<512x128xbf16>
    %cst_45 = arith.constant dense<0.000000e+00> : vector<512x128xf32>
    %55 = tpu.matmul %54, %52, %cst_45 {dimension_numbers = #tpu.dot_dimension_numbers<[1], [0], [0], [1], [0, 0, 1, 1], [], []>} : vector<512x128xbf16>, vector<128x128xbf16>, vector<512x128xf32> -> vector<512x128xf32>
    %56 = vector.broadcast %53 : vector<1x128xf32> to vector<512x128xf32>
    %57 = arith.addf %55, %56 : vector<512x128xf32>
    %cst_46 = arith.constant 0.000000e+00 : f32
    %58 = vector.broadcast %cst_46 : f32 to vector<512x128xf32>
    %59 = arith.maximumf %57, %58 : vector<512x128xf32>
    %c0_47 = arith.constant 0 : index
    %c0_48 = arith.constant 0 : index
    %60 = vector.load %arg18[%c0_47, %c0_48] : memref<128x128xbf16, #tpu.memory_space<vmem>>, vector<128x128xbf16>
    %c0_49 = arith.constant 0 : index
    %c0_50 = arith.constant 0 : index
    %61 = vector.load %arg19[%c0_49, %c0_50] : memref<1x128xf32, #tpu.memory_space<vmem>>, vector<1x128xf32>
    %62 = arith.truncf %59 : vector<512x128xf32> to vector<512x128xbf16>
    %cst_51 = arith.constant dense<0.000000e+00> : vector<512x128xf32>
    %63 = tpu.matmul %62, %60, %cst_51 {dimension_numbers = #tpu.dot_dimension_numbers<[1], [0], [0], [1], [0, 0, 1, 1], [], []>} : vector<512x128xbf16>, vector<128x128xbf16>, vector<512x128xf32> -> vector<512x128xf32>
    %64 = vector.broadcast %61 : vector<1x128xf32> to vector<512x128xf32>
    %65 = arith.addf %63, %64 : vector<512x128xf32>
    %cst_52 = arith.constant 0.000000e+00 : f32
    %66 = vector.broadcast %cst_52 : f32 to vector<512x128xf32>
    %67 = arith.maximumf %65, %66 : vector<512x128xf32>
    %68 = arith.truncf %67 : vector<512x128xf32> to vector<512x128xbf16>
    %c0_53 = arith.constant 0 : index
    %c0_54 = arith.constant 0 : index
    %69 = vector.load %arg20[%c0_53, %c0_54] : memref<128x128xbf16, #tpu.memory_space<vmem>>, vector<128x128xbf16>
    %c0_55 = arith.constant 0 : index
    %c0_56 = arith.constant 0 : index
    %70 = vector.load %arg21[%c0_55, %c0_56] : memref<1x128xf32, #tpu.memory_space<vmem>>, vector<1x128xf32>
    %cst_57 = arith.constant dense<0.000000e+00> : vector<512x128xf32>
    %71 = tpu.matmul %68, %69, %cst_57 {dimension_numbers = #tpu.dot_dimension_numbers<[1], [0], [0], [1], [0, 0, 1, 1], [], []>} : vector<512x128xbf16>, vector<128x128xbf16>, vector<512x128xf32> -> vector<512x128xf32>
    %72 = vector.broadcast %70 : vector<1x128xf32> to vector<512x128xf32>
    %73 = arith.addf %71, %72 : vector<512x128xf32>
    %c0_58 = arith.constant 0 : index
    %c0_59 = arith.constant 0 : index
    %74 = vector.load %arg22[%c0_58, %c0_59] : memref<128x64xbf16, #tpu.memory_space<vmem>>, vector<128x64xbf16>
    %c0_60 = arith.constant 0 : index
    %c0_61 = arith.constant 0 : index
    %75 = vector.load %arg23[%c0_60, %c0_61] : memref<16x64xbf16, #tpu.memory_space<vmem>>, vector<16x64xbf16>
    %c0_62 = arith.constant 0 : index
    %c0_63 = arith.constant 0 : index
    %76 = vector.load %arg24[%c0_62, %c0_63] : memref<1x64xf32, #tpu.memory_space<vmem>>, vector<1x64xf32>
    %77 = arith.truncf %73 : vector<512x128xf32> to vector<512x128xbf16>
    %cst_64 = arith.constant dense<0.000000e+00> : vector<512x64xf32>
    %78 = tpu.matmul %77, %74, %cst_64 {dimension_numbers = #tpu.dot_dimension_numbers<[1], [0], [0], [1], [0, 0, 1, 1], [], []>} : vector<512x128xbf16>, vector<128x64xbf16>, vector<512x64xf32> -> vector<512x64xf32>
    %cst_65 = arith.constant dense<0.000000e+00> : vector<512x64xf32>
    %79 = tpu.matmul %1, %75, %cst_65 {dimension_numbers = #tpu.dot_dimension_numbers<[1], [0], [0], [1], [0, 0, 1, 1], [], []>} : vector<512x16xbf16>, vector<16x64xbf16>, vector<512x64xf32> -> vector<512x64xf32>
    %80 = arith.addf %78, %79 : vector<512x64xf32>
    %81 = vector.broadcast %76 : vector<1x64xf32> to vector<512x64xf32>
    %82 = arith.addf %80, %81 : vector<512x64xf32>
    %cst_66 = arith.constant 0.000000e+00 : f32
    %83 = vector.broadcast %cst_66 : f32 to vector<512x64xf32>
    %84 = arith.maximumf %82, %83 : vector<512x64xf32>
    %c0_67 = arith.constant 0 : index
    %c0_68 = arith.constant 0 : index
    %85 = vector.load %arg25[%c0_67, %c0_68] : memref<64x4xbf16, #tpu.memory_space<vmem>>, vector<64x4xbf16>
    %c0_69 = arith.constant 0 : index
    %c0_70 = arith.constant 0 : index
    %86 = vector.load %arg26[%c0_69, %c0_70] : memref<128x4xbf16, #tpu.memory_space<vmem>>, vector<128x4xbf16>
    %c0_71 = arith.constant 0 : index
    %c0_72 = arith.constant 0 : index
    %87 = vector.load %arg27[%c0_71, %c0_72] : memref<1x4xf32, #tpu.memory_space<vmem>>, vector<1x4xf32>
    %88 = arith.truncf %84 : vector<512x64xf32> to vector<512x64xbf16>
    %cst_73 = arith.constant dense<0.000000e+00> : vector<512x4xf32>
    %89 = tpu.matmul %88, %85, %cst_73 {dimension_numbers = #tpu.dot_dimension_numbers<[1], [0], [0], [1], [0, 0, 1, 1], [], []>} : vector<512x64xbf16>, vector<64x4xbf16>, vector<512x4xf32> -> vector<512x4xf32>
    %cst_74 = arith.constant dense<0.000000e+00> : vector<512x4xf32>
    %90 = tpu.matmul %68, %86, %cst_74 {dimension_numbers = #tpu.dot_dimension_numbers<[1], [0], [0], [1], [0, 0, 1, 1], [], []>} : vector<512x128xbf16>, vector<128x4xbf16>, vector<512x4xf32> -> vector<512x4xf32>
    %91 = arith.addf %89, %90 : vector<512x4xf32>
    %92 = vector.broadcast %87 : vector<1x4xf32> to vector<512x4xf32>
    %93 = arith.addf %91, %92 : vector<512x4xf32>
    %c0_75 = arith.constant 0 : index
    %c0_76 = arith.constant 0 : index
    %94 = vector.load %arg28[%c0_75, %c0_76] : memref<512x4xf32, #tpu.memory_space<vmem>>, vector<512x4xf32>
    tpu.vector_store %arg28[%c0_75, %c0_76], %93 {strides = array<i32>} : memref<512x4xf32, #tpu.memory_space<vmem>>, vector<512x4xf32>,
    return
  }
  func.func @transform_0(%arg0: i32) -> (i32, i32) {
    %c0_i32 = arith.constant 0 : i32
    %c0_i32_0 = arith.constant 0 : i32
    return %arg0, %c0_i32 : i32, i32
  }
  func.func @transform_1(%arg0: i32) -> (i32, i32) {
    %c0_i32 = arith.constant 0 : i32
    %c0_i32_0 = arith.constant 0 : i32
    return %arg0, %c0_i32 : i32, i32
  }
  func.func @transform_2(%arg0: i32) -> (i32, i32) {
    %c0_i32 = arith.constant 0 : i32
    %c0_i32_0 = arith.constant 0 : i32
    %c0_i32_1 = arith.constant 0 : i32
    return %c0_i32, %c0_i32_0 : i32, i32
  }
  func.func @transform_3(%arg0: i32) -> (i32, i32) {
    %c0_i32 = arith.constant 0 : i32
    %c0_i32_0 = arith.constant 0 : i32
    %c0_i32_1 = arith.constant 0 : i32
    return %c0_i32, %c0_i32_0 : i32, i32
  }
  func.func @transform_4(%arg0: i32) -> (i32, i32) {
    %c0_i32 = arith.constant 0 : i32
    %c0_i32_0 = arith.constant 0 : i32
    %c0_i32_1 = arith.constant 0 : i32
    return %c0_i32, %c0_i32_0 : i32, i32
  }
  func.func @transform_5(%arg0: i32) -> (i32, i32) {
    %c0_i32 = arith.constant 0 : i32
    %c0_i32_0 = arith.constant 0 : i32
    %c0_i32_1 = arith.constant 0 : i32
    return %c0_i32, %c0_i32_0 : i32, i32
  }
  func.func @transform_6(%arg0: i32) -> (i32, i32) {
    %c0_i32 = arith.constant 0 : i32
    %c0_i32_0 = arith.constant 0 : i32
    %c0_i32_1 = arith.constant 0 : i32
    return %c0_i32, %c0_i32_0 : i32, i32
  }
  func.func @transform_7(%arg0: i32) -> (i32, i32) {
    %c0_i32 = arith.constant 0 : i32
    %c0_i32_0 = arith.constant 0 : i32
    %c0_i32_1 = arith.constant 0 : i32
    return %c0_i32, %c0_i32_0 : i32, i32
  }
  func.func @transform_8(%arg0: i32) -> (i32, i32) {
    %c0_i32 = arith.constant 0 : i32
    %c0_i32_0 = arith.constant 0 : i32
    %c0_i32_1 = arith.constant 0 : i32
    return %c0_i32, %c0_i32_0 : i32, i32
  }
  func.func @transform_9(%arg0: i32) -> (i32, i32) {
    %c0_i32 = arith.constant 0 : i32
    %c0_i32_0 = arith.constant 0 : i32
    %c0_i32_1 = arith.constant 0 : i32
    return %c0_i32, %c0_i32_0 : i32, i32
  }
  func.func @transform_10(%arg0: i32) -> (i32, i32) {
    %c0_i32 = arith.constant 0 : i32
    %c0_i32_0 = arith.constant 0 : i32
    %c0_i32_1 = arith.constant 0 : i32
    return %c0_i32, %c0_i32_0 : i32, i32
  }
  func.func @transform_11(%arg0: i32) -> (i32, i32) {
    %c0_i32 = arith.constant 0 : i32
    %c0_i32_0 = arith.constant 0 : i32
    %c0_i32_1 = arith.constant 0 : i32
    return %c0_i32, %c0_i32_0 : i32, i32
  }
  func.func @transform_12(%arg0: i32) -> (i32, i32) {
    %c0_i32 = arith.constant 0 : i32
    %c0_i32_0 = arith.constant 0 : i32
    %c0_i32_1 = arith.constant 0 : i32
    return %c0_i32, %c0_i32_0 : i32, i32
  }
  func.func @transform_13(%arg0: i32) -> (i32, i32) {
    %c0_i32 = arith.constant 0 : i32
    %c0_i32_0 = arith.constant 0 : i32
    %c0_i32_1 = arith.constant 0 : i32
    return %c0_i32, %c0_i32_0 : i32, i32
  }
  func.func @transform_14(%arg0: i32) -> (i32, i32) {
    %c0_i32 = arith.constant 0 : i32
    %c0_i32_0 = arith.constant 0 : i32
    %c0_i32_1 = arith.constant 0 : i32
    return %c0_i32, %c0_i32_0 : i32, i32
  }
  func.func @transform_15(%arg0: i32) -> (i32, i32) {
    %c0_i32 = arith.constant 0 : i32
    %c0_i32_0 = arith.constant 0 : i32
    %c0_i32_1 = arith.constant 0 : i32
    return %c0_i32, %c0_i32_0 : i32, i32
  }
  func.func @transform_16(%arg0: i32) -> (i32, i32) {
    %c0_i32 = arith.constant 0 : i32
    %c0_i32_0 = arith.constant 0 : i32
    %c0_i32_1 = arith.constant 0 : i32
    return %c0_i32, %c0_i32_0 : i32, i32
  }
  func.func @transform_17(%arg0: i32) -> (i32, i32) {
    %c0_i32 = arith.constant 0 : i32
    %c0_i32_0 = arith.constant 0 : i32
    %c0_i32_1 = arith.constant 0 : i32
    return %c0_i32, %c0_i32_0 : i32, i32
  }
  func.func @transform_18(%arg0: i32) -> (i32, i32) {
    %c0_i32 = arith.constant 0 : i32
    %c0_i32_0 = arith.constant 0 : i32
    %c0_i32_1 = arith.constant 0 : i32
    return %c0_i32, %c0_i32_0 : i32, i32
  }
  func.func @transform_19(%arg0: i32) -> (i32, i32) {
    %c0_i32 = arith.constant 0 : i32
    %c0_i32_0 = arith.constant 0 : i32
    %c0_i32_1 = arith.constant 0 : i32
    return %c0_i32, %c0_i32_0 : i32, i32
  }
  func.func @transform_20(%arg0: i32) -> (i32, i32) {
    %c0_i32 = arith.constant 0 : i32
    %c0_i32_0 = arith.constant 0 : i32
    %c0_i32_1 = arith.constant 0 : i32
    return %c0_i32, %c0_i32_0 : i32, i32
  }
  func.func @transform_21(%arg0: i32) -> (i32, i32) {
    %c0_i32 = arith.constant 0 : i32
    %c0_i32_0 = arith.constant 0 : i32
    %c0_i32_1 = arith.constant 0 : i32
    return %c0_i32, %c0_i32_0 : i32, i32
  }
  func.func @transform_22(%arg0: i32) -> (i32, i32) {
    %c0_i32 = arith.constant 0 : i32
    %c0_i32_0 = arith.constant 0 : i32
    %c0_i32_1 = arith.constant 0 : i32
    return %c0_i32, %c0_i32_0 : i32, i32
  }
  func.func @transform_23(%arg0: i32) -> (i32, i32) {
    %c0_i32 = arith.constant 0 : i32
    %c0_i32_0 = arith.constant 0 : i32
    %c0_i32_1 = arith.constant 0 : i32
    return %c0_i32, %c0_i32_0 : i32, i32
  }
  func.func @transform_24(%arg0: i32) -> (i32, i32) {
    %c0_i32 = arith.constant 0 : i32
    %c0_i32_0 = arith.constant 0 : i32
    %c0_i32_1 = arith.constant 0 : i32
    return %c0_i32, %c0_i32_0 : i32, i32
  }
  func.func @transform_25(%arg0: i32) -> (i32, i32) {
    %c0_i32 = arith.constant 0 : i32
    %c0_i32_0 = arith.constant 0 : i32
    %c0_i32_1 = arith.constant 0 : i32
    return %c0_i32, %c0_i32_0 : i32, i32
  }
  func.func @transform_26(%arg0: i32) -> (i32, i32) {
    %c0_i32 = arith.constant 0 : i32
    %c0_i32_0 = arith.constant 0 : i32
    %c0_i32_1 = arith.constant 0 : i32
    return %c0_i32, %c0_i32_0 : i32, i32
  }
  func.func @transform_27(%arg0: i32) -> (i32, i32) {
    %c0_i32 = arith.constant 0 : i32
    %c0_i32_0 = arith.constant 0 : i32
    return %arg0, %c0_i32 : i32, i32
  }
}

</mosaic_0001>

<bundles_post_ra>
// kernel: tpu_custom_call.1
= control target key start
LH: loop header
LB: loop body
LE: loop exit
PB: predicated region body
PF: predicated region fallthrough
CT: control target
= control target key end

     0   :  { %s9314_s0 = inlined_call_operand.vmem [shape: bf16[1024,8], index: 0, kind: input, shape index: {}]   ;;  %s9315_s1 = inlined_call_operand.vmem [shape: bf16[1024,16], index: 1, kind: input, shape index: {}]   ;;  %s9316_s2 = inlined_call_operand.vmem [shape: bf16[8,128], index: 2, kind: input, shape index: {}]   ;;  %s9317_s3 = inlined_call_operand.vmem [shape: f32[1,128], index: 3, kind: input, shape index: {}]   ;;  %s9318_s4 = inlined_call_operand.vmem [shape: bf16[128,128], index: 4, kind: input, shape index: {}]   ;;  %s9319_s5 = inlined_call_operand.vmem [shape: f32[1,128], index: 5, kind: input, shape index: {}]   ;;  %s9320_s6 = inlined_call_operand.vmem [shape: bf16[128,128], index: 6, kind: input, shape index: {}]   ;;  %s9321_s7 = inlined_call_operand.vmem [shape: f32[1,128], index: 7, kind: input, shape index: {}]   ;;  %s9322_s8 = inlined_call_operand.vmem [shape: bf16[128,128], index: 8, kind: input, shape index: {}]   ;;  %s9323_s9 = inlined_call_operand.vmem [shape: f32[1,128], index: 9, kind: input, shape index: {}]   ;;  %s9324_s10 = inlined_call_operand.vmem [shape: bf16[128,128], index: 10, kind: input, shape index: {}]   ;;  %s9325_s11 = inlined_call_operand.vmem [shape: f32[1,128], index: 11, kind: input, shape index: {}]   ;;  %s9326_s12 = inlined_call_operand.vmem [shape: bf16[8,128], index: 12, kind: input, shape index: {}]   ;;  %s9327_s13 = inlined_call_operand.vmem [shape: bf16[128,128], index: 13, kind: input, shape index: {}]   ;;  %s9328_s14 = inlined_call_operand.vmem [shape: f32[1,128], index: 14, kind: input, shape index: {}]   ;;  %s9329_s15 = inlined_call_operand.vmem [shape: bf16[128,128], index: 15, kind: input, shape index: {}]   ;;  %s9330_s16 = inlined_call_operand.vmem [shape: f32[1,128], index: 16, kind: input, shape index: {}]   ;;  %s9331_s17 = inlined_call_operand.vmem [shape: bf16[128,128], index: 17, kind: input, shape index: {}]   ;;  %s9332_s18 = inlined_call_operand.vmem [shape: f32[1,128], index: 18, kind: input, shape index: {}]   ;;  %s9333_s19 = inlined_call_operand.vmem [shape: bf16[128,128], index: 19, kind: input, shape index: {}]   ;;  %s9334_s20 = inlined_call_operand.vmem [shape: f32[1,128], index: 20, kind: input, shape index: {}]   ;;  %s9335_s21 = inlined_call_operand.vmem [shape: bf16[128,64], index: 21, kind: input, shape index: {}]   ;;  %s9336_s22 = inlined_call_operand.vmem [shape: bf16[16,64], index: 22, kind: input, shape index: {}]   ;;  %s9337_s23 = inlined_call_operand.vmem [shape: f32[1,64], index: 23, kind: input, shape index: {}]   ;;  %s9338_s24 = inlined_call_operand.vmem [shape: bf16[64,4], index: 24, kind: input, shape index: {}]   ;;  %s9339_s25 = inlined_call_operand.vmem [shape: bf16[128,4], index: 25, kind: input, shape index: {}]   ;;  %s9340_s26 = inlined_call_operand.vmem [shape: f32[1,4], index: 26, kind: input, shape index: {}]   ;;  %s9341_s27 = inlined_call_operand.vmem [shape: f32[1024,4], index: 27, kind: output, shape index: {}]  }
   0x1   :  { %9358 = sst [smem:[#allocation7_spill]] %s9314_s0 }
   0x2   :  { %9359 = sst [smem:[#allocation8_spill]] %s9315_s1 }
   0x3   :  { %9360 = sst [smem:[#allocation9_spill]] %s9316_s2 }
   0x4   :  { %9361 = sst [smem:[#allocation10_spill]] %s9317_s3 }
   0x5   :  { %9362 = sst [smem:[#allocation11_spill]] %s9318_s4 }
   0x6   :  { %9363 = sst [smem:[#allocation12_spill]] %s9319_s5 }
   0x7   :  { %9364 = sst [smem:[#allocation13_spill]] %s9320_s6 }
   0x8   :  { %9365 = sst [smem:[#allocation14_spill]] %s9321_s7  ;;  %s7008_s7 = smov 0  }
   0x9   :  { %9366 = sst [smem:[#allocation15_spill]] %s9322_s8 }
   0xa   :  { %9367 = sst [smem:[#allocation16_spill]] %s9323_s9 }
   0xb   :  { %9368 = sst [smem:[#allocation17_spill]] %s9324_s10 }
   0xc   :  { %9369 = sst [smem:[#allocation18_spill]] %s9325_s11 }
   0xd LB: > { %s5904_s4 = sadd.s32 4294967295, %s6866_s7   ;;  %p5908_p0 = scmp.ge.s32.totalorder %s6866_s7, 1  ;;  %s6866_s7 = sphi %s7008_s7, %s37_s7  }
   0xe   : > { %p749_p1 = scmp.lt.s32.totalorder %s6866_s7, 3 }
  0x10   : > { %p750_p2 = pnand %p5908_p0, %p749_p1 }
  0x12   : > { %753 = sbr.rel (%p750_p2) target bundleno = 2779 (0xadb), region = 128 }
  0x17   : > { %s9370_s9 = sld [smem:[#allocation9_spill]]  ;;  %vm1235_vm0 = vcmask 1043456   ;;  %s5909_s5 = sshll.u32 %s5904_s4, 6  ;;  %vm1138_vm1 = vcmask 64512   ;;  %vm4526_vm2 = vcmask 130048   ;;  %vm5438_vm3 = vcmask 523264  }
  0x18   : > { %p827_p3 = scmp.lt.s32.totalorder %s5909_s5, 127  ;;  %s9371_s29 = sld [smem:[#allocation7_spill]]  ;;  %vm5771_vm4 = vcmask 31744  }
  0x19   : > { %s9372_s2 = sld [smem:[#allocation11_spill]] }
  0x1a   : > { %s9410_s5 = smov (!%p827_p3, %s5909_s5), 127  ;;  %s9373_s10 = sld [smem:[#allocation10_spill]] }
  0x1b   : > { %s9350_s28 = sshll.u32 %s9410_s5, 2  ;;  %s9374_s11 = sld [smem:[#allocation12_spill]] }
  0x1c   : > { %s9375_s8 = sld [smem:[#allocation13_spill]]  ;;  %s9381_s3 = sshll.u32 %s9410_s5, 2 }
  0x1d   : > { %v973_v0 = vld [vmem:[%s9370_s9] sm:$0xf]  ;;  %s9377_s6 = sld [smem:[#allocation17_spill]] }
  0x1e   : > { %v1237_v1 = vsel %vm1235_vm0, %v973_v0, 0  ;;  %s7028_s1 = scalar_lea.vmem %s9371_s29, %s9350_s28  ;;  %s9376_s29 = sld [smem:[#allocation15_spill]] }
  0x1f   : > { %1246 = vmatpush.bf16.msra.mxu0 %v1237_v1  ;;  %6790 = vmatpush.bf16.msra.mxu3 %v1237_v1  ;;  %v6641_v2 = vld [vmem:[%s7028_s1] sm:$0xff]  ;;  %v6642_v3 = vld [vmem:[%s7028_s1 + $0x8] sm:$0xff]  ;;  %v6643_v4 = vld [vmem:[%s7028_s1 + $0x10] sm:$0xff]  ;;  %s9378_s30 = sld [smem:[#allocation14_spill]] }
  0x20   : > { %v6644_v5 = vld [vmem:[%s7028_s1 + $0x18] sm:$0xff]  ;;  %v6645_v6 = vld [vmem:[%s7028_s1 + $0x20] sm:$0xff]  ;;  %v6646_v8 = vld [vmem:[%s7028_s1 + $0x28] sm:$0xff]  ;;  %s9379_s0 = sld [smem:[#allocation16_spill]] }
  0x21   : > { %v6712_v7 = vld [vmem:[%s9372_s2 + $0x38] sm:$0xff]  ;;  %v6711_v9 = vld [vmem:[%s9372_s2 + $0x30] sm:$0xff]  ;;  %v6710_v10 = vld [vmem:[%s9372_s2 + $0x28] sm:$0xff]  ;;  %s9380_s4 = sld [smem:[#allocation18_spill]] }
  0x22   : > { %6043 = vmatmul.msk.bf16.vlgmr.msra.gmra.mxu0 %vm1138_vm1, %v6641_v2  ;;  %1572 = vmatpush.bf16.msra.mxu1 %v6712_v7  ;;  %v6709_v11 = vld [vmem:[%s9372_s2 + $0x20] sm:$0xff]  ;;  %v6708_v12 = vld [vmem:[%s9372_s2 + $0x18] sm:$0xff]  ;;  %v6647_v13 = vld [vmem:[%s7028_s1 + $0x30] sm:$0xff] }
  0x23   : > { %6791 = vmatpush.bf16.msra.mxu2 %v6712_v7  ;;  %v6707_v14 = vld [vmem:[%s9372_s2 + $0x10] sm:$0xff]  ;;  %v6706_v15 = vld [vmem:[%s9372_s2 + $0x8] sm:$0xff]  ;;  %v6705_v16 = vld [vmem:[%s9372_s2] sm:$0xff] }
  0x24   : > { %v6648_v17 = vld [vmem:[%s7028_s1 + $0x38] sm:$0xff]  ;;  %v6649_v18 = vld [vmem:[%s7028_s1 + $0x40] sm:$0xff]  ;;  %v6650_v27 = vld [vmem:[%s7028_s1 + $0x48] sm:$0xff] }
  0x25   : > { %v7074_v20 = vld [vmem:[%s9373_s10] ss:$0 sm:$0xff]  ;;  %v6651_v35 = vld [vmem:[%s7028_s1 + $0x50] sm:$0xff]  ;;  %v6652_v43 = vld [vmem:[%s7028_s1 + $0x58] sm:$0xff] }
  0x26   : > { %1573 = vmatpush.bf16.msra.mxu1 %v6711_v9  ;;  %v6653_v51 = vld [vmem:[%s7028_s1 + $0x60] sm:$0xff]  ;;  %v6654_v59 = vld [vmem:[%s7028_s1 + $0x68] sm:$0xff] }
  0x27   : > { %6792 = vmatpush.bf16.msra.mxu2 %v6711_v9 }
  0x2a   : > { %1574 = vmatpush.bf16.msra.mxu1 %v6710_v10 }
  0x2b   : > { %6793 = vmatpush.bf16.msra.mxu2 %v6710_v10 }
  0x2e   : > { %1575 = vmatpush.bf16.msra.mxu1 %v6709_v11 }
  0x2f   : > { %6794 = vmatpush.bf16.msra.mxu2 %v6709_v11 }
  0x32   : > { %6044 = vmatmul.msk.bf16.gmra.mxu0 %vm1138_vm1, %v6642_v3  ;;  %1576 = vmatpush.bf16.msra.mxu1 %v6708_v12  ;;  %v6655_v3 = vld [vmem:[%s7028_s1 + $0x70] sm:$0xff] }
  0x33   : > { %6795 = vmatpush.bf16.msra.mxu2 %v6708_v12  ;;  %v6656_v12 = vld [vmem:[%s7028_s1 + $0x78] sm:$0xff] }
  0x36   : > { %1577 = vmatpush.bf16.msra.mxu1 %v6707_v14 }
  0x37   : > { %6796 = vmatpush.bf16.msra.mxu2 %v6707_v14  ;;  %v6659_v14 = vld [vmem:[%s7028_s1 + $0x90] sm:$0xff] }
  0x3a   : > { %1578 = vmatpush.bf16.msra.mxu1 %v6706_v15 }
  0x3b   : > { %6797 = vmatpush.bf16.msra.mxu2 %v6706_v15 }
  0x3e   : > { %1579 = vmatpush.bf16.msra.mxu1 %v6705_v16 }
  0x3f   : > { %6798 = vmatpush.bf16.msra.mxu2 %v6705_v16 }
  0x42   : > { %6045 = vmatmul.msk.bf16.gmra.mxu0 %vm1138_vm1, %v6643_v4 }
  0x52   : > { %6046 = vmatmul.msk.bf16.gmra.mxu0 %vm1138_vm1, %v6644_v5  ;;  %v6658_v5 = vld [vmem:[%s7028_s1 + $0x88] sm:$0xff] }
  0x53   : > { %6060 = vmatmul.msk.bf16.vlgmr.msra.gmra.mxu3 %vm1138_vm1, %v6658_v5 }
  0x62   : > { %6047 = vmatmul.msk.bf16.gmra.mxu0 %vm1138_vm1, %v6645_v6 }
  0x63   : > { %6061 = vmatmul.msk.bf16.gmra.mxu3 %vm1138_vm1, %v6659_v14 }
  0x72   : > { %6048 = vmatmul.msk.bf16.gmra.mxu0 %vm1138_vm1, %v6646_v8 }
  0x82   : > { %6049 = vmatmul.msk.bf16.gmra.mxu0 %vm1138_vm1, %v6647_v13 }
  0x92   : > { %6050 = vmatmul.msk.bf16.gmra.mxu0 %vm1138_vm1, %v6648_v17 }
  0x9f   : > { %v1248_v19 = vpop.f32.mrf.mxu0 }
  0xa0   : > { %v1249_v21 = vadd.f32 %v7074_v20, %v1248_v19 }
  0xa2   : > { %6051 = vmatmul.msk.bf16.gmra.mxu0 %vm1138_vm1, %v6649_v18  ;;  %v1408_v24 = vmax.f32 %v1249_v21, 0.0 }
  0xa7   : > { %v1250_v22 = vpop.f32.mrf.mxu0 }
  0xa8   : > { %v1251_v23 = vadd.f32 %v7074_v20, %v1250_v22  ;;  %v6657_v22 = vld [vmem:[%s7028_s1 + $0x80] sm:$0xff] }
  0xaa   : > { %v1409_v25 = vmax.f32 %v1251_v23, 0.0 }
  0xac   : > { %v1489_v26 = vpack.c.bf16 %v1409_v25, %v1408_v24  ;;  %v6660_v24 = vld [vmem:[%s7028_s1 + $0x98] sm:$0xff] }
  0xad   : > { %6062 = vmatmul.msk.bf16.gmra.mxu3 %vm1138_vm1, %v6660_v24 }
  0xae   : > { %1580 = vmatmul.bf16.vlgmr.msra.gmra.mxu1 %v1489_v26 }
  0xaf   : > { %v1253_v28 = vpop.f32.mrf.mxu0 }
  0xb0   : > { %v1254_v29 = vadd.f32 %v7074_v20, %v1253_v28 }
  0xb2   : > { %6052 = vmatmul.msk.bf16.gmra.mxu0 %vm1138_vm1, %v6650_v27  ;;  %v1410_v32 = vmax.f32 %v1254_v29, 0.0 }
  0xb7   : > { %v1255_v30 = vpop.f32.mrf.mxu0 }
  0xb8   : > { %v1256_v31 = vadd.f32 %v7074_v20, %v1255_v30 }
  0xba   : > { %v1411_v33 = vmax.f32 %v1256_v31, 0.0 }
  0xbc   : > { %v1490_v34 = vpack.c.bf16 %v1411_v33, %v1410_v32  ;;  %v7120_v32 = vld [vmem:[%s9374_s11] ss:$0 sm:$0xff] }
  0xbe   : > { %1585 = vmatmul.bf16.gmra.mxu1 %v1490_v34 }
  0xbf   : > { %v1258_v36 = vpop.f32.mrf.mxu0 }
  0xc0   : > { %v1259_v37 = vadd.f32 %v7074_v20, %v1258_v36 }
  0xc2   : > { %6053 = vmatmul.msk.bf16.gmra.mxu0 %vm1138_vm1, %v6651_v35  ;;  %v1412_v40 = vmax.f32 %v1259_v37, 0.0  ;;  %v6661_v35 = vld [vmem:[%s7028_s1 + $0xa0] sm:$0xff] }
  0xc3   : > { %6063 = vmatmul.msk.bf16.gmra.mxu3 %vm1138_vm1, %v6661_v35 }
  0xc7   : > { %v1260_v38 = vpop.f32.mrf.mxu0 }
  0xc8   : > { %v1261_v39 = vadd.f32 %v7074_v20, %v1260_v38 }
  0xca   : > { %v1413_v41 = vmax.f32 %v1261_v39, 0.0 }
  0xcc   : > { %v1491_v42 = vpack.c.bf16 %v1413_v41, %v1412_v40 }
  0xce   : > { %1590 = vmatmul.bf16.gmra.mxu1 %v1491_v42 }
  0xcf   : > { %v1263_v44 = vpop.f32.mrf.mxu0 }
  0xd0   : > { %v1264_v45 = vadd.f32 %v7074_v20, %v1263_v44 }
  0xd2   : > { %6054 = vmatmul.msk.bf16.gmra.mxu0 %vm1138_vm1, %v6652_v43  ;;  %v1414_v48 = vmax.f32 %v1264_v45, 0.0 }
  0xd7   : > { %v1265_v46 = vpop.f32.mrf.mxu0 }
  0xd8   : > { %v1266_v47 = vadd.f32 %v7074_v20, %v1265_v46 }
  0xda   : > { %v1415_v49 = vmax.f32 %v1266_v47, 0.0 }
  0xdc   : > { %v1492_v50 = vpack.c.bf16 %v1415_v49, %v1414_v48 }
  0xde   : > { %1595 = vmatmul.bf16.gmra.mxu1 %v1492_v50  ;;  %v6662_v50 = vld [vmem:[%s7028_s1 + $0xa8] sm:$0xff] }
  0xdf   : > { %v1268_v52 = vpop.f32.mrf.mxu0  ;;  %6064 = vmatmul.msk.bf16.gmra.mxu3 %vm1138_vm1, %v6662_v50 }
  0xe0   : > { %v1269_v53 = vadd.f32 %v7074_v20, %v1268_v52 }
  0xe2   : > { %6055 = vmatmul.msk.bf16.gmra.mxu0 %vm1138_vm1, %v6653_v51  ;;  %v1416_v56 = vmax.f32 %v1269_v53, 0.0 }
  0xe7   : > { %v1270_v54 = vpop.f32.mrf.mxu0 }
  0xe8   : > { %v1271_v55 = vadd.f32 %v7074_v20, %v1270_v54 }
  0xea   : > { %v1417_v57 = vmax.f32 %v1271_v55, 0.0 }
  0xec   : > { %v1493_v58 = vpack.c.bf16 %v1417_v57, %v1416_v56 }
  0xee   : > { %1600 = vmatmul.bf16.gmra.mxu1 %v1493_v58 }
  0xef   : > { %v1273_v60 = vpop.f32.mrf.mxu0 }
  0xf0   : > { %v1274_v61 = vadd.f32 %v7074_v20, %v1273_v60 }
  0xf2   : > { %6056 = vmatmul.msk.bf16.gmra.mxu0 %vm1138_vm1, %v6654_v59  ;;  %v1418_v0 = vmax.f32 %v1274_v61, 0.0 }
  0xf7   : > { %v1275_v62 = vpop.f32.mrf.mxu0 }
  0xf8   : > { %v1276_v63 = vadd.f32 %v7074_v20, %v1275_v62 }
  0xfa   : > { %v1419_v1 = vmax.f32 %v1276_v63, 0.0 }
  0xfc   : > { %v1494_v2 = vpack.c.bf16 %v1419_v1, %v1418_v0  ;;  %v6663_v1 = vld [vmem:[%s7028_s1 + $0xb0] sm:$0xff] }
  0xfd   : > { %6065 = vmatmul.msk.bf16.gmra.mxu3 %vm1138_vm1, %v6663_v1 }
  0xfe   : > { %1605 = vmatmul.bf16.gmra.mxu1 %v1494_v2 }
  0xff   : > { %v1278_v4 = vpop.f32.mrf.mxu0 }
 0x100   : > { %v1279_v6 = vadd.f32 %v7074_v20, %v1278_v4 }
 0x102   : > { %6057 = vmatmul.msk.bf16.gmra.mxu0 %vm1138_vm1, %v6655_v3  ;;  %v1420_v9 = vmax.f32 %v1279_v6, 0.0 }
 0x107   : > { %v1280_v7 = vpop.f32.mrf.mxu0 }
 0x108   : > { %v1281_v8 = vadd.f32 %v7074_v20, %v1280_v7 }
 0x10a   : > { %v1421_v10 = vmax.f32 %v1281_v8, 0.0 }
 0x10c   : > { %v1495_v11 = vpack.c.bf16 %v1421_v10, %v1420_v9 }
 0x10e   : > { %1610 = vmatmul.bf16.gmra.mxu1 %v1495_v11 }
 0x10f   : > { %v1283_v13 = vpop.f32.mrf.mxu0 }
 0x110   : > { %v1284_v15 = vadd.f32 %v7074_v20, %v1283_v13 }
 0x112   : > { %6058 = vmatmul.msk.bf16.gmra.mxu0 %vm1138_vm1, %v6656_v12  ;;  %v1422_v18 = vmax.f32 %v1284_v15, 0.0 }
 0x117   : > { %v1285_v16 = vpop.f32.mrf.mxu0 }
 0x118   : > { %v1286_v17 = vadd.f32 %v7074_v20, %v1285_v16  ;;  %v6664_v16 = vld [vmem:[%s7028_s1 + $0xb8] sm:$0xff] }
 0x119   : > { %6066 = vmatmul.msk.bf16.gmra.mxu3 %vm1138_vm1, %v6664_v16 }
 0x11a   : > { %v1423_v19 = vmax.f32 %v1286_v17, 0.0 }
 0x11c   : > { %v1496_v21 = vpack.c.bf16 %v1423_v19, %v1422_v18 }
 0x11e   : > { %1615 = vmatmul.bf16.gmra.mxu1 %v1496_v21 }
 0x11f   : > { %v1288_v23 = vpop.f32.mrf.mxu0 }
 0x120   : > { %v1289_v25 = vadd.f32 %v7074_v20, %v1288_v23 }
 0x122   : > { %6059 = vmatmul.msk.bf16.gmra.mxu0 %vm1138_vm1, %v6657_v22  ;;  %v1424_v28 = vmax.f32 %v1289_v25, 0.0 }
 0x127   : > { %v1290_v26 = vpop.f32.mrf.mxu0 }
 0x128   : > { %v1291_v27 = vadd.f32 %v7074_v20, %v1290_v26 }
 0x12a   : > { %v1425_v29 = vmax.f32 %v1291_v27, 0.0 }
 0x12b   : > { %v1581_v30 = vpop.f32.mrf.mxu1 }
 0x12c   : > { %v1497_v31 = vpack.c.bf16 %v1425_v29, %v1424_v28  ;;  %v1582_v34 = vadd.f32 %v7120_v32, %v1581_v30  ;;  %v6665_v30 = vld [vmem:[%s7028_s1 + $0xc0] sm:$0xff] }
 0x12d   : > { %6067 = vmatmul.msk.bf16.gmra.mxu3 %vm1138_vm1, %v6665_v30 }
 0x12e   : > { %1620 = vmatmul.bf16.gmra.mxu1 %v1497_v31  ;;  %v1741_v38 = vmax.f32 %v1582_v34, 0.0 }
 0x12f   : > { %v1293_v33 = vpop.f32.mrf.mxu0 }
 0x130   : > { %v1294_v39 = vadd.f32 %v7074_v20, %v1293_v33 }
 0x132   : > { %v1426_v44 = vmax.f32 %v1294_v39, 0.0  ;;  %v6666_v39 = vld [vmem:[%s7028_s1 + $0xc8] sm:$0xff] }
 0x133   : > { %v1583_v36 = vpop.f32.mrf.mxu1 }
 0x134   : > { %v1584_v37 = vadd.f32 %v7120_v32, %v1583_v36 }
 0x136   : > { %v1742_v40 = vmax.f32 %v1584_v37, 0.0 }
 0x137   : > { %v1295_v41 = vpop.f32.mrf.mxu0 }
 0x138   : > { %v7127_v42 = vpack.c.bf16 %v1742_v40, %v1741_v38  ;;  %v1296_v43 = vadd.f32 %v7074_v20, %v1295_v41 }
 0x13a   : > { %v1427_v45 = vmax.f32 %v1296_v43, 0.0  ;;  %v1333_v43 = vpop.f32.mrf.mxu3 }
 0x13b   : > { %v1586_v46 = vpop.f32.mrf.mxu1 }
 0x13c   : > { %v1498_v47 = vpack.c.bf16 %v1427_v45, %v1426_v44  ;;  %v1587_v49 = vadd.f32 %v7120_v32, %v1586_v46 }
 0x13d   : > { %6068 = vmatmul.msk.bf16.gmra.mxu3 %vm1138_vm1, %v6666_v39 }
 0x13e   : > { %1625 = vmatmul.bf16.gmra.mxu1 %v1498_v47  ;;  %v1743_v53 = vmax.f32 %v1587_v49, 0.0 }
 0x13f   : > { %v1298_v48 = vpop.f32.mrf.mxu0 }
 0x140   : > { %v1299_v54 = vadd.f32 %v7074_v20, %v1298_v48  ;;  %v6720_v48 = vld [vmem:[%s9375_s8 + $0x38] sm:$0xff] }
 0x141   : > { %1905 = vmatpush.bf16.msrb.mxu2 %v6720_v48 }
 0x142   : > { %v1428_v59 = vmax.f32 %v1299_v54, 0.0  ;;  %v1335_v50 = vpop.f32.mrf.mxu3 }
 0x143   : > { %v1588_v51 = vpop.f32.mrf.mxu1 }
 0x144   : > { %v1589_v52 = vadd.f32 %v7120_v32, %v1588_v51  ;;  %v6667_v51 = vld [vmem:[%s7028_s1 + $0xd0] sm:$0xff] }
 0x146   : > { %v1744_v55 = vmax.f32 %v1589_v52, 0.0 }
 0x147   : > { %v1300_v56 = vpop.f32.mrf.mxu0 }
 0x148   : > { %v1301_v57 = vadd.f32 %v7074_v20, %v1300_v56  ;;  %v7136_v58 = vpack.c.bf16 %v1744_v55, %v1743_v53 }
 0x14a   : > { %v1429_v60 = vmax.f32 %v1301_v57, 0.0  ;;  %v1338_v54 = vpop.f32.mrf.mxu3 }
 0x14b   : > { %v1591_v61 = vpop.f32.mrf.mxu1 }
 0x14c   : > { %v1499_v62 = vpack.c.bf16 %v1429_v60, %v1428_v59  ;;  %v1592_v0 = vadd.f32 %v7120_v32, %v1591_v61 }
 0x14d   : > { %6069 = vmatmul.msk.bf16.gmra.mxu3 %vm1138_vm1, %v6667_v51 }
 0x14e   : > { %1630 = vmatmul.bf16.gmra.mxu1 %v1499_v62  ;;  %v1745_v4 = vmax.f32 %v1592_v0, 0.0  ;;  %v6668_v62 = vld [vmem:[%s7028_s1 + $0xd8] sm:$0xff] }
 0x14f   : > { %v1303_v63 = vpop.f32.mrf.mxu0 }
 0x150   : > { %v1304_v5 = vadd.f32 %v7074_v20, %v1303_v63 }
 0x152   : > { %v1430_v10 = vmax.f32 %v1304_v5, 0.0  ;;  %v1340_v61 = vpop.f32.mrf.mxu3 }
 0x153   : > { %v1593_v2 = vpop.f32.mrf.mxu1 }
 0x154   : > { %v1594_v3 = vadd.f32 %v7120_v32, %v1593_v2 }
 0x156   : > { %v1746_v6 = vmax.f32 %v1594_v3, 0.0 }
 0x157   : > { %v1305_v7 = vpop.f32.mrf.mxu0 }
 0x158   : > { %v1306_v8 = vadd.f32 %v7074_v20, %v1305_v7  ;;  %v7144_v9 = vpack.c.bf16 %v1746_v6, %v1745_v4  ;;  %v6719_v6 = vld [vmem:[%s9375_s8 + $0x30] sm:$0xff] }
 0x159   : > { %1906 = vmatpush.bf16.msrb.mxu2 %v6719_v6 }
 0x15a   : > { %v1431_v11 = vmax.f32 %v1306_v8, 0.0  ;;  %v1343_v1 = vpop.f32.mrf.mxu3  ;;  %v6669_v8 = vld [vmem:[%s7028_s1 + $0xe0] sm:$0xff] }
 0x15b   : > { %v1596_v12 = vpop.f32.mrf.mxu1 }
 0x15c   : > { %v1500_v13 = vpack.c.bf16 %v1431_v11, %v1430_v10  ;;  %v1597_v15 = vadd.f32 %v7120_v32, %v1596_v12  ;;  %v1334_v10 = vadd.f32 %v7074_v20, %v1333_v43  ;;  %v1336_v11 = vadd.f32 %v7074_v20, %v1335_v50 }
 0x15d   : > { %6070 = vmatmul.msk.bf16.gmra.mxu3 %vm1138_vm1, %v6668_v62 }
 0x15e   : > { %1635 = vmatmul.bf16.gmra.mxu1 %v1500_v13  ;;  %v1747_v19 = vmax.f32 %v1597_v15, 0.0  ;;  %v1442_v13 = vmax.f32 %v1334_v10, 0.0 }
 0x15f   : > { %v1308_v14 = vpop.f32.mrf.mxu0 }
 0x160   : > { %v1309_v21 = vadd.f32 %v7074_v20, %v1308_v14  ;;  %v1443_v14 = vmax.f32 %v1336_v11, 0.0 }
 0x162   : > { %v1432_v26 = vmax.f32 %v1309_v21, 0.0  ;;  %v1345_v7 = vpop.f32.mrf.mxu3  ;;  %v1506_v15 = vpack.c.bf16 %v1443_v14, %v1442_v13 }
 0x163   : > { %v1598_v17 = vpop.f32.mrf.mxu1  ;;  %v1346_v30 = vadd.f32 %v7074_v20, %v1345_v7 }
 0x164   : > { %v1599_v18 = vadd.f32 %v7120_v32, %v1598_v17  ;;  %v6670_v17 = vld [vmem:[%s7028_s1 + $0xe8] sm:$0xff] }
 0x166   : > { %v1748_v22 = vmax.f32 %v1599_v18, 0.0  ;;  %v1339_v18 = vadd.f32 %v7074_v20, %v1338_v54 }
 0x167   : > { %v1310_v23 = vpop.f32.mrf.mxu0 }
 0x168   : > { %v1311_v24 = vadd.f32 %v7074_v20, %v1310_v23  ;;  %v7152_v25 = vpack.c.bf16 %v1748_v22, %v1747_v19  ;;  %v1341_v19 = vadd.f32 %v7074_v20, %v1340_v61  ;;  %v1444_v22 = vmax.f32 %v1339_v18, 0.0 }
 0x16a   : > { %v1433_v27 = vmax.f32 %v1311_v24, 0.0  ;;  %v1348_v12 = vpop.f32.mrf.mxu3  ;;  %v1445_v23 = vmax.f32 %v1341_v19, 0.0 }
 0x16c   : > { %v1501_v28 = vpack.c.bf16 %v1433_v27, %v1432_v26  ;;  %v1507_v24 = vpack.c.bf16 %v1445_v23, %v1444_v22  ;;  %v6718_v26 = vld [vmem:[%s9375_s8 + $0x28] sm:$0xff] }
 0x16d   : > { %6071 = vmatmul.msk.bf16.gmra.mxu3 %vm1138_vm1, %v6669_v8  ;;  %1907 = vmatpush.bf16.msrb.mxu2 %v6718_v26 }
 0x16e   : > { %1640 = vmatmul.bf16.gmra.mxu1 %v1501_v28  ;;  %v6671_v28 = vld [vmem:[%s7028_s1 + $0xf0] sm:$0xff] }
 0x16f   : > { %v1313_v29 = vpop.f32.mrf.mxu0 }
 0x170   : > { %v1314_v31 = vadd.f32 %v7074_v20, %v1313_v29  ;;  %v1344_v29 = vadd.f32 %v7074_v20, %v1343_v1 }
 0x172   : > { %v1434_v35 = vmax.f32 %v1314_v31, 0.0  ;;  %v1350_v16 = vpop.f32.mrf.mxu3 }
 0x173   : > { %v1351_v39 = vadd.f32 %v7074_v20, %v1350_v16  ;;  %v6728_v16 = vld [vmem:[%s9376_s29 + $0x38] sm:$0xff] }
 0x174   : > { %2238 = vmatpush.bf16.msrb.mxu3 %v6728_v16 }
 0x175   : > { %v1449_v43 = vmax.f32 %v1351_v39, 0.0 }
 0x177   : > { %v1315_v33 = vpop.f32.mrf.mxu0 }
 0x178   : > { %v1316_v34 = vadd.f32 %v7074_v20, %v1315_v33  ;;  %v1446_v33 = vmax.f32 %v1344_v29, 0.0 }
 0x17a   : > { %v1435_v36 = vmax.f32 %v1316_v34, 0.0  ;;  %v1353_v21 = vpop.f32.mrf.mxu3  ;;  %v1447_v34 = vmax.f32 %v1346_v30, 0.0 }
 0x17c   : > { %v1502_v37 = vpack.c.bf16 %v1435_v36, %v1434_v35  ;;  %v1508_v35 = vpack.c.bf16 %v1447_v34, %v1446_v33 }
 0x17d   : > { %6072 = vmatmul.msk.bf16.gmra.mxu3 %vm1138_vm1, %v6670_v17 }
 0x17e   : > { %1645 = vmatmul.bf16.gmra.mxu1 %v1502_v37  ;;  %v6672_v37 = vld [vmem:[%s7028_s1 + $0xf8] sm:$0xff] }
 0x17f   : > { %v1318_v38 = vpop.f32.mrf.mxu0 }
 0x180   : > { %v1319_v40 = vadd.f32 %v7074_v20, %v1318_v38  ;;  %v1349_v38 = vadd.f32 %v7074_v20, %v1348_v12  ;;  %v6715_v12 = vld [vmem:[%s9375_s8 + $0x10] sm:$0xff] }
 0x182   : > { %v1436_v45 = vmax.f32 %v1319_v40, 0.0  ;;  %v1355_v27 = vpop.f32.mrf.mxu3 }
 0x183   : > { %v1356_v48 = vadd.f32 %v7074_v20, %v1355_v27 }
 0x185   : > { %v1451_v50 = vmax.f32 %v1356_v48, 0.0 }
 0x187   : > { %v1320_v41 = vpop.f32.mrf.mxu0 }
 0x188   : > { %v1321_v44 = vadd.f32 %v7074_v20, %v1320_v41  ;;  %v1448_v41 = vmax.f32 %v1349_v38, 0.0 }
 0x18a   : > { %v1437_v46 = vmax.f32 %v1321_v44, 0.0  ;;  %v1358_v31 = vpop.f32.mrf.mxu3  ;;  %v1509_v44 = vpack.c.bf16 %v1449_v43, %v1448_v41 }
 0x18c   : > { %v1503_v47 = vpack.c.bf16 %v1437_v46, %v1436_v45  ;;  %v6717_v45 = vld [vmem:[%s9375_s8 + $0x20] sm:$0xff] }
 0x18d   : > { %6073 = vmatmul.msk.bf16.gmra.mxu3 %vm1138_vm1, %v6671_v28  ;;  %1908 = vmatpush.bf16.msrb.mxu2 %v6717_v45  ;;  %v6727_v45 = vld [vmem:[%s9376_s29 + $0x30] sm:$0xff] }
 0x18e   : > { %1650 = vmatmul.bf16.gmra.mxu1 %v1503_v47  ;;  %v1354_v47 = vadd.f32 %v7074_v20, %v1353_v21  ;;  %2239 = vmatpush.bf16.msrb.mxu3 %v6727_v45 }
 0x18f   : > { %v1323_v49 = vpop.f32.mrf.mxu0 }
 0x190   : > { %v1324_v52 = vadd.f32 %v7074_v20, %v1323_v49  ;;  %v1450_v49 = vmax.f32 %v1354_v47, 0.0 }
 0x192   : > { %v1438_v56 = vmax.f32 %v1324_v52, 0.0  ;;  %v1360_v36 = vpop.f32.mrf.mxu3  ;;  %v1510_v52 = vpack.c.bf16 %v1451_v50, %v1450_v49 }
 0x193   : > { %v1361_v54 = vadd.f32 %v7074_v20, %v1360_v36 }
 0x197   : > { %v1325_v53 = vpop.f32.mrf.mxu0 }
 0x198   : > { %v1326_v55 = vadd.f32 %v7074_v20, %v1325_v53  ;;  %v1359_v53 = vadd.f32 %v7074_v20, %v1358_v31 }
 0x19a   : > { %v1439_v57 = vmax.f32 %v1326_v55, 0.0 }
 0x19c   : > { %v1504_v59 = vpack.c.bf16 %v1439_v57, %v1438_v56  ;;  %v1363_v40 = vpop.f32.mrf.mxu3  ;;  %v1452_v56 = vmax.f32 %v1359_v53, 0.0  ;;  %v1453_v57 = vmax.f32 %v1361_v54, 0.0 }
 0x19d   : > { %6074 = vmatmul.msk.bf16.gmra.mxu3 %vm1138_vm1, %v6672_v37  ;;  %v1364_v62 = vadd.f32 %v7074_v20, %v1363_v40 }
 0x19e   : > { %1655 = vmatmul.bf16.gmra.mxu1 %v1504_v59  ;;  %v1511_v59 = vpack.c.bf16 %v1453_v57, %v1452_v56 }
 0x19f   : > { %v1328_v60 = vpop.f32.mrf.mxu0 }
 0x1a0   : > { %v1329_v63 = vadd.f32 %v7074_v20, %v1328_v60  ;;  %v6716_v60 = vld [vmem:[%s9375_s8 + $0x18] sm:$0xff] }
 0x1a1   : > { %1909 = vmatpush.bf16.msrb.mxu2 %v6716_v60 }
 0x1a2   : > { %v1440_v3 = vmax.f32 %v1329_v63, 0.0 }
 0x1a4   : > { %v1365_v46 = vpop.f32.mrf.mxu3 }
 0x1a5   : > { %v1366_v63 = vadd.f32 %v7074_v20, %v1365_v46  ;;  %1910 = vmatpush.bf16.msrb.mxu2 %v6715_v12 }
 0x1a7   : > { %v1330_v0 = vpop.f32.mrf.mxu0  ;;  %v1455_v1 = vmax.f32 %v1366_v63, 0.0 }
 0x1a8   : > { %v1331_v2 = vadd.f32 %v7074_v20, %v1330_v0  ;;  %v1454_v0 = vmax.f32 %v1364_v62, 0.0 }
 0x1aa   : > { %v1441_v4 = vmax.f32 %v1331_v2, 0.0 }
 0x1ac   : > { %v1505_v5 = vpack.c.bf16 %v1441_v4, %v1440_v3  ;;  %v1512_v3 = vpack.c.bf16 %v1455_v1, %v1454_v0 }
 0x1ae   : > { %1660 = vmatmul.bf16.vlgmr.msra.gmra.mxu2 %v1505_v5 }
 0x1b0   : > { %v1368_v51 = vpop.f32.mrf.mxu3 }
 0x1b1   : > { %v1369_v5 = vadd.f32 %v7074_v20, %v1368_v51 }
 0x1b3   : > { %v1456_v7 = vmax.f32 %v1369_v5, 0.0 }
 0x1b8   : > { %v1370_v55 = vpop.f32.mrf.mxu3 }
 0x1b9   : > { %v1371_v6 = vadd.f32 %v7074_v20, %v1370_v55 }
 0x1bb   : > { %v1457_v8 = vmax.f32 %v1371_v6, 0.0 }
 0x1bd   : > { %v1513_v10 = vpack.c.bf16 %v1457_v8, %v1456_v7  ;;  %v2804_v7 = vld [vmem:[%s9326_s12] sm:$0xf] }
 0x1be   : > { %1665 = vmatmul.bf16.gmra.mxu2 %v1506_v15  ;;  %v3072_v12 = vsel %vm1235_vm0, %v2804_v7, 0 }
 0x1c0   : > { %v1373_v61 = vpop.f32.mrf.mxu3 }
 0x1c1   : > { %v1374_v14 = vadd.f32 %v7074_v20, %v1373_v61 }
 0x1c3   : > { %v1458_v18 = vmax.f32 %v1374_v14, 0.0  ;;  %v6726_v14 = vld [vmem:[%s9376_s29 + $0x28] sm:$0xff] }
 0x1c4   : > { %2240 = vmatpush.bf16.msrb.mxu3 %v6726_v14 }
 0x1c8   : > { %v1375_v2 = vpop.f32.mrf.mxu3 }
 0x1c9   : > { %v1376_v15 = vadd.f32 %v7074_v20, %v1375_v2 }
 0x1cb   : > { %v1459_v19 = vmax.f32 %v1376_v15, 0.0 }
 0x1cd   : > { %v1514_v27 = vpack.c.bf16 %v1459_v19, %v1458_v18 }
 0x1ce   : > { %1670 = vmatmul.bf16.gmra.mxu2 %v1507_v24 }
 0x1d0   : > { %v1378_v4 = vpop.f32.mrf.mxu3 }
 0x1d1   : > { %v1379_v31 = vadd.f32 %v7074_v20, %v1378_v4 }
 0x1d3   : > { %v1460_v34 = vmax.f32 %v1379_v31, 0.0 }
 0x1d8   : > { %v1380_v11 = vpop.f32.mrf.mxu3 }
 0x1d9   : > { %v1381_v33 = vadd.f32 %v7074_v20, %v1380_v11 }
 0x1de   : > { %1675 = vmatmul.bf16.gmra.mxu2 %v1508_v35  ;;  %v1461_v35 = vmax.f32 %v1381_v33, 0.0 }
 0x1e0   : > { %v1383_v17 = vpop.f32.mrf.mxu3  ;;  %v1515_v43 = vpack.c.bf16 %v1461_v35, %v1460_v34 }
 0x1e1   : > { %v1384_v48 = vadd.f32 %v7074_v20, %v1383_v17 }
 0x1e3   : > { %v1462_v51 = vmax.f32 %v1384_v48, 0.0  ;;  %v6725_v48 = vld [vmem:[%s9376_s29 + $0x20] sm:$0xff] }
 0x1e4   : > { %2241 = vmatpush.bf16.msrb.mxu3 %v6725_v48 }
 0x1e8   : > { %v1385_v30 = vpop.f32.mrf.mxu3 }
 0x1e9   : > { %v1386_v49 = vadd.f32 %v7074_v20, %v1385_v30 }
 0x1ee   : > { %1680 = vmatmul.bf16.gmra.mxu2 %v1509_v44  ;;  %v6714_v44 = vld [vmem:[%s9375_s8 + $0x8] sm:$0xff] }
 0x1ef   : > { %1911 = vmatpush.bf16.msrb.mxu2 %v6714_v44 }
 0x1f0   : > { %v1388_v39 = vpop.f32.mrf.mxu3 }
 0x1f1   : > { %v1389_v63 = vadd.f32 %v7074_v20, %v1388_v39 }
 0x1f3   : > { %v1464_v1 = vmax.f32 %v1389_v63, 0.0 }
 0x1f8   : > { %v1390_v50 = vpop.f32.mrf.mxu3 }
 0x1f9   : > { %v1391_v0 = vadd.f32 %v7074_v20, %v1390_v50 }
 0x1fb   : > { %v1465_v2 = vmax.f32 %v1391_v0, 0.0 }
 0x1fd   : > { %v1517_v11 = vpack.c.bf16 %v1465_v2, %v1464_v1  ;;  %v6736_v2 = vld [vmem:[%s9377_s6 + $0x38] sm:$0xff] }
 0x1fe   : > { %1685 = vmatmul.bf16.gmra.mxu2 %v1510_v52  ;;  %v1463_v52 = vmax.f32 %v1386_v49, 0.0  ;;  %2571 = vmatpush.bf16.msrb.mxu0 %v6736_v2 }
 0x200   : > { %v1393_v61 = vpop.f32.mrf.mxu3 }
 0x201   : > { %v1394_v18 = vadd.f32 %v7074_v20, %v1393_v61 }
 0x208   : > { %v1395_v5 = vpop.f32.mrf.mxu3 }
 0x209   : > { %v1396_v19 = vadd.f32 %v7074_v20, %v1395_v5  ;;  %v1601_v5 = vpop.f32.mrf.mxu1 }
 0x20a   : > { %v1602_v48 = vadd.f32 %v7120_v32, %v1601_v5 }
 0x20e   : > { %1690 = vmatmul.bf16.gmra.mxu2 %v1511_v59  ;;  %v1516_v59 = vpack.c.bf16 %v1463_v52, %v1462_v51 }
 0x210   : > { %v1398_v17 = vpop.f32.mrf.mxu3 }
 0x211   : > { %v1399_v35 = vadd.f32 %v7074_v20, %v1398_v17 }
 0x218   : > { %v1400_v31 = vpop.f32.mrf.mxu3 }
 0x21e   : > { %1695 = vmatmul.bf16.gmra.mxu2 %v1512_v3 }
 0x22e   : > { %1700 = vmatmul.bf16.gmra.mxu2 %v1513_v10 }
 0x231   : > { %v1661_v13 = vpop.f32.mrf.mxu2 }
 0x232   : > { %v1662_v21 = vadd.f32 %v7120_v32, %v1661_v13  ;;  %v6713_v13 = vld [vmem:[%s9375_s8] sm:$0xff] }
 0x233   : > { %1912 = vmatpush.bf16.msrb.mxu2 %v6713_v13 }
 0x234   : > { %v1773_v24 = vmax.f32 %v1662_v21, 0.0  ;;  %v1466_v21 = vmax.f32 %v1394_v18, 0.0 }
 0x237   : > { %3081 = vmatpush.bf16.msra.mxu2 %v3072_v12  ;;  %v1603_v12 = vpop.f32.mrf.mxu1 }
 0x239   : > { %v1663_v22 = vpop.f32.mrf.mxu2 }
 0x23a   : > { %v1664_v23 = vadd.f32 %v7120_v32, %v1663_v22  ;;  %v1467_v22 = vmax.f32 %v1396_v19, 0.0 }
 0x23c   : > { %v1774_v26 = vmax.f32 %v1664_v23, 0.0  ;;  %v1518_v30 = vpack.c.bf16 %v1467_v22, %v1466_v21 }
 0x23e   : > { %1705 = vmatmul.bf16.gmra.mxu2 %v1514_v27  ;;  %v7219_v28 = vpack.c.bf16 %v1774_v26, %v1773_v24 }
 0x23f   : > { %v1606_v21 = vpop.f32.mrf.mxu1 }
 0x241   : > { %v1666_v29 = vpop.f32.mrf.mxu2 }
 0x242   : > { %v1667_v36 = vadd.f32 %v7120_v32, %v1666_v29 }
 0x244   : > { %v1775_v40 = vmax.f32 %v1667_v36, 0.0  ;;  %v1401_v36 = vadd.f32 %v7074_v20, %v1400_v31 }
 0x246   : > { %v1469_v39 = vmax.f32 %v1401_v36, 0.0 }
 0x249   : > { %v1668_v37 = vpop.f32.mrf.mxu2 }
 0x24a   : > { %v1669_v38 = vadd.f32 %v7120_v32, %v1668_v37  ;;  %v1403_v37 = vpop.f32.mrf.mxu3 }
 0x24b   : > { %v1404_v52 = vadd.f32 %v7074_v20, %v1403_v37 }
 0x24c   : > { %v1776_v41 = vmax.f32 %v1669_v38, 0.0  ;;  %v1468_v38 = vmax.f32 %v1399_v35, 0.0 }
 0x24e   : > { %1710 = vmatmul.bf16.gmra.mxu2 %v1515_v43  ;;  %v7231_v46 = vpack.c.bf16 %v1776_v41, %v1775_v40 }
 0x251   : > { %v1671_v47 = vpop.f32.mrf.mxu2 }
 0x252   : > { %v1672_v53 = vadd.f32 %v7120_v32, %v1671_v47  ;;  %v1519_v47 = vpack.c.bf16 %v1469_v39, %v1468_v38  ;;  %v1405_v50 = vpop.f32.mrf.mxu3 }
 0x254   : > { %v1777_v56 = vmax.f32 %v1672_v53, 0.0  ;;  %v1406_v53 = vadd.f32 %v7074_v20, %v1405_v50 }
 0x259   : > { %v1673_v54 = vpop.f32.mrf.mxu2 }
 0x25a   : > { %v1674_v55 = vadd.f32 %v7120_v32, %v1673_v54  ;;  %v1470_v54 = vmax.f32 %v1404_v52, 0.0 }
 0x25c   : > { %v1778_v57 = vmax.f32 %v1674_v55, 0.0  ;;  %v1471_v55 = vmax.f32 %v1406_v53, 0.0  ;;  %v1749_v53 = vmax.f32 %v1602_v48, 0.0 }
 0x25e   : > { %1715 = vmatmul.bf16.gmra.mxu2 %v1516_v59  ;;  %v7237_v60 = vpack.c.bf16 %v1778_v57, %v1777_v56  ;;  %v1520_v63 = vpack.c.bf16 %v1471_v55, %v1470_v54 }
 0x261   : > { %v1676_v62 = vpop.f32.mrf.mxu2 }
 0x262   : > { %v1677_v3 = vadd.f32 %v7120_v32, %v1676_v62 }
 0x264   : > { %v1779_v8 = vmax.f32 %v1677_v3, 0.0 }
 0x269   : > { %v1678_v4 = vpop.f32.mrf.mxu2 }
 0x26a   : > { %v1679_v6 = vadd.f32 %v7120_v32, %v1678_v4 }
 0x26c   : > { %v1780_v10 = vmax.f32 %v1679_v6, 0.0 }
 0x26e   : > { %1720 = vmatmul.bf16.gmra.mxu2 %v1517_v11  ;;  %v7253_v15 = vpack.c.bf16 %v1780_v10, %v1779_v8  ;;  %v6724_v8 = vld [vmem:[%s9376_s29 + $0x18] sm:$0xff] }
 0x26f   : > { %2242 = vmatpush.bf16.msrb.mxu3 %v6724_v8 }
 0x271   : > { %v1681_v16 = vpop.f32.mrf.mxu2 }
 0x272   : > { %v1682_v23 = vadd.f32 %v7120_v32, %v1681_v16 }
 0x274   : > { %v1781_v27 = vmax.f32 %v1682_v23, 0.0  ;;  %v6723_v23 = vld [vmem:[%s9376_s29 + $0x10] sm:$0xff] }
 0x275   : > { %2243 = vmatpush.bf16.msrb.mxu3 %v6723_v23 }
 0x279   : > { %v1683_v24 = vpop.f32.mrf.mxu2 }
 0x27a   : > { %v1684_v26 = vadd.f32 %v7120_v32, %v1683_v24 }
 0x27c   : > { %v1782_v29 = vmax.f32 %v1684_v26, 0.0  ;;  %v1608_v26 = vpop.f32.mrf.mxu1 }
 0x27e   : > { %1725 = vmatmul.bf16.gmra.mxu2 %v1518_v30  ;;  %v7259_v33 = vpack.c.bf16 %v1782_v29, %v1781_v27 }
 0x281   : > { %v1686_v34 = vpop.f32.mrf.mxu2 }
 0x282   : > { %v1687_v40 = vadd.f32 %v7120_v32, %v1686_v34 }
 0x284   : > { %v1783_v44 = vmax.f32 %v1687_v40, 0.0  ;;  %v1611_v35 = vpop.f32.mrf.mxu1 }
 0x289   : > { %v1688_v41 = vpop.f32.mrf.mxu2 }
 0x28a   : > { %v1689_v43 = vadd.f32 %v7120_v32, %v1688_v41 }
 0x28c   : > { %v1784_v45 = vmax.f32 %v1689_v43, 0.0  ;;  %v1613_v41 = vpop.f32.mrf.mxu1 }
 0x28e   : > { %1730 = vmatmul.bf16.gmra.mxu2 %v1519_v47  ;;  %v7268_v49 = vpack.c.bf16 %v1784_v45, %v1783_v44  ;;  %v1604_v45 = vadd.f32 %v7120_v32, %v1603_v12  ;;  %v6734_v47 = vld [vmem:[%s9377_s6 + $0x28] sm:$0xff] }
 0x291   : > { %v1691_v51 = vpop.f32.mrf.mxu2 }
 0x292   : > { %v1692_v56 = vadd.f32 %v7120_v32, %v1691_v51  ;;  %v1750_v51 = vmax.f32 %v1604_v45, 0.0 }
 0x294   : > { %v1785_v61 = vmax.f32 %v1692_v56, 0.0  ;;  %v1616_v50 = vpop.f32.mrf.mxu1 }
 0x299   : > { %v1693_v57 = vpop.f32.mrf.mxu2 }
 0x29a   : > { %v1694_v59 = vadd.f32 %v7120_v32, %v1693_v57  ;;  %v1826_v57 = vpack.c.bf16 %v1750_v51, %v1749_v53 }
 0x29c   : > { %v1786_v62 = vmax.f32 %v1694_v59, 0.0 }
 0x29e   : > { %1735 = vmatmul.bf16.gmra.mxu2 %v1520_v63  ;;  %v7274_v0 = vpack.c.bf16 %v1786_v62, %v1785_v61  ;;  %v1618_v61 = vpop.f32.mrf.mxu1  ;;  %v1609_v63 = vadd.f32 %v7120_v32, %v1608_v26 }
 0x2a0   : > { %v1752_v2 = vmax.f32 %v1609_v63, 0.0 }
 0x2a1   : > { %v1696_v1 = vpop.f32.mrf.mxu2 }
 0x2a2   : > { %v1697_v20 = vadd.f32 %v7120_v32, %v1696_v1  ;;  %v1607_v1 = vadd.f32 %v7120_v32, %v1606_v21 }
 0x2a4   : > { %v1787_v6 = vmax.f32 %v1697_v20, 0.0 }
 0x2a9   : > { %v1698_v3 = vpop.f32.mrf.mxu2 }
 0x2aa   : > { %v1699_v4 = vadd.f32 %v7120_v32, %v1698_v3 }
 0x2ac   : > { %v1788_v7 = vmax.f32 %v1699_v4, 0.0  ;;  %v1751_v4 = vmax.f32 %v1607_v1, 0.0 }
 0x2ae   : > { %1913 = vmatmul.bf16.vlgmr.msrb.gmra.mxu2 %v7127_v42  ;;  %v7285_v10 = vpack.c.bf16 %v1788_v7, %v1787_v6  ;;  %v6735_v42 = vld [vmem:[%s9377_s6 + $0x30] sm:$0xff]  ;;  %v1621_v6 = vpop.f32.mrf.mxu1 }
 0x2af   : > { %2572 = vmatpush.bf16.msrb.mxu0 %v6735_v42 }
 0x2b1   : > { %v1701_v11 = vpop.f32.mrf.mxu2 }
 0x2b2   : > { %v1702_v13 = vadd.f32 %v7120_v32, %v1701_v11  ;;  %v1827_v11 = vpack.c.bf16 %v1752_v2, %v1751_v4 }
 0x2b3   : > { %2573 = vmatpush.bf16.msrb.mxu0 %v6734_v47 }
 0x2b4   : > { %v1789_v17 = vmax.f32 %v1702_v13, 0.0 }
 0x2b9   : > { %v1703_v14 = vpop.f32.mrf.mxu2 }
 0x2ba   : > { %v1704_v16 = vadd.f32 %v7120_v32, %v1703_v14  ;;  %v1614_v14 = vadd.f32 %v7120_v32, %v1613_v41 }
 0x2bc   : > { %v1790_v18 = vmax.f32 %v1704_v16, 0.0  ;;  %v6721_v16 = vld [vmem:[%s9376_s29] sm:$0xff]  ;;  %v1754_v21 = vmax.f32 %v1614_v14, 0.0 }
 0x2be   : > { %1918 = vmatmul.bf16.gmra.mxu2 %v7136_v58  ;;  %v7290_v19 = vpack.c.bf16 %v1790_v18, %v1789_v17  ;;  %v1623_v17 = vpop.f32.mrf.mxu1  ;;  %v1612_v18 = vadd.f32 %v7120_v32, %v1611_v35 }
 0x2bf   : > { %v1624_v53 = vadd.f32 %v7120_v32, %v1623_v17 }
 0x2c0   : > { %v1753_v23 = vmax.f32 %v1612_v18, 0.0 }
 0x2c1   : > { %v1706_v22 = vpop.f32.mrf.mxu2 }
 0x2c2   : > { %v1707_v24 = vadd.f32 %v7120_v32, %v1706_v22 }
 0x2c4   : > { %v1791_v29 = vmax.f32 %v1707_v24, 0.0 }
 0x2c9   : > { %v1708_v27 = vpop.f32.mrf.mxu2 }
 0x2ca   : > { %v1709_v58 = vadd.f32 %v7120_v32, %v1708_v27 }
 0x2cc   : > { %v1792_v30 = vmax.f32 %v1709_v58, 0.0  ;;  %v1828_v58 = vpack.c.bf16 %v1754_v21, %v1753_v23 }
 0x2ce   : > { %1923 = vmatmul.bf16.gmra.mxu2 %v7144_v9  ;;  %v7301_v31 = vpack.c.bf16 %v1792_v30, %v1791_v29  ;;  %v6722_v9 = vld [vmem:[%s9376_s29 + $0x8] sm:$0xff]  ;;  %v6733_v29 = vld [vmem:[%s9377_s6 + $0x20] sm:$0xff] }
 0x2cf   : > { %2244 = vmatpush.bf16.msrb.mxu3 %v6722_v9  ;;  %2574 = vmatpush.bf16.msrb.mxu0 %v6733_v29 }
 0x2d1   : > { %v1711_v34 = vpop.f32.mrf.mxu2 }
 0x2d2   : > { %v1712_v36 = vadd.f32 %v7120_v32, %v1711_v34  ;;  %v1626_v34 = vpop.f32.mrf.mxu1 }
 0x2d3   : > { %2245 = vmatpush.bf16.msrb.mxu3 %v6721_v16 }
 0x2d4   : > { %v1793_v39 = vmax.f32 %v1712_v36, 0.0  ;;  %v1619_v36 = vadd.f32 %v7120_v32, %v1618_v61 }
 0x2d9   : > { %v1713_v37 = vpop.f32.mrf.mxu2 }
 0x2da   : > { %v1714_v38 = vadd.f32 %v7120_v32, %v1713_v37  ;;  %v1617_v37 = vadd.f32 %v7120_v32, %v1616_v50  ;;  %v6752_v50 = vld [vmem:[%s9329_s15 + $0x38] sm:$0xff] }
 0x2db   : > { %3474 = vmatpush.bf16.msra.mxu3 %v6752_v50 }
 0x2dc   : > { %v1794_v40 = vmax.f32 %v1714_v38, 0.0  ;;  %v1756_v38 = vmax.f32 %v1619_v36, 0.0 }
 0x2de   : > { %1928 = vmatmul.bf16.gmra.mxu2 %v7152_v25  ;;  %v7306_v43 = vpack.c.bf16 %v1794_v40, %v1793_v39  ;;  %v1628_v40 = vpop.f32.mrf.mxu1 }
 0x2e1   : > { %v1716_v44 = vpop.f32.mrf.mxu2 }
 0x2e2   : > { %v1717_v25 = vadd.f32 %v7120_v32, %v1716_v44  ;;  %v1755_v44 = vmax.f32 %v1617_v37, 0.0 }
 0x2e4   : > { %v1795_v55 = vmax.f32 %v1717_v25, 0.0  ;;  %v1829_v48 = vpack.c.bf16 %v1756_v38, %v1755_v44 }
 0x2e9   : > { %v1718_v52 = vpop.f32.mrf.mxu2 }
 0x2ea   : > { %v1719_v54 = vadd.f32 %v7120_v32, %v1718_v52  ;;  %v1631_v52 = vpop.f32.mrf.mxu1 }
 0x2eb   : > { %v1632_v29 = vadd.f32 %v7120_v32, %v1631_v52 }
 0x2ec   : > { %v1796_v56 = vmax.f32 %v1719_v54, 0.0  ;;  %v1622_v54 = vadd.f32 %v7120_v32, %v1621_v6  ;;  %v1629_v6 = vadd.f32 %v7120_v32, %v1628_v40 }
 0x2ed   : > { %v1761_v37 = vmax.f32 %v1632_v29, 0.0 }
 0x2ee   : > { %1933 = vmatmul.bf16.gmra.mxu2 %v1826_v57  ;;  %v7318_v59 = vpack.c.bf16 %v1796_v56, %v1795_v55  ;;  %v1758_v55 = vmax.f32 %v1624_v53, 0.0  ;;  %v1757_v61 = vmax.f32 %v1622_v54, 0.0 }
 0x2f0   : > { %v1830_v2 = vpack.c.bf16 %v1758_v55, %v1757_v61 }
 0x2f1   : > { %v1721_v62 = vpop.f32.mrf.mxu2 }
 0x2f2   : > { %v1722_v20 = vadd.f32 %v7120_v32, %v1721_v62 }
 0x2f4   : > { %v1797_v7 = vmax.f32 %v1722_v20, 0.0  ;;  %v6732_v20 = vld [vmem:[%s9377_s6 + $0x18] sm:$0xff] }
 0x2f5   : > { %2575 = vmatpush.bf16.msrb.mxu0 %v6732_v20 }
 0x2f9   : > { %v1723_v3 = vpop.f32.mrf.mxu2 }
 0x2fa   : > { %v1724_v5 = vadd.f32 %v7120_v32, %v1723_v3  ;;  %v1633_v3 = vpop.f32.mrf.mxu1 }
 0x2fc   : > { %v1798_v8 = vmax.f32 %v1724_v5, 0.0 }
 0x2fe   : > { %1938 = vmatmul.bf16.gmra.mxu2 %v1827_v11  ;;  %v7324_v12 = vpack.c.bf16 %v1798_v8, %v1797_v7  ;;  %v7360_v7 = vld [vmem:[%s9378_s30] ss:$0 sm:$0xff]  ;;  %v1627_v8 = vadd.f32 %v7120_v32, %v1626_v34 }
 0x300   : > { %v1759_v17 = vmax.f32 %v1627_v8, 0.0 }
 0x301   : > { %v1726_v13 = vpop.f32.mrf.mxu2 }
 0x302   : > { %v1727_v22 = vadd.f32 %v7120_v32, %v1726_v13  ;;  %v1636_v11 = vpop.f32.mrf.mxu1  ;;  %v1760_v13 = vmax.f32 %v1629_v6, 0.0 }
 0x303   : > { %v1637_v52 = vadd.f32 %v7120_v32, %v1636_v11 }
 0x304   : > { %v1799_v26 = vmax.f32 %v1727_v22, 0.0 }
 0x305   : > { %v1763_v55 = vmax.f32 %v1637_v52, 0.0 }
 0x309   : > { %v1728_v42 = vpop.f32.mrf.mxu2 }
 0x30a   : > { %v1729_v24 = vadd.f32 %v7120_v32, %v1728_v42  ;;  %v1831_v42 = vpack.c.bf16 %v1760_v13, %v1759_v17 }
 0x30c   : > { %v1800_v27 = vmax.f32 %v1729_v24, 0.0  ;;  %v6744_v24 = vld [vmem:[%s9327_s13 + $0x38] sm:$0xff] }
 0x30d   : > { %2902 = vmatpush.bf16.msrb.mxu1 %v6744_v24 }
 0x30e   : > { %1943 = vmatmul.bf16.gmra.mxu2 %v1828_v58  ;;  %v7336_v30 = vpack.c.bf16 %v1800_v27, %v1799_v26  ;;  %v1638_v26 = vpop.f32.mrf.mxu1  ;;  %v1634_v58 = vadd.f32 %v7120_v32, %v1633_v3 }
 0x310   : > { %v1762_v34 = vmax.f32 %v1634_v58, 0.0 }
 0x311   : > { %v1731_v35 = vpop.f32.mrf.mxu2 }
 0x312   : > { %v1732_v39 = vadd.f32 %v7120_v32, %v1731_v35  ;;  %v1832_v44 = vpack.c.bf16 %v1762_v34, %v1761_v37 }
 0x314   : > { %v1801_v9 = vmax.f32 %v1732_v39, 0.0 }
 0x316   : > { %v1641_v39 = vpop.f32.mrf.mxu1 }
 0x317   : > { %v1642_v6 = vadd.f32 %v7120_v32, %v1641_v39 }
 0x319   : > { %v1733_v41 = vpop.f32.mrf.mxu2 }
 0x31a   : > { %v1734_v45 = vadd.f32 %v7120_v32, %v1733_v41 }
 0x31c   : > { %v1802_v47 = vmax.f32 %v1734_v45, 0.0 }
 0x31e   : > { %1948 = vmatmul.bf16.gmra.mxu2 %v1829_v48  ;;  %v7342_v51 = vpack.c.bf16 %v1802_v47, %v1801_v9  ;;  %v6731_v9 = vld [vmem:[%s9377_s6 + $0x10] sm:$0xff]  ;;  %v1639_v48 = vadd.f32 %v7120_v32, %v1638_v26  ;;  %v6818_v26 = vld [vmem:[%s9374_s11] ss:$0 sm:$0xff] }
 0x31f   : > { %2576 = vmatpush.bf16.msrb.mxu0 %v6731_v9 }
 0x320   : > { %v1764_v53 = vmax.f32 %v1639_v48, 0.0 }
 0x321   : > { %v1736_v25 = vpop.f32.mrf.mxu2 }
 0x322   : > { %v1737_v56 = vadd.f32 %v7120_v32, %v1736_v25  ;;  %v1643_v25 = vpop.f32.mrf.mxu1 }
 0x323   : > { %v1644_v3 = vadd.f32 %v7120_v32, %v1643_v25 }
 0x324   : > { %v1803_v63 = vmax.f32 %v1737_v56, 0.0 }
 0x325   : > { %v1766_v8 = vmax.f32 %v1644_v3, 0.0 }
 0x329   : > { %v1738_v57 = vpop.f32.mrf.mxu2 }
 0x32a   : > { %v1739_v62 = vadd.f32 %v7120_v32, %v1738_v57 }
 0x32c   : > { %v1804_v1 = vmax.f32 %v1739_v62, 0.0  ;;  %v1833_v62 = vpack.c.bf16 %v1764_v53, %v1763_v55 }
 0x32e   : > { %1953 = vmatmul.bf16.gmra.mxu2 %v1830_v2  ;;  %v7354_v4 = vpack.c.bf16 %v1804_v1, %v1803_v63  ;;  %v1646_v1 = vpop.f32.mrf.mxu1  ;;  %v6743_v2 = vld [vmem:[%s9327_s13 + $0x30] sm:$0xff] }
 0x32f   : > { %2903 = vmatpush.bf16.msrb.mxu1 %v6743_v2  ;;  %v1647_v58 = vadd.f32 %v6818_v26, %v1646_v1 }
 0x331   : > { %v1914_v5 = vpop.f32.mrf.mxu2 }
 0x332   : > { %v1915_v14 = vadd.f32 %v7360_v7, %v1914_v5  ;;  %v6751_v5 = vld [vmem:[%s9329_s15 + $0x30] sm:$0xff] }
 0x333   : > { %3475 = vmatpush.bf16.msra.mxu3 %v6751_v5 }
 0x334   : > { %v2074_v21 = vmax.f32 %v1915_v14, 0.0 }
 0x336   : > { %v1648_v13 = vpop.f32.mrf.mxu1 }
 0x339   : > { %v1916_v16 = vpop.f32.mrf.mxu2 }
 0x33a   : > { %v1917_v18 = vadd.f32 %v7360_v7, %v1916_v16  ;;  %v1765_v16 = vmax.f32 %v1642_v6, 0.0 }
 0x33c   : > { %v2075_v22 = vmax.f32 %v1917_v18, 0.0 }
 0x33e   : > { %v2155_v23 = vpack.c.bf16 %v2075_v22, %v2074_v21  ;;  %1958 = vmatmul.bf16.gmra.mxu2 %v1831_v42  ;;  %v1834_v22 = vpack.c.bf16 %v1766_v8, %v1765_v16  ;;  %v1651_v24 = vpop.f32.mrf.mxu1 }
 0x33f   : > { %v1652_v48 = vadd.f32 %v6818_v26, %v1651_v24 }
 0x340   : > { %2246 = vmatmul.bf16.vlgmr.msrb.gmra.mxu3 %v2155_v23  ;;  %v6730_v23 = vld [vmem:[%s9377_s6 + $0x8] sm:$0xff] }
 0x341   : > { %v1919_v27 = vpop.f32.mrf.mxu2  ;;  %2577 = vmatpush.bf16.msrb.mxu0 %v6730_v23 }
 0x342   : > { %v1920_v35 = vadd.f32 %v7360_v7, %v1919_v27  ;;  %v1649_v27 = vadd.f32 %v6818_v26, %v1648_v13 }
 0x344   : > { %v2076_v40 = vmax.f32 %v1920_v35, 0.0  ;;  %v1768_v29 = vmax.f32 %v1649_v27, 0.0 }
 0x349   : > { %v1921_v36 = vpop.f32.mrf.mxu2 }
 0x34a   : > { %v1922_v38 = vadd.f32 %v7360_v7, %v1921_v36  ;;  %v1767_v36 = vmax.f32 %v1647_v58, 0.0 }
 0x34c   : > { %v2077_v41 = vmax.f32 %v1922_v38, 0.0 }
 0x34e   : > { %1963 = vmatmul.bf16.gmra.mxu2 %v1832_v44  ;;  %v2156_v45 = vpack.c.bf16 %v2077_v41, %v2076_v40  ;;  %v1835_v40 = vpack.c.bf16 %v1768_v29, %v1767_v36  ;;  %v1653_v41 = vpop.f32.mrf.mxu1 }
 0x350   : > { %2251 = vmatmul.bf16.gmra.mxu3 %v2156_v45  ;;  %v6742_v45 = vld [vmem:[%s9327_s13 + $0x28] sm:$0xff] }
 0x351   : > { %v1924_v47 = vpop.f32.mrf.mxu2  ;;  %2904 = vmatpush.bf16.msrb.mxu1 %v6742_v45  ;;  %v7428_v45 = vld [vmem:[%s9379_s0] ss:$0 sm:$0xff] }
 0x352   : > { %v1925_v50 = vadd.f32 %v7360_v7, %v1924_v47  ;;  %v1654_v47 = vadd.f32 %v6818_v26, %v1653_v41 }
 0x354   : > { %v2078_v57 = vmax.f32 %v1925_v50, 0.0  ;;  %v1770_v52 = vmax.f32 %v1654_v47, 0.0 }
 0x356   : > { %v1656_v25 = vpop.f32.mrf.mxu1 }
 0x357   : > { %v1657_v3 = vadd.f32 %v6818_v26, %v1656_v25 }
 0x359   : > { %v1926_v54 = vpop.f32.mrf.mxu2 }
 0x35a   : > { %v1927_v56 = vadd.f32 %v7360_v7, %v1926_v54  ;;  %v1769_v54 = vmax.f32 %v1652_v48, 0.0 }
 0x35c   : > { %v2079_v61 = vmax.f32 %v1927_v56, 0.0 }
 0x35e   : > { %1968 = vmatmul.bf16.gmra.mxu2 %v1833_v62  ;;  %v2157_v63 = vpack.c.bf16 %v2079_v61, %v2078_v57  ;;  %v1836_v61 = vpack.c.bf16 %v1770_v52, %v1769_v54 }
 0x360   : > { %2256 = vmatmul.bf16.gmra.mxu3 %v2157_v63  ;;  %v1658_v63 = vpop.f32.mrf.mxu1 }
 0x361   : > { %v1929_v20 = vpop.f32.mrf.mxu2  ;;  %v1659_v2 = vadd.f32 %v6818_v26, %v1658_v63 }
 0x362   : > { %v1930_v11 = vadd.f32 %v7360_v7, %v1929_v20  ;;  %v6729_v20 = vld [vmem:[%s9377_s6] sm:$0xff] }
 0x363   : > { %2578 = vmatpush.bf16.msrb.mxu0 %v6729_v20  ;;  %v1772_v5 = vmax.f32 %v1659_v2, 0.0 }
 0x364   : > { %v2080_v18 = vmax.f32 %v1930_v11, 0.0  ;;  %v1771_v11 = vmax.f32 %v1657_v3, 0.0 }
 0x369   : > { %v1931_v14 = vpop.f32.mrf.mxu2 }
 0x36a   : > { %v1932_v17 = vadd.f32 %v7360_v7, %v1931_v14 }
 0x36c   : > { %v2081_v21 = vmax.f32 %v1932_v17, 0.0  ;;  %v1837_v17 = vpack.c.bf16 %v1772_v5, %v1771_v11 }
 0x36e   : > { %1973 = vmatmul.bf16.gmra.mxu2 %v1834_v22  ;;  %v2158_v42 = vpack.c.bf16 %v2081_v21, %v2080_v18  ;;  %v6741_v21 = vld [vmem:[%s9327_s13 + $0x20] sm:$0xff] }
 0x36f   : > { %2905 = vmatpush.bf16.msrb.mxu1 %v6741_v21  ;;  %v6749_v21 = vld [vmem:[%s9329_s15 + $0x20] sm:$0xff] }
 0x370   : > { %2261 = vmatmul.bf16.gmra.mxu3 %v2158_v42  ;;  %v6750_v42 = vld [vmem:[%s9329_s15 + $0x28] sm:$0xff] }
 0x371   : > { %v1934_v32 = vpop.f32.mrf.mxu2  ;;  %3476 = vmatpush.bf16.msra.mxu3 %v6750_v42 }
 0x372   : > { %v1935_v34 = vadd.f32 %v7360_v7, %v1934_v32 }
 0x374   : > { %v2082_v38 = vmax.f32 %v1935_v34, 0.0  ;;  %v6760_v34 = vld [vmem:[%s9331_s17 + $0x38] sm:$0xff] }
 0x375   : > { %3807 = vmatpush.bf16.msra.mxu0 %v6760_v34  ;;  %3477 = vmatpush.bf16.msra.mxu3 %v6749_v21 }
 0x379   : > { %v1936_v35 = vpop.f32.mrf.mxu2 }
 0x37a   : > { %v1937_v37 = vadd.f32 %v7360_v7, %v1936_v35 }
 0x37c   : > { %v2083_v39 = vmax.f32 %v1937_v37, 0.0 }
 0x37e   : > { %1978 = vmatmul.bf16.gmra.mxu2 %v1835_v40  ;;  %v2159_v44 = vpack.c.bf16 %v2083_v39, %v2082_v38 }
 0x380   : > { %2266 = vmatmul.bf16.gmra.mxu3 %v2159_v44 }
 0x381   : > { %v1939_v9 = vpop.f32.mrf.mxu2 }
 0x382   : > { %v1940_v53 = vadd.f32 %v7360_v7, %v1939_v9 }
 0x384   : > { %v2084_v56 = vmax.f32 %v1940_v53, 0.0 }
 0x389   : > { %v1941_v50 = vpop.f32.mrf.mxu2 }
 0x38a   : > { %v1942_v55 = vadd.f32 %v7360_v7, %v1941_v50 }
 0x38c   : > { %v2085_v57 = vmax.f32 %v1942_v55, 0.0 }
 0x38e   : > { %1983 = vmatmul.bf16.gmra.mxu2 %v1836_v61  ;;  %v2160_v62 = vpack.c.bf16 %v2085_v57, %v2084_v56 }
 0x390   : > { %2271 = vmatmul.bf16.gmra.mxu3 %v2160_v62 }
 0x391   : > { %v1944_v1 = vpop.f32.mrf.mxu2 }
 0x392   : > { %v1945_v6 = vadd.f32 %v7360_v7, %v1944_v1 }
 0x394   : > { %v2086_v14 = vmax.f32 %v1945_v6, 0.0 }
 0x399   : > { %v1946_v8 = vpop.f32.mrf.mxu2 }
 0x39a   : > { %v1947_v13 = vadd.f32 %v7360_v7, %v1946_v8 }
 0x39c   : > { %v2087_v16 = vmax.f32 %v1947_v13, 0.0 }
 0x39e   : > { %1988 = vmatmul.bf16.gmra.mxu2 %v1837_v17  ;;  %v2161_v18 = vpack.c.bf16 %v2087_v16, %v2086_v14  ;;  %v6739_v16 = vld [vmem:[%s9327_s13 + $0x10] sm:$0xff] }
 0x3a0   : > { %2276 = vmatmul.bf16.gmra.mxu3 %v2161_v18 }
 0x3a1   : > { %v1949_v22 = vpop.f32.mrf.mxu2 }
 0x3a2   : > { %v1950_v23 = vadd.f32 %v7360_v7, %v1949_v22 }
 0x3a4   : > { %v2088_v26 = vmax.f32 %v1950_v23, 0.0 }
 0x3a9   : > { %v1951_v32 = vpop.f32.mrf.mxu2 }
 0x3aa   : > { %v1952_v24 = vadd.f32 %v7360_v7, %v1951_v32 }
 0x3ac   : > { %v2089_v27 = vmax.f32 %v1952_v24, 0.0 }
 0x3ae   : > { %1993 = vmatmul.bf16.gmra.mxu2 %v7219_v28  ;;  %v2162_v58 = vpack.c.bf16 %v2089_v27, %v2088_v26  ;;  %v6740_v28 = vld [vmem:[%s9327_s13 + $0x18] sm:$0xff] }
 0x3af   : > { %2906 = vmatpush.bf16.msrb.mxu1 %v6740_v28 }
 0x3b0   : > { %2281 = vmatmul.bf16.gmra.mxu3 %v2162_v58 }
 0x3b1   : > { %v1954_v29 = vpop.f32.mrf.mxu2 }
 0x3b2   : > { %v1955_v35 = vadd.f32 %v7360_v7, %v1954_v29 }
 0x3b3   : > { %2907 = vmatpush.bf16.msrb.mxu1 %v6739_v16 }
 0x3b4   : > { %v2090_v38 = vmax.f32 %v1955_v35, 0.0 }
 0x3b9   : > { %v1956_v36 = vpop.f32.mrf.mxu2 }
 0x3ba   : > { %v1957_v37 = vadd.f32 %v7360_v7, %v1956_v36 }
 0x3bc   : > { %v2091_v39 = vmax.f32 %v1957_v37, 0.0 }
 0x3be   : > { %1998 = vmatmul.bf16.gmra.mxu2 %v7231_v46  ;;  %v2163_v40 = vpack.c.bf16 %v2091_v39, %v2090_v38  ;;  %v6759_v38 = vld [vmem:[%s9331_s17 + $0x30] sm:$0xff] }
 0x3bf   : > { %3808 = vmatpush.bf16.msra.mxu0 %v6759_v38 }
 0x3c0   : > { %2286 = vmatmul.bf16.gmra.mxu3 %v2163_v40 }
 0x3c1   : > { %v1959_v41 = vpop.f32.mrf.mxu2 }
 0x3c2   : > { %v1960_v9 = vadd.f32 %v7360_v7, %v1959_v41 }
 0x3c3   : > { %v2247_v44 = vpop.f32.mrf.mxu3 }
 0x3c4   : > { %v2248_v48 = vadd.f32 %v7428_v45, %v2247_v44  ;;  %v2092_v52 = vmax.f32 %v1960_v9, 0.0 }
 0x3c6   : > { %v2407_v54 = vmax.f32 %v2248_v48, 0.0 }
 0x3c9   : > { %v1961_v47 = vpop.f32.mrf.mxu2 }
 0x3ca   : > { %v1962_v46 = vadd.f32 %v7360_v7, %v1961_v47 }
 0x3cb   : > { %v2249_v25 = vpop.f32.mrf.mxu3 }
 0x3cc   : > { %v2093_v53 = vmax.f32 %v1962_v46, 0.0  ;;  %v2250_v50 = vadd.f32 %v7428_v45, %v2249_v25 }
 0x3ce   : > { %v2408_v55 = vmax.f32 %v2250_v50, 0.0  ;;  %2003 = vmatmul.bf16.gmra.mxu2 %v7237_v60  ;;  %v2164_v56 = vpack.c.bf16 %v2093_v53, %v2092_v52  ;;  %v6738_v53 = vld [vmem:[%s9327_s13 + $0x8] sm:$0xff] }
 0x3cf   : > { %2908 = vmatpush.bf16.msrb.mxu1 %v6738_v53 }
 0x3d0   : > { %v2488_v57 = vpack.c.bf16 %v2408_v55, %v2407_v54  ;;  %2291 = vmatmul.bf16.gmra.mxu3 %v2164_v56 }
 0x3d1   : > { %v1964_v61 = vpop.f32.mrf.mxu2 }
 0x3d2   : > { %2579 = vmatmul.bf16.vlgmr.msrb.gmra.mxu0 %v2488_v57  ;;  %v1965_v63 = vadd.f32 %v7360_v7, %v1964_v61 }
 0x3d3   : > { %v2252_v62 = vpop.f32.mrf.mxu3 }
 0x3d4   : > { %v2253_v2 = vadd.f32 %v7428_v45, %v2252_v62  ;;  %v2094_v5 = vmax.f32 %v1965_v63, 0.0 }
 0x3d6   : > { %v2409_v11 = vmax.f32 %v2253_v2, 0.0 }
 0x3d9   : > { %v1966_v1 = vpop.f32.mrf.mxu2 }
 0x3da   : > { %v1967_v20 = vadd.f32 %v7360_v7, %v1966_v1 }
 0x3db   : > { %v2254_v3 = vpop.f32.mrf.mxu3 }
 0x3dc   : > { %v2095_v6 = vmax.f32 %v1967_v20, 0.0  ;;  %v2255_v8 = vadd.f32 %v7428_v45, %v2254_v3 }
 0x3de   : > { %v2410_v60 = vmax.f32 %v2255_v8, 0.0  ;;  %2008 = vmatmul.bf16.gmra.mxu2 %v7253_v15  ;;  %v2165_v13 = vpack.c.bf16 %v2095_v6, %v2094_v5 }
 0x3e0   : > { %2296 = vmatmul.bf16.gmra.mxu3 %v2165_v13  ;;  %v2489_v14 = vpack.c.bf16 %v2410_v60, %v2409_v11 }
 0x3e1   : > { %v1969_v17 = vpop.f32.mrf.mxu2 }
 0x3e2   : > { %2584 = vmatmul.bf16.gmra.mxu0 %v2489_v14  ;;  %v1970_v22 = vadd.f32 %v7360_v7, %v1969_v17 }
 0x3e3   : > { %v2257_v18 = vpop.f32.mrf.mxu3 }
 0x3e4   : > { %v2258_v15 = vadd.f32 %v7428_v45, %v2257_v18  ;;  %v2096_v24 = vmax.f32 %v1970_v22, 0.0 }
 0x3e6   : > { %v2411_v58 = vmax.f32 %v2258_v15, 0.0 }
 0x3e9   : > { %v1971_v42 = vpop.f32.mrf.mxu2 }
 0x3ea   : > { %v1972_v23 = vadd.f32 %v7360_v7, %v1971_v42 }
 0x3eb   : > { %v2259_v32 = vpop.f32.mrf.mxu3 }
 0x3ec   : > { %v2097_v26 = vmax.f32 %v1972_v23, 0.0  ;;  %v2260_v27 = vadd.f32 %v7428_v45, %v2259_v32  ;;  %v6737_v23 = vld [vmem:[%s9327_s13] sm:$0xff] }
 0x3ed   : > { %2909 = vmatpush.bf16.msrb.mxu1 %v6737_v23 }
 0x3ee   : > { %v2412_v29 = vmax.f32 %v2260_v27, 0.0  ;;  %2013 = vmatmul.bf16.gmra.mxu2 %v7259_v33  ;;  %v2166_v34 = vpack.c.bf16 %v2097_v26, %v2096_v24  ;;  %v6748_v26 = vld [vmem:[%s9329_s15 + $0x18] sm:$0xff] }
 0x3ef   : > { %3478 = vmatpush.bf16.msra.mxu3 %v6748_v26 }
 0x3f0   : > { %2301 = vmatmul.bf16.gmra.mxu3 %v2166_v34  ;;  %v2490_v35 = vpack.c.bf16 %v2412_v29, %v2411_v58 }
 0x3f1   : > { %v1974_v36 = vpop.f32.mrf.mxu2 }
 0x3f2   : > { %2589 = vmatmul.bf16.gmra.mxu0 %v2490_v35  ;;  %v1975_v39 = vadd.f32 %v7360_v7, %v1974_v36 }
 0x3f3   : > { %v2262_v37 = vpop.f32.mrf.mxu3 }
 0x3f4   : > { %v2263_v28 = vadd.f32 %v7428_v45, %v2262_v37  ;;  %v2098_v33 = vmax.f32 %v1975_v39, 0.0 }
 0x3f6   : > { %v2413_v48 = vmax.f32 %v2263_v28, 0.0 }
 0x3f9   : > { %v1976_v40 = vpop.f32.mrf.mxu2 }
 0x3fa   : > { %v1977_v41 = vadd.f32 %v7360_v7, %v1976_v40 }
 0x3fb   : > { %v2264_v44 = vpop.f32.mrf.mxu3 }
 0x3fc   : > { %v2099_v9 = vmax.f32 %v1977_v41, 0.0  ;;  %v2265_v47 = vadd.f32 %v7428_v45, %v2264_v44 }
 0x3fe   : > { %v2414_v46 = vmax.f32 %v2265_v47, 0.0  ;;  %2018 = vmatmul.bf16.gmra.mxu2 %v7268_v49  ;;  %v2167_v25 = vpack.c.bf16 %v2099_v9, %v2098_v33  ;;  %v6758_v33 = vld [vmem:[%s9331_s17 + $0x28] sm:$0xff] }
 0x3ff   : > { %3809 = vmatpush.bf16.msra.mxu0 %v6758_v33 }
 0x400   : > { %2306 = vmatmul.bf16.gmra.mxu3 %v2167_v25  ;;  %v2491_v52 = vpack.c.bf16 %v2414_v46, %v2413_v48 }
 0x401   : > { %v1979_v50 = vpop.f32.mrf.mxu2 }
 0x402   : > { %2594 = vmatmul.bf16.gmra.mxu0 %v2491_v52  ;;  %v1980_v55 = vadd.f32 %v7360_v7, %v1979_v50 }
 0x403   : > { %v2267_v54 = vpop.f32.mrf.mxu3 }
 0x404   : > { %v2268_v57 = vadd.f32 %v7428_v45, %v2267_v54  ;;  %v2100_v49 = vmax.f32 %v1980_v55, 0.0 }
 0x406   : > { %v2415_v2 = vmax.f32 %v2268_v57, 0.0 }
 0x409   : > { %v1981_v56 = vpop.f32.mrf.mxu2 }
 0x40a   : > { %v1982_v61 = vadd.f32 %v7360_v7, %v1981_v56 }
 0x40b   : > { %v2269_v62 = vpop.f32.mrf.mxu3 }
 0x40c   : > { %v2101_v63 = vmax.f32 %v1982_v61, 0.0  ;;  %v2270_v1 = vadd.f32 %v7428_v45, %v2269_v62  ;;  %v6768_v61 = vld [vmem:[%s9333_s19 + $0x38] sm:$0xff] }
 0x40d   : > { %4140 = vmatpush.bf16.msra.mxu1 %v6768_v61 }
 0x40e   : > { %v2416_v20 = vmax.f32 %v2270_v1, 0.0  ;;  %2023 = vmatmul.bf16.gmra.mxu2 %v7274_v0  ;;  %v2168_v3 = vpack.c.bf16 %v2101_v63, %v2100_v49 }
 0x410   : > { %2311 = vmatmul.bf16.gmra.mxu3 %v2168_v3  ;;  %v2492_v5 = vpack.c.bf16 %v2416_v20, %v2415_v2 }
 0x411   : > { %v1984_v6 = vpop.f32.mrf.mxu2 }
 0x412   : > { %2599 = vmatmul.bf16.gmra.mxu0 %v2492_v5  ;;  %v1985_v11 = vadd.f32 %v7360_v7, %v1984_v6 }
 0x413   : > { %v2272_v8 = vpop.f32.mrf.mxu3 }
 0x414   : > { %v2273_v13 = vadd.f32 %v7428_v45, %v2272_v8  ;;  %v2102_v17 = vmax.f32 %v1985_v11, 0.0 }
 0x416   : > { %v2417_v22 = vmax.f32 %v2273_v13, 0.0 }
 0x419   : > { %v1986_v60 = vpop.f32.mrf.mxu2 }
 0x41a   : > { %v1987_v14 = vadd.f32 %v7360_v7, %v1986_v60 }
 0x41b   : > { %v2274_v16 = vpop.f32.mrf.mxu3 }
 0x41c   : > { %v2103_v18 = vmax.f32 %v1987_v14, 0.0  ;;  %v2275_v21 = vadd.f32 %v7428_v45, %v2274_v16  ;;  %v7502_v16 = vld [vmem:[%s9380_s4] ss:$0 sm:$0xff] }
 0x41e   : > { %v2418_v0 = vmax.f32 %v2275_v21, 0.0  ;;  %2028 = vmatmul.bf16.gmra.mxu2 %v7285_v10  ;;  %v2169_v42 = vpack.c.bf16 %v2103_v18, %v2102_v17 }
 0x420   : > { %2316 = vmatmul.bf16.gmra.mxu3 %v2169_v42  ;;  %v2493_v15 = vpack.c.bf16 %v2418_v0, %v2417_v22 }
 0x421   : > { %v1989_v32 = vpop.f32.mrf.mxu2 }
 0x422   : > { %2604 = vmatmul.bf16.gmra.mxu0 %v2493_v15  ;;  %v1990_v27 = vadd.f32 %v7360_v7, %v1989_v32 }
 0x423   : > { %v2277_v24 = vpop.f32.mrf.mxu3 }
 0x424   : > { %v2278_v10 = vadd.f32 %v7428_v45, %v2277_v24  ;;  %v2104_v35 = vmax.f32 %v1990_v27, 0.0 }
 0x426   : > { %v2419_v38 = vmax.f32 %v2278_v10, 0.0 }
 0x429   : > { %v1991_v58 = vpop.f32.mrf.mxu2 }
 0x42a   : > { %v1992_v29 = vadd.f32 %v7360_v7, %v1991_v58 }
 0x42b   : > { %v2279_v34 = vpop.f32.mrf.mxu3 }
 0x42c   : > { %v2105_v36 = vmax.f32 %v1992_v29, 0.0  ;;  %v2280_v37 = vadd.f32 %v7428_v45, %v2279_v34 }
 0x42e   : > { %v2420_v39 = vmax.f32 %v2280_v37, 0.0  ;;  %2033 = vmatmul.bf16.gmra.mxu2 %v7290_v19  ;;  %v2170_v40 = vpack.c.bf16 %v2105_v36, %v2104_v35 }
 0x430   : > { %2321 = vmatmul.bf16.gmra.mxu3 %v2170_v40  ;;  %v2494_v28 = vpack.c.bf16 %v2420_v39, %v2419_v38  ;;  %v6747_v40 = vld [vmem:[%s9329_s15 + $0x10] sm:$0xff] }
 0x431   : > { %v1994_v41 = vpop.f32.mrf.mxu2  ;;  %3479 = vmatpush.bf16.msra.mxu3 %v6747_v40 }
 0x432   : > { %2609 = vmatmul.bf16.gmra.mxu0 %v2494_v28  ;;  %v1995_v9 = vadd.f32 %v7360_v7, %v1994_v41 }
 0x433   : > { %v2282_v44 = vpop.f32.mrf.mxu3 }
 0x434   : > { %v2283_v48 = vadd.f32 %v7428_v45, %v2282_v44  ;;  %v2106_v19 = vmax.f32 %v1995_v9, 0.0 }
 0x436   : > { %v2421_v50 = vmax.f32 %v2283_v48, 0.0 }
 0x439   : > { %v1996_v47 = vpop.f32.mrf.mxu2 }
 0x43a   : > { %v1997_v46 = vadd.f32 %v7360_v7, %v1996_v47 }
 0x43b   : > { %v2284_v25 = vpop.f32.mrf.mxu3 }
 0x43c   : > { %v2107_v52 = vmax.f32 %v1997_v46, 0.0  ;;  %v2285_v53 = vadd.f32 %v7428_v45, %v2284_v25 }
 0x43e   : > { %v2422_v54 = vmax.f32 %v2285_v53, 0.0  ;;  %2038 = vmatmul.bf16.gmra.mxu2 %v7301_v31  ;;  %v2171_v55 = vpack.c.bf16 %v2107_v52, %v2106_v19 }
 0x440   : > { %2326 = vmatmul.bf16.gmra.mxu3 %v2171_v55  ;;  %v2495_v56 = vpack.c.bf16 %v2422_v54, %v2421_v50 }
 0x441   : > { %v1999_v57 = vpop.f32.mrf.mxu2 }
 0x442   : > { %2614 = vmatmul.bf16.gmra.mxu0 %v2495_v56  ;;  %v2000_v49 = vadd.f32 %v7360_v7, %v1999_v57 }
 0x443   : > { %v2287_v62 = vpop.f32.mrf.mxu3 }
 0x444   : > { %v2288_v1 = vadd.f32 %v7428_v45, %v2287_v62  ;;  %v2108_v31 = vmax.f32 %v2000_v49, 0.0 }
 0x446   : > { %v2423_v6 = vmax.f32 %v2288_v1, 0.0  ;;  %v6757_v1 = vld [vmem:[%s9331_s17 + $0x20] sm:$0xff] }
 0x447   : > { %3810 = vmatpush.bf16.msra.mxu0 %v6757_v1 }
 0x449   : > { %v2001_v63 = vpop.f32.mrf.mxu2 }
 0x44a   : > { %v2002_v2 = vadd.f32 %v7360_v7, %v2001_v63 }
 0x44b   : > { %v2289_v20 = vpop.f32.mrf.mxu3 }
 0x44c   : > { %v2109_v3 = vmax.f32 %v2002_v2, 0.0  ;;  %v2290_v5 = vadd.f32 %v7428_v45, %v2289_v20 }
 0x44e   : > { %v2424_v8 = vmax.f32 %v2290_v5, 0.0  ;;  %2043 = vmatmul.bf16.gmra.mxu2 %v7306_v43  ;;  %v2172_v11 = vpack.c.bf16 %v2109_v3, %v2108_v31 }
 0x44f   : > { %v2580_v60 = vpop.f32.mrf.mxu0 }
 0x450   : > { %2331 = vmatmul.bf16.gmra.mxu3 %v2172_v11  ;;  %v2496_v13 = vpack.c.bf16 %v2424_v8, %v2423_v6  ;;  %v2581_v18 = vadd.f32 %v7502_v16, %v2580_v60 }
 0x451   : > { %v2004_v14 = vpop.f32.mrf.mxu2 }
 0x452   : > { %2619 = vmatmul.bf16.gmra.mxu0 %v2496_v13  ;;  %v2005_v22 = vadd.f32 %v7360_v7, %v2004_v14  ;;  %v2740_v42 = vmax.f32 %v2581_v18, 0.0 }
 0x453   : > { %v2292_v17 = vpop.f32.mrf.mxu3 }
 0x454   : > { %v2293_v15 = vadd.f32 %v7428_v45, %v2292_v17  ;;  %v2110_v26 = vmax.f32 %v2005_v22, 0.0 }
 0x456   : > { %v2425_v29 = vmax.f32 %v2293_v15, 0.0  ;;  %v6767_v15 = vld [vmem:[%s9333_s19 + $0x30] sm:$0xff] }
 0x457   : > { %v2582_v21 = vpop.f32.mrf.mxu0  ;;  %4141 = vmatpush.bf16.msra.mxu1 %v6767_v15  ;;  %v6819_v15 = vld [vmem:[%s7028_s1] sm:$0xff] }
 0x458   : > { %v2583_v0 = vadd.f32 %v7502_v16, %v2582_v21 }
 0x459   : > { %v2006_v43 = vpop.f32.mrf.mxu2 }
 0x45a   : > { %v2741_v23 = vmax.f32 %v2583_v0, 0.0  ;;  %v2007_v32 = vadd.f32 %v7360_v7, %v2006_v43 }
 0x45b   : > { %v2294_v24 = vpop.f32.mrf.mxu3 }
 0x45c   : > { %v2822_v27 = vpack.c.bf16 %v2741_v23, %v2740_v42  ;;  %v2111_v58 = vmax.f32 %v2007_v32, 0.0  ;;  %v2295_v10 = vadd.f32 %v7428_v45, %v2294_v24 }
 0x45e   : > { %v2426_v34 = vmax.f32 %v2295_v10, 0.0  ;;  %2048 = vmatmul.bf16.gmra.mxu2 %v7318_v59  ;;  %2910 = vmatmul.bf16.vlgmr.msrb.gmra.mxu1 %v2822_v27  ;;  %v2173_v35 = vpack.c.bf16 %v2111_v58, %v2110_v26 }
 0x45f   : > { %v2585_v36 = vpop.f32.mrf.mxu0 }
 0x460   : > { %2336 = vmatmul.bf16.gmra.mxu3 %v2173_v35  ;;  %v2497_v37 = vpack.c.bf16 %v2426_v34, %v2425_v29  ;;  %v2586_v28 = vadd.f32 %v7502_v16, %v2585_v36 }
 0x461   : > { %v2009_v38 = vpop.f32.mrf.mxu2 }
 0x462   : > { %2624 = vmatmul.bf16.gmra.mxu0 %v2497_v37  ;;  %v2010_v44 = vadd.f32 %v7360_v7, %v2009_v38  ;;  %v2742_v9 = vmax.f32 %v2586_v28, 0.0 }
 0x463   : > { %v2297_v39 = vpop.f32.mrf.mxu3 }
 0x464   : > { %v2298_v47 = vadd.f32 %v7428_v45, %v2297_v39  ;;  %v2112_v19 = vmax.f32 %v2010_v44, 0.0 }
 0x466   : > { %v2427_v54 = vmax.f32 %v2298_v47, 0.0 }
 0x467   : > { %v2587_v41 = vpop.f32.mrf.mxu0 }
 0x468   : > { %v2588_v59 = vadd.f32 %v7502_v16, %v2587_v41 }
 0x469   : > { %v2011_v33 = vpop.f32.mrf.mxu2 }
 0x46a   : > { %v2743_v48 = vmax.f32 %v2588_v59, 0.0  ;;  %v2012_v46 = vadd.f32 %v7360_v7, %v2011_v33 }
 0x46b   : > { %v2299_v25 = vpop.f32.mrf.mxu3 }
 0x46c   : > { %v2113_v52 = vmax.f32 %v2012_v46, 0.0  ;;  %v2300_v53 = vadd.f32 %v7428_v45, %v2299_v25  ;;  %v2823_v50 = vpack.c.bf16 %v2743_v48, %v2742_v9 }
 0x46e   : > { %v2428_v55 = vmax.f32 %v2300_v53, 0.0  ;;  %2053 = vmatmul.bf16.gmra.mxu2 %v7324_v12  ;;  %2915 = vmatmul.bf16.gmra.mxu1 %v2823_v50  ;;  %v2174_v56 = vpack.c.bf16 %v2113_v52, %v2112_v19 }
 0x46f   : > { %v2590_v57 = vpop.f32.mrf.mxu0 }
 0x470   : > { %2341 = vmatmul.bf16.gmra.mxu3 %v2174_v56  ;;  %v2498_v61 = vpack.c.bf16 %v2428_v55, %v2427_v54  ;;  %v2591_v63 = vadd.f32 %v7502_v16, %v2590_v57 }
 0x471   : > { %v2014_v62 = vpop.f32.mrf.mxu2 }
 0x472   : > { %2629 = vmatmul.bf16.gmra.mxu0 %v2498_v61  ;;  %v2015_v20 = vadd.f32 %v7360_v7, %v2014_v62  ;;  %v2744_v3 = vmax.f32 %v2591_v63, 0.0 }
 0x473   : > { %v2302_v49 = vpop.f32.mrf.mxu3 }
 0x474   : > { %v2303_v5 = vadd.f32 %v7428_v45, %v2302_v49  ;;  %v2114_v60 = vmax.f32 %v2015_v20, 0.0 }
 0x476   : > { %v2429_v18 = vmax.f32 %v2303_v5, 0.0 }
 0x477   : > { %v2592_v2 = vpop.f32.mrf.mxu0 }
 0x478   : > { %v2593_v31 = vadd.f32 %v7502_v16, %v2592_v2 }
 0x479   : > { %v2016_v12 = vpop.f32.mrf.mxu2 }
 0x47a   : > { %v2745_v6 = vmax.f32 %v2593_v31, 0.0  ;;  %v2017_v8 = vadd.f32 %v7360_v7, %v2016_v12  ;;  %v6746_v12 = vld [vmem:[%s9329_s15 + $0x8] sm:$0xff] }
 0x47b   : > { %v2304_v11 = vpop.f32.mrf.mxu3  ;;  %3480 = vmatpush.bf16.msra.mxu3 %v6746_v12 }
 0x47c   : > { %v2115_v13 = vmax.f32 %v2017_v8, 0.0  ;;  %v2305_v14 = vadd.f32 %v7428_v45, %v2304_v11  ;;  %v2824_v17 = vpack.c.bf16 %v2745_v6, %v2744_v3 }
 0x47e   : > { %v2430_v21 = vmax.f32 %v2305_v14, 0.0  ;;  %2058 = vmatmul.bf16.gmra.mxu2 %v7336_v30  ;;  %2920 = vmatmul.bf16.gmra.mxu1 %v2824_v17  ;;  %v2175_v22 = vpack.c.bf16 %v2115_v13, %v2114_v60 }
 0x47f   : > { %v2595_v0 = vpop.f32.mrf.mxu0 }
 0x480   : > { %2346 = vmatmul.bf16.gmra.mxu3 %v2175_v22  ;;  %v2499_v43 = vpack.c.bf16 %v2430_v21, %v2429_v18  ;;  %v2596_v32 = vadd.f32 %v7502_v16, %v2595_v0 }
 0x481   : > { %v2019_v42 = vpop.f32.mrf.mxu2 }
 0x482   : > { %2634 = vmatmul.bf16.gmra.mxu0 %v2499_v43  ;;  %v2020_v26 = vadd.f32 %v7360_v7, %v2019_v42  ;;  %v2746_v58 = vmax.f32 %v2596_v32, 0.0 }
 0x483   : > { %v2307_v23 = vpop.f32.mrf.mxu3 }
 0x484   : > { %v2308_v10 = vadd.f32 %v7428_v45, %v2307_v23  ;;  %v2116_v36 = vmax.f32 %v2020_v26, 0.0 }
 0x486   : > { %v2431_v40 = vmax.f32 %v2308_v10, 0.0 }
 0x487   : > { %v2597_v24 = vpop.f32.mrf.mxu0 }
 0x488   : > { %v2598_v30 = vadd.f32 %v7502_v16, %v2597_v24 }
 0x489   : > { %v2021_v27 = vpop.f32.mrf.mxu2 }
 0x48a   : > { %v2747_v29 = vmax.f32 %v2598_v30, 0.0  ;;  %v2022_v34 = vadd.f32 %v7360_v7, %v2021_v27 }
 0x48b   : > { %v2309_v35 = vpop.f32.mrf.mxu3 }
 0x48c   : > { %v2117_v37 = vmax.f32 %v2022_v34, 0.0  ;;  %v2310_v38 = vadd.f32 %v7428_v45, %v2309_v35  ;;  %v2825_v39 = vpack.c.bf16 %v2747_v29, %v2746_v58  ;;  %v6756_v58 = vld [vmem:[%s9331_s17 + $0x18] sm:$0xff] }
 0x48d   : > { %3811 = vmatpush.bf16.msra.mxu0 %v6756_v58 }
 0x48e   : > { %v2432_v28 = vmax.f32 %v2310_v38, 0.0  ;;  %2063 = vmatmul.bf16.gmra.mxu2 %v7342_v51  ;;  %2925 = vmatmul.bf16.gmra.mxu1 %v2825_v39  ;;  %v2176_v41 = vpack.c.bf16 %v2117_v37, %v2116_v36 }
 0x48f   : > { %v2600_v44 = vpop.f32.mrf.mxu0 }
 0x490   : > { %2351 = vmatmul.bf16.gmra.mxu3 %v2176_v41  ;;  %v2500_v59 = vpack.c.bf16 %v2432_v28, %v2431_v40  ;;  %v2601_v47 = vadd.f32 %v7502_v16, %v2600_v44 }
 0x491   : > { %v2024_v33 = vpop.f32.mrf.mxu2 }
 0x492   : > { %2639 = vmatmul.bf16.gmra.mxu0 %v2500_v59  ;;  %v2025_v46 = vadd.f32 %v7360_v7, %v2024_v33  ;;  %v2748_v52 = vmax.f32 %v2601_v47, 0.0  ;;  %v6820_v47 = vld [vmem:[%s7028_s1 + $0x8] sm:$0xff] }
 0x493   : > { %v2312_v9 = vpop.f32.mrf.mxu3 }
 0x494   : > { %v2313_v53 = vadd.f32 %v7428_v45, %v2312_v9  ;;  %v2118_v55 = vmax.f32 %v2025_v46, 0.0 }
 0x496   : > { %v2433_v62 = vmax.f32 %v2313_v53, 0.0 }
 0x497   : > { %v2602_v48 = vpop.f32.mrf.mxu0 }
 0x498   : > { %v2603_v25 = vadd.f32 %v7502_v16, %v2602_v48 }
 0x499   : > { %v2026_v19 = vpop.f32.mrf.mxu2 }
 0x49a   : > { %v2749_v51 = vmax.f32 %v2603_v25, 0.0  ;;  %v2027_v50 = vadd.f32 %v7360_v7, %v2026_v19 }
 0x49b   : > { %v2314_v54 = vpop.f32.mrf.mxu3 }
 0x49c   : > { %v2119_v56 = vmax.f32 %v2027_v50, 0.0  ;;  %v2315_v57 = vadd.f32 %v7428_v45, %v2314_v54  ;;  %v2826_v61 = vpack.c.bf16 %v2749_v51, %v2748_v52  ;;  %v6766_v52 = vld [vmem:[%s9333_s19 + $0x28] sm:$0xff] }
 0x49d   : > { %4142 = vmatpush.bf16.msra.mxu1 %v6766_v52 }
 0x49e   : > { %v2434_v49 = vmax.f32 %v2315_v57, 0.0  ;;  %2068 = vmatmul.bf16.gmra.mxu2 %v7354_v4  ;;  %2930 = vmatmul.bf16.gmra.mxu1 %v2826_v61  ;;  %v2177_v63 = vpack.c.bf16 %v2119_v56, %v2118_v55 }
 0x49f   : > { %v2605_v1 = vpop.f32.mrf.mxu0 }
 0x4a0   : > { %2356 = vmatmul.bf16.gmra.mxu3 %v2177_v63  ;;  %v2501_v2 = vpack.c.bf16 %v2434_v49, %v2433_v62  ;;  %v2606_v3 = vadd.f32 %v7502_v16, %v2605_v1  ;;  %v7580_v49 = vld [vmem:[%s9378_s30] ss:$0 sm:$0xff] }
 0x4a1   : > { %v2029_v20 = vpop.f32.mrf.mxu2 }
 0x4a2   : > { %2644 = vmatmul.bf16.gmra.mxu0 %v2501_v2  ;;  %v2030_v6 = vadd.f32 %v7360_v7, %v2029_v20  ;;  %v2750_v11 = vmax.f32 %v2606_v3, 0.0 }
 0x4a3   : > { %v2317_v31 = vpop.f32.mrf.mxu3 }
 0x4a4   : > { %v2318_v60 = vadd.f32 %v7428_v45, %v2317_v31  ;;  %v2120_v18 = vmax.f32 %v2030_v6, 0.0 }
 0x4a6   : > { %v2435_v43 = vmax.f32 %v2318_v60, 0.0 }
 0x4a7   : > { %v2607_v5 = vpop.f32.mrf.mxu0 }
 0x4a8   : > { %v2608_v4 = vadd.f32 %v7502_v16, %v2607_v5  ;;  %v6822_v5 = vld [vmem:[%s7028_s1 + $0x10] sm:$0xff] }
 0x4a9   : > { %v2031_v8 = vpop.f32.mrf.mxu2 }
 0x4aa   : > { %v2751_v13 = vmax.f32 %v2608_v4, 0.0  ;;  %v2032_v14 = vadd.f32 %v7360_v7, %v2031_v8 }
 0x4ab   : > { %v2319_v17 = vpop.f32.mrf.mxu3 }
 0x4ac   : > { %v2121_v21 = vmax.f32 %v2032_v14, 0.0  ;;  %v2320_v22 = vadd.f32 %v7428_v45, %v2319_v17  ;;  %v2827_v0 = vpack.c.bf16 %v2751_v13, %v2750_v11 }
 0x4ae   : > { %v2436_v42 = vmax.f32 %v2320_v22, 0.0  ;;  %2935 = vmatmul.bf16.gmra.mxu1 %v2827_v0  ;;  %6235 = vmatmul.msk.bf16.vlgmr.msra.gmra.mxu2 %vm1138_vm1, %v6819_v15  ;;  %v2178_v23 = vpack.c.bf16 %v2121_v21, %v2120_v18 }
 0x4af   : > { %v2610_v32 = vpop.f32.mrf.mxu0 }
 0x4b0   : > { %2361 = vmatmul.bf16.gmra.mxu3 %v2178_v23  ;;  %v2502_v24 = vpack.c.bf16 %v2436_v42, %v2435_v43  ;;  %v2611_v27 = vadd.f32 %v7502_v16, %v2610_v32 }
 0x4b1   : > { %v2034_v26 = vpop.f32.mrf.mxu2 }
 0x4b2   : > { %2649 = vmatmul.bf16.gmra.mxu0 %v2502_v24  ;;  %v2035_v29 = vadd.f32 %v7360_v7, %v2034_v26  ;;  %v2752_v36 = vmax.f32 %v2611_v27, 0.0 }
 0x4b3   : > { %v2322_v30 = vpop.f32.mrf.mxu3 }
 0x4b4   : > { %v2323_v37 = vadd.f32 %v7428_v45, %v2322_v30  ;;  %v2122_v28 = vmax.f32 %v2035_v29, 0.0 }
 0x4b6   : > { %v2437_v33 = vmax.f32 %v2323_v37, 0.0 }
 0x4b7   : > { %v2612_v10 = vpop.f32.mrf.mxu0 }
 0x4b8   : > { %v2613_v34 = vadd.f32 %v7502_v16, %v2612_v10  ;;  %v6823_v10 = vld [vmem:[%s7028_s1 + $0x18] sm:$0xff] }
 0x4b9   : > { %v2036_v35 = vpop.f32.mrf.mxu2 }
 0x4ba   : > { %v2753_v38 = vmax.f32 %v2613_v34, 0.0  ;;  %v2037_v39 = vadd.f32 %v7360_v7, %v2036_v35 }
 0x4bb   : > { %v2324_v40 = vpop.f32.mrf.mxu3 }
 0x4bc   : > { %v2123_v41 = vmax.f32 %v2037_v39, 0.0  ;;  %v2325_v44 = vadd.f32 %v7428_v45, %v2324_v40  ;;  %v2828_v59 = vpack.c.bf16 %v2753_v38, %v2752_v36  ;;  %v6745_v39 = vld [vmem:[%s9329_s15] sm:$0xff] }
 0x4bd   : > { %3481 = vmatpush.bf16.msra.mxu3 %v6745_v39 }
 0x4be   : > { %v2438_v9 = vmax.f32 %v2325_v44, 0.0  ;;  %2940 = vmatmul.bf16.gmra.mxu1 %v2828_v59  ;;  %6236 = vmatmul.msk.bf16.gmra.mxu2 %vm1138_vm1, %v6820_v47  ;;  %v2179_v48 = vpack.c.bf16 %v2123_v41, %v2122_v28 }
 0x4bf   : > { %v2615_v46 = vpop.f32.mrf.mxu0 }
 0x4c0   : > { %2366 = vmatmul.bf16.gmra.mxu3 %v2179_v48  ;;  %v2503_v25 = vpack.c.bf16 %v2438_v9, %v2437_v33  ;;  %v2616_v51 = vadd.f32 %v7502_v16, %v2615_v46 }
 0x4c1   : > { %v2039_v19 = vpop.f32.mrf.mxu2 }
 0x4c2   : > { %2654 = vmatmul.bf16.gmra.mxu0 %v2503_v25  ;;  %v2040_v54 = vadd.f32 %v7360_v7, %v2039_v19  ;;  %v2754_v57 = vmax.f32 %v2616_v51, 0.0 }
 0x4c3   : > { %v2327_v53 = vpop.f32.mrf.mxu3 }
 0x4c4   : > { %v2328_v61 = vadd.f32 %v7428_v45, %v2327_v53  ;;  %v2124_v2 = vmax.f32 %v2040_v54, 0.0 }
 0x4c6   : > { %v2439_v12 = vmax.f32 %v2328_v61, 0.0 }
 0x4c7   : > { %v2617_v50 = vpop.f32.mrf.mxu0 }
 0x4c8   : > { %v2618_v55 = vadd.f32 %v7502_v16, %v2617_v50 }
 0x4c9   : > { %v2041_v56 = vpop.f32.mrf.mxu2 }
 0x4ca   : > { %v2755_v62 = vmax.f32 %v2618_v55, 0.0  ;;  %v2042_v63 = vadd.f32 %v7580_v49, %v2041_v56  ;;  %v6824_v55 = vld [vmem:[%s7028_s1 + $0x20] sm:$0xff] }
 0x4cb   : > { %v2329_v1 = vpop.f32.mrf.mxu3 }
 0x4cc   : > { %v2125_v20 = vmax.f32 %v2042_v63, 0.0  ;;  %v2330_v7 = vadd.f32 %v7428_v45, %v2329_v1  ;;  %v2829_v31 = vpack.c.bf16 %v2755_v62, %v2754_v57 }
 0x4ce   : > { %v2440_v3 = vmax.f32 %v2330_v7, 0.0  ;;  %2945 = vmatmul.bf16.gmra.mxu1 %v2829_v31  ;;  %6237 = vmatmul.msk.bf16.gmra.mxu2 %vm1138_vm1, %v6822_v5  ;;  %v2180_v6 = vpack.c.bf16 %v2125_v20, %v2124_v2  ;;  %v6755_v20 = vld [vmem:[%s9331_s17 + $0x10] sm:$0xff] }
 0x4cf   : > { %v2620_v4 = vpop.f32.mrf.mxu0  ;;  %3812 = vmatpush.bf16.msra.mxu0 %v6755_v20 }
 0x4d0   : > { %2371 = vmatmul.bf16.gmra.mxu3 %v2180_v6  ;;  %v2504_v8 = vpack.c.bf16 %v2440_v3, %v2439_v12  ;;  %v2621_v13 = vadd.f32 %v7502_v16, %v2620_v4 }
 0x4d1   : > { %v2044_v11 = vpop.f32.mrf.mxu2 }
 0x4d2   : > { %2659 = vmatmul.bf16.gmra.mxu0 %v2504_v8  ;;  %v2045_v17 = vadd.f32 %v7580_v49, %v2044_v11  ;;  %v2756_v22 = vmax.f32 %v2621_v13, 0.0 }
 0x4d3   : > { %v2332_v60 = vpop.f32.mrf.mxu3 }
 0x4d4   : > { %v2333_v0 = vadd.f32 %v7428_v45, %v2332_v60  ;;  %v2126_v32 = vmax.f32 %v2045_v17, 0.0 }
 0x4d6   : > { %v2441_v27 = vmax.f32 %v2333_v0, 0.0  ;;  %v6825_v0 = vld [vmem:[%s7028_s1 + $0x28] sm:$0xff] }
 0x4d7   : > { %v2622_v14 = vpop.f32.mrf.mxu0 }
 0x4d8   : > { %v2623_v18 = vadd.f32 %v7502_v16, %v2622_v14 }
 0x4d9   : > { %v2046_v21 = vpop.f32.mrf.mxu2 }
 0x4da   : > { %v2757_v43 = vmax.f32 %v2623_v18, 0.0  ;;  %v2047_v42 = vadd.f32 %v7580_v49, %v2046_v21 }
 0x4db   : > { %v2334_v15 = vpop.f32.mrf.mxu3  ;;  %v7591_v23 = vpop.f32.mrf.mxu1 }
 0x4dc   : > { %v2127_v24 = vmax.f32 %v2047_v42, 0.0  ;;  %v2335_v26 = vadd.f32 %v7428_v45, %v2334_v15  ;;  %v2830_v30 = vpack.c.bf16 %v2757_v43, %v2756_v22 }
 0x4de   : > { %v2442_v58 = vmax.f32 %v2335_v26, 0.0  ;;  %2950 = vmatmul.bf16.gmra.mxu1 %v2830_v30  ;;  %6238 = vmatmul.msk.bf16.gmra.mxu2 %vm1138_vm1, %v6823_v10  ;;  %v2181_v29 = vpack.c.bf16 %v2127_v24, %v2126_v32  ;;  %v6765_v24 = vld [vmem:[%s9333_s19 + $0x20] sm:$0xff] }
 0x4df   : > { %v2625_v34 = vpop.f32.mrf.mxu0  ;;  %4143 = vmatpush.bf16.msra.mxu1 %v6765_v24  ;;  %v7661_v24 = vld [vmem:[%s9379_s0] ss:$0 sm:$0xff]  ;;  %s9382_s0 = sld [smem:[#allocation8_spill]] }
 0x4e0   : > { %2376 = vmatmul.bf16.gmra.mxu3 %v2181_v29  ;;  %v2505_v35 = vpack.c.bf16 %v2442_v58, %v2441_v27  ;;  %v2626_v40 = vadd.f32 %v7502_v16, %v2625_v34 }
 0x4e1   : > { %v2049_v36 = vpop.f32.mrf.mxu2 }
 0x4e2   : > { %2664 = vmatmul.bf16.gmra.mxu0 %v2505_v35  ;;  %v2050_v41 = vadd.f32 %v7580_v49, %v2049_v36  ;;  %v2758_v33 = vmax.f32 %v2626_v40, 0.0 }
 0x4e3   : > { %v2337_v37 = vpop.f32.mrf.mxu3  ;;  %v7596_v38 = vpop.f32.mrf.mxu1 }
 0x4e4   : > { %v2338_v9 = vadd.f32 %v7428_v45, %v2337_v37  ;;  %v2128_v19 = vmax.f32 %v2050_v41, 0.0 }
 0x4e5   : > { %s8237_s2 = scalar_lea.vmem %s9382_s0, %s9381_s3  ;;  %s5914_s0 = sshll.u32 %s9410_s5, 3 }
 0x4e6   : > { %v2443_v50 = vmax.f32 %v2338_v9, 0.0 }
 0x4e7   : > { %v2627_v28 = vpop.f32.mrf.mxu0 }
 0x4e8   : > { %v2628_v44 = vadd.f32 %v7502_v16, %v2627_v28 }
 0x4e9   : > { %v2051_v59 = vpop.f32.mrf.mxu2 }
 0x4ea   : > { %v2759_v47 = vmax.f32 %v2628_v44, 0.0  ;;  %v2052_v48 = vadd.f32 %v7580_v49, %v2051_v59 }
 0x4eb   : > { %v2339_v46 = vpop.f32.mrf.mxu3  ;;  %v7606_v25 = vpop.f32.mrf.mxu1 }
 0x4ec   : > { %v2129_v52 = vmax.f32 %v2052_v48, 0.0  ;;  %v2340_v53 = vadd.f32 %v7428_v45, %v2339_v46  ;;  %v2831_v51 = vpack.c.bf16 %v2759_v47, %v2758_v33  ;;  %v6826_v48 = vld [vmem:[%s7028_s1 + $0x30] sm:$0xff] }
 0x4ee   : > { %v2444_v54 = vmax.f32 %v2340_v53, 0.0  ;;  %2955 = vmatmul.bf16.gmra.mxu1 %v2831_v51  ;;  %6239 = vmatmul.msk.bf16.gmra.mxu2 %vm1138_vm1, %v6824_v55  ;;  %v2182_v56 = vpack.c.bf16 %v2129_v52, %v2128_v19 }
 0x4ef   : > { %v2630_v57 = vpop.f32.mrf.mxu0 }
 0x4f0   : > { %2381 = vmatmul.bf16.gmra.mxu3 %v2182_v56  ;;  %v2506_v61 = vpack.c.bf16 %v2444_v54, %v2443_v50  ;;  %v2631_v2 = vadd.f32 %v7502_v16, %v2630_v57 }
 0x4f1   : > { %v2054_v62 = vpop.f32.mrf.mxu2 }
 0x4f2   : > { %2669 = vmatmul.bf16.gmra.mxu0 %v2506_v61  ;;  %v2055_v31 = vadd.f32 %v7580_v49, %v2054_v62  ;;  %v2760_v5 = vmax.f32 %v2631_v2, 0.0 }
 0x4f3   : > { %v2342_v63 = vpop.f32.mrf.mxu3  ;;  %v7611_v1 = vpop.f32.mrf.mxu1 }
 0x4f4   : > { %v2343_v6 = vadd.f32 %v7428_v45, %v2342_v63  ;;  %v2130_v13 = vmax.f32 %v2055_v31, 0.0 }
 0x4f6   : > { %v2445_v21 = vmax.f32 %v2343_v6, 0.0 }
 0x4f7   : > { %v2632_v7 = vpop.f32.mrf.mxu0 }
 0x4f8   : > { %v2633_v12 = vadd.f32 %v7502_v16, %v2632_v7 }
 0x4f9   : > { %v2056_v3 = vpop.f32.mrf.mxu2 }
 0x4fa   : > { %v2761_v4 = vmax.f32 %v2633_v12, 0.0  ;;  %v2057_v8 = vadd.f32 %v7580_v49, %v2056_v3 }
 0x4fb   : > { %v2344_v11 = vpop.f32.mrf.mxu3  ;;  %v7621_v60 = vpop.f32.mrf.mxu1 }
 0x4fc   : > { %v2131_v14 = vmax.f32 %v2057_v8, 0.0  ;;  %v2345_v17 = vadd.f32 %v7428_v45, %v2344_v11  ;;  %v2832_v18 = vpack.c.bf16 %v2761_v4, %v2760_v5  ;;  %v6827_v11 = vld [vmem:[%s7028_s1 + $0x38] sm:$0xff] }
 0x4fe   : > { %v2446_v22 = vmax.f32 %v2345_v17, 0.0  ;;  %2960 = vmatmul.bf16.gmra.mxu1 %v2832_v18  ;;  %6240 = vmatmul.msk.bf16.gmra.mxu2 %vm1138_vm1, %v6825_v0  ;;  %v2183_v43 = vpack.c.bf16 %v2131_v14, %v2130_v13 }
 0x4ff   : > { %v2635_v42 = vpop.f32.mrf.mxu0 }
 0x500   : > { %2386 = vmatmul.bf16.gmra.mxu3 %v2183_v43  ;;  %v2507_v15 = vpack.c.bf16 %v2446_v22, %v2445_v21  ;;  %v2636_v27 = vadd.f32 %v7502_v16, %v2635_v42 }
 0x501   : > { %v2059_v32 = vpop.f32.mrf.mxu2 }
 0x502   : > { %2674 = vmatmul.bf16.gmra.mxu0 %v2507_v15  ;;  %v2060_v10 = vadd.f32 %v7580_v49, %v2059_v32  ;;  %v2762_v35 = vmax.f32 %v2636_v27, 0.0 }
 0x503   : > { %v2347_v26 = vpop.f32.mrf.mxu3  ;;  %v7629_v30 = vpop.f32.mrf.mxu1 }
 0x504   : > { %v2348_v36 = vadd.f32 %v7428_v45, %v2347_v26  ;;  %v2132_v41 = vmax.f32 %v2060_v10, 0.0 }
 0x506   : > { %v2447_v9 = vmax.f32 %v2348_v36, 0.0 }
 0x507   : > { %v2637_v58 = vpop.f32.mrf.mxu0 }
 0x508   : > { %v2638_v29 = vadd.f32 %v7502_v16, %v2637_v58 }
 0x509   : > { %v2061_v34 = vpop.f32.mrf.mxu2 }
 0x50a   : > { %v2763_v37 = vmax.f32 %v2638_v29, 0.0  ;;  %v2062_v39 = vadd.f32 %v7580_v49, %v2061_v34 }
 0x50b   : > { %v2349_v40 = vpop.f32.mrf.mxu3  ;;  %v7636_v28 = vpop.f32.mrf.mxu1 }
 0x50c   : > { %v2133_v44 = vmax.f32 %v2062_v39, 0.0  ;;  %v2350_v59 = vadd.f32 %v7428_v45, %v2349_v40  ;;  %v2833_v33 = vpack.c.bf16 %v2763_v37, %v2762_v35 }
 0x50e   : > { %v2448_v47 = vmax.f32 %v2350_v59, 0.0  ;;  %2965 = vmatmul.bf16.gmra.mxu1 %v2833_v33  ;;  %6241 = vmatmul.msk.bf16.gmra.mxu2 %vm1138_vm1, %v6826_v48  ;;  %v2184_v46 = vpack.c.bf16 %v2133_v44, %v2132_v41  ;;  %v6829_v41 = vld [vmem:[%s7028_s1 + $0x40] sm:$0xff] }
 0x50f   : > { %v2640_v19 = vpop.f32.mrf.mxu0 }
 0x510   : > { %2391 = vmatmul.bf16.gmra.mxu3 %v2184_v46  ;;  %v2508_v52 = vpack.c.bf16 %v2448_v47, %v2447_v9  ;;  %v2641_v54 = vadd.f32 %v7502_v16, %v2640_v19  ;;  %v7677_v19 = vld [vmem:[%s9328_s14] ss:$0 sm:$0xff] }
 0x511   : > { %v2064_v53 = vpop.f32.mrf.mxu2 }
 0x512   : > { %2679 = vmatmul.bf16.gmra.mxu0 %v2508_v52  ;;  %v2065_v56 = vadd.f32 %v7580_v49, %v2064_v53  ;;  %v2764_v62 = vmax.f32 %v2641_v54, 0.0  ;;  %v6754_v52 = vld [vmem:[%s9331_s17 + $0x8] sm:$0xff] }
 0x513   : > { %v2352_v51 = vpop.f32.mrf.mxu3  ;;  %v7641_v50 = vpop.f32.mrf.mxu1  ;;  %3813 = vmatpush.bf16.msra.mxu0 %v6754_v52 }
 0x514   : > { %v2353_v63 = vadd.f32 %v7428_v45, %v2352_v51  ;;  %v2134_v12 = vmax.f32 %v2065_v56, 0.0 }
 0x516   : > { %v2449_v4 = vmax.f32 %v2353_v63, 0.0 }
 0x517   : > { %v2642_v55 = vpop.f32.mrf.mxu0 }
 0x518   : > { %v2643_v57 = vadd.f32 %v7502_v16, %v2642_v55 }
 0x519   : > { %v2066_v61 = vpop.f32.mrf.mxu2 }
 0x51a   : > { %v2765_v2 = vmax.f32 %v2643_v57, 0.0  ;;  %v2067_v20 = vadd.f32 %v7580_v49, %v2066_v61 }
 0x51b   : > { %v2354_v7 = vpop.f32.mrf.mxu3  ;;  %v7648_v31 = vpop.f32.mrf.mxu1 }
 0x51c   : > { %v2135_v3 = vmax.f32 %v2067_v20, 0.0  ;;  %v2355_v5 = vadd.f32 %v7428_v45, %v2354_v7  ;;  %v2834_v6 = vpack.c.bf16 %v2765_v2, %v2764_v62 }
 0x51e   : > { %v2450_v8 = vmax.f32 %v2355_v5, 0.0  ;;  %2970 = vmatmul.bf16.gmra.mxu1 %v2834_v6  ;;  %6242 = vmatmul.msk.bf16.gmra.mxu2 %vm1138_vm1, %v6827_v11  ;;  %v2185_v13 = vpack.c.bf16 %v2135_v3, %v2134_v12 }
 0x51f   : > { %v2645_v14 = vpop.f32.mrf.mxu0 }
 0x520   : > { %2396 = vmatmul.bf16.gmra.mxu3 %v2185_v13  ;;  %v2509_v17 = vpack.c.bf16 %v2450_v8, %v2449_v4  ;;  %v2646_v0 = vadd.f32 %v7502_v16, %v2645_v14  ;;  %v6830_v4 = vld [vmem:[%s7028_s1 + $0x48] sm:$0xff]  ;;  %v6764_v14 = vld [vmem:[%s9333_s19 + $0x18] sm:$0xff] }
 0x521   : > { %v2069_v18 = vpop.f32.mrf.mxu2  ;;  %4144 = vmatpush.bf16.msra.mxu1 %v6764_v14 }
 0x522   : > { %2684 = vmatmul.bf16.gmra.mxu0 %v2509_v17  ;;  %v2070_v45 = vadd.f32 %v7580_v49, %v2069_v18  ;;  %v2766_v32 = vmax.f32 %v2646_v0, 0.0 }
 0x523   : > { %v2357_v21 = vpop.f32.mrf.mxu3  ;;  %v7653_v22 = vpop.f32.mrf.mxu1 }
 0x524   : > { %v2358_v26 = vadd.f32 %v7661_v24, %v2357_v21  ;;  %v2136_v34 = vmax.f32 %v2070_v45, 0.0 }
 0x526   : > { %v2451_v39 = vmax.f32 %v2358_v26, 0.0 }
 0x527   : > { %v2647_v43 = vpop.f32.mrf.mxu0 }
 0x528   : > { %v2648_v42 = vadd.f32 %v7502_v16, %v2647_v43 }
 0x529   : > { %v2071_v15 = vpop.f32.mrf.mxu2 }
 0x52a   : > { %v2767_v27 = vmax.f32 %v2648_v42, 0.0  ;;  %v2072_v58 = vadd.f32 %v7580_v49, %v2071_v15 }
 0x52b   : > { %v2359_v10 = vpop.f32.mrf.mxu3  ;;  %v7665_v29 = vpop.f32.mrf.mxu1 }
 0x52c   : > { %v2137_v35 = vmax.f32 %v2072_v58, 0.0  ;;  %v2360_v36 = vadd.f32 %v7661_v24, %v2359_v10  ;;  %v2835_v37 = vpack.c.bf16 %v2767_v27, %v2766_v32 }
 0x52e   : > { %v2452_v40 = vmax.f32 %v2360_v36, 0.0  ;;  %2975 = vmatmul.bf16.gmra.mxu1 %v2835_v37  ;;  %6243 = vmatmul.msk.bf16.gmra.mxu2 %vm1138_vm1, %v6829_v41  ;;  %v2186_v44 = vpack.c.bf16 %v2137_v35, %v2136_v34 }
 0x52f   : > { %v2650_v59 = vpop.f32.mrf.mxu0 }
 0x530   : > { %2401 = vmatmul.bf16.gmra.mxu3 %v2186_v44  ;;  %v2510_v33 = vpack.c.bf16 %v2452_v40, %v2451_v39  ;;  %v2651_v48 = vadd.f32 %v7502_v16, %v2650_v59  ;;  %v6831_v44 = vld [vmem:[%s7028_s1 + $0x50] sm:$0xff] }
 0x531   : > { %v3083_v9 = vpop.f32.mrf.mxu2 }
 0x532   : > { %2689 = vmatmul.bf16.gmra.mxu0 %v2510_v33  ;;  %v3084_v46 = vadd.f32 %v3083_v9, %v7591_v23  ;;  %v2768_v54 = vmax.f32 %v2651_v48, 0.0 }
 0x533   : > { %v2362_v49 = vpop.f32.mrf.mxu3  ;;  %v7670_v47 = vpop.f32.mrf.mxu1 }
 0x534   : > { %v3246_v56 = vadd.f32 %v7677_v19, %v3084_v46  ;;  %v2363_v23 = vadd.f32 %v7661_v24, %v2362_v49 }
 0x536   : > { %v3310_v12 = vmax.f32 %v3246_v56, 0.0  ;;  %v2453_v3 = vmax.f32 %v2363_v23, 0.0 }
 0x537   : > { %v2652_v53 = vpop.f32.mrf.mxu0 }
 0x538   : > { %v2653_v51 = vadd.f32 %v7502_v16, %v2652_v53 }
 0x539   : > { %v3085_v55 = vpop.f32.mrf.mxu2 }
 0x53a   : > { %v2769_v57 = vmax.f32 %v2653_v51, 0.0  ;;  %v3086_v61 = vadd.f32 %v3085_v55, %v7596_v38 }
 0x53b   : > { %v2364_v62 = vpop.f32.mrf.mxu3  ;;  %v7686_v63 = vpop.f32.mrf.mxu1 }
 0x53c   : > { %v3247_v2 = vadd.f32 %v7677_v19, %v3086_v61  ;;  %v2365_v20 = vadd.f32 %v7661_v24, %v2364_v62  ;;  %v2836_v7 = vpack.c.bf16 %v2769_v57, %v2768_v54 }
 0x53e   : > { %v3311_v5 = vmax.f32 %v3247_v2, 0.0  ;;  %v2454_v6 = vmax.f32 %v2365_v20, 0.0  ;;  %2980 = vmatmul.bf16.gmra.mxu1 %v2836_v7  ;;  %6244 = vmatmul.msk.bf16.gmra.mxu2 %vm1138_vm1, %v6830_v4  ;;  %v6832_v4 = vld [vmem:[%s7028_s1 + $0x58] sm:$0xff] }
 0x53f   : > { %v2655_v8 = vpop.f32.mrf.mxu0 }
 0x540   : > { %v3391_v11 = vpack.c.bf16 %v3311_v5, %v3310_v12  ;;  %v2511_v13 = vpack.c.bf16 %v2454_v6, %v2453_v3  ;;  %v2656_v21 = vadd.f32 %v7502_v16, %v2655_v8 }
 0x541   : > { %v3088_v38 = vpop.f32.mrf.mxu2 }
 0x542   : > { %2694 = vmatmul.bf16.gmra.mxu0 %v2511_v13  ;;  %3482 = vmatmul.bf16.vlgmr.msra.gmra.mxu3 %v3391_v11  ;;  %v3089_v0 = vadd.f32 %v3088_v38, %v7606_v25  ;;  %v2770_v42 = vmax.f32 %v2656_v21, 0.0 }
 0x543   : > { %v2367_v17 = vpop.f32.mrf.mxu3  ;;  %v7695_v18 = vpop.f32.mrf.mxu1 }
 0x544   : > { %v3248_v32 = vadd.f32 %v7677_v19, %v3089_v0  ;;  %v2368_v26 = vadd.f32 %v7661_v24, %v2367_v17 }
 0x546   : > { %v3312_v37 = vmax.f32 %v3248_v32, 0.0  ;;  %v2455_v39 = vmax.f32 %v2368_v26, 0.0 }
 0x547   : > { %v2657_v43 = vpop.f32.mrf.mxu0 }
 0x548   : > { %v2658_v45 = vadd.f32 %v7502_v16, %v2657_v43 }
 0x549   : > { %v3090_v15 = vpop.f32.mrf.mxu2 }
 0x54a   : > { %v2771_v27 = vmax.f32 %v2658_v45, 0.0  ;;  %v3091_v58 = vadd.f32 %v3090_v15, %v7611_v1 }
 0x54b   : > { %v2369_v10 = vpop.f32.mrf.mxu3  ;;  %v7703_v34 = vpop.f32.mrf.mxu1 }
 0x54c   : > { %v3249_v35 = vadd.f32 %v7677_v19, %v3091_v58  ;;  %v2370_v25 = vadd.f32 %v7661_v24, %v2369_v10  ;;  %v2837_v36 = vpack.c.bf16 %v2771_v27, %v2770_v42 }
 0x54e   : > { %v3313_v40 = vmax.f32 %v3249_v35, 0.0  ;;  %v2456_v41 = vmax.f32 %v2370_v25, 0.0  ;;  %2985 = vmatmul.bf16.gmra.mxu1 %v2837_v36  ;;  %6245 = vmatmul.msk.bf16.gmra.mxu2 %vm1138_vm1, %v6831_v44 }
 0x54f   : > { %v2660_v59 = vpop.f32.mrf.mxu0 }
 0x550   : > { %v2512_v33 = vpack.c.bf16 %v2456_v41, %v2455_v39  ;;  %v3392_v9 = vpack.c.bf16 %v3313_v40, %v3312_v37  ;;  %v2661_v46 = vadd.f32 %v7502_v16, %v2660_v59  ;;  %v6833_v41 = vld [vmem:[%s7028_s1 + $0x60] sm:$0xff] }
 0x551   : > { %v3093_v1 = vpop.f32.mrf.mxu2 }
 0x552   : > { %2699 = vmatmul.bf16.gmra.mxu0 %v2512_v33  ;;  %3487 = vmatmul.bf16.gmra.mxu3 %v3392_v9  ;;  %v3094_v52 = vadd.f32 %v3093_v1, %v7621_v60  ;;  %v2772_v54 = vmax.f32 %v2661_v46, 0.0 }
 0x553   : > { %v2372_v49 = vpop.f32.mrf.mxu3  ;;  %v7709_v48 = vpop.f32.mrf.mxu1 }
 0x554   : > { %v3250_v56 = vadd.f32 %v7677_v19, %v3094_v52  ;;  %v2373_v23 = vadd.f32 %v7661_v24, %v2372_v49  ;;  %v6753_v52 = vld [vmem:[%s9331_s17] sm:$0xff] }
 0x555   : > { %3814 = vmatpush.bf16.msra.mxu0 %v6753_v52 }
 0x556   : > { %v3314_v12 = vmax.f32 %v3250_v56, 0.0  ;;  %v2457_v3 = vmax.f32 %v2373_v23, 0.0 }
 0x557   : > { %v2662_v53 = vpop.f32.mrf.mxu0 }
 0x558   : > { %v2663_v51 = vadd.f32 %v7502_v16, %v2662_v53 }
 0x559   : > { %v3095_v55 = vpop.f32.mrf.mxu2 }
 0x55a   : > { %v2773_v57 = vmax.f32 %v2663_v51, 0.0  ;;  %v3096_v61 = vadd.f32 %v3095_v55, %v7629_v30 }
 0x55b   : > { %v2374_v62 = vpop.f32.mrf.mxu3  ;;  %v7717_v2 = vpop.f32.mrf.mxu1 }
 0x55c   : > { %v3251_v20 = vadd.f32 %v7677_v19, %v3096_v61  ;;  %v2375_v60 = vadd.f32 %v7661_v24, %v2374_v62  ;;  %v2838_v7 = vpack.c.bf16 %v2773_v57, %v2772_v54 }
 0x55e   : > { %v3315_v5 = vmax.f32 %v3251_v20, 0.0  ;;  %v2458_v6 = vmax.f32 %v2375_v60, 0.0  ;;  %2990 = vmatmul.bf16.gmra.mxu1 %v2838_v7  ;;  %6246 = vmatmul.msk.bf16.gmra.mxu2 %vm1138_vm1, %v6832_v4 }
 0x55f   : > { %v2665_v8 = vpop.f32.mrf.mxu0 }
 0x560   : > { %v2513_v11 = vpack.c.bf16 %v2458_v6, %v2457_v3  ;;  %v3393_v13 = vpack.c.bf16 %v3315_v5, %v3314_v12  ;;  %v2666_v17 = vadd.f32 %v7502_v16, %v2665_v8  ;;  %v6834_v6 = vld [vmem:[%s7028_s1 + $0x68] sm:$0xff] }
 0x561   : > { %v3098_v30 = vpop.f32.mrf.mxu2 }
 0x562   : > { %2704 = vmatmul.bf16.gmra.mxu0 %v2513_v11  ;;  %3492 = vmatmul.bf16.gmra.mxu3 %v3393_v13  ;;  %v3099_v21 = vadd.f32 %v3098_v30, %v7636_v28  ;;  %v2774_v45 = vmax.f32 %v2666_v17, 0.0  ;;  %v6763_v13 = vld [vmem:[%s9333_s19 + $0x10] sm:$0xff]  ;;  %v7762_v17 = vld [vmem:[%s9380_s4] ss:$0 sm:$0xff] }
 0x563   : > { %v2377_v38 = vpop.f32.mrf.mxu3  ;;  %v7723_v14 = vpop.f32.mrf.mxu1  ;;  %4145 = vmatpush.bf16.msra.mxu1 %v6763_v13 }
 0x564   : > { %v3252_v15 = vadd.f32 %v7677_v19, %v3099_v21  ;;  %v2378_v32 = vadd.f32 %v7661_v24, %v2377_v38 }
 0x566   : > { %v3316_v36 = vmax.f32 %v3252_v15, 0.0  ;;  %v2459_v37 = vmax.f32 %v2378_v32, 0.0 }
 0x567   : > { %v2667_v0 = vpop.f32.mrf.mxu0 }
 0x568   : > { %v2668_v43 = vadd.f32 %v7502_v16, %v2667_v0 }
 0x569   : > { %v3100_v42 = vpop.f32.mrf.mxu2 }
 0x56a   : > { %v2775_v26 = vmax.f32 %v2668_v43, 0.0  ;;  %v3101_v27 = vadd.f32 %v3100_v42, %v7641_v50 }
 0x56b   : > { %v2379_v58 = vpop.f32.mrf.mxu3  ;;  %v7731_v10 = vpop.f32.mrf.mxu1 }
 0x56c   : > { %v3253_v35 = vadd.f32 %v7677_v19, %v3101_v27  ;;  %v2380_v28 = vadd.f32 %v7661_v24, %v2379_v58  ;;  %v2839_v25 = vpack.c.bf16 %v2775_v26, %v2774_v45 }
 0x56e   : > { %v3317_v39 = vmax.f32 %v3253_v35, 0.0  ;;  %v2460_v40 = vmax.f32 %v2380_v28, 0.0  ;;  %2995 = vmatmul.bf16.gmra.mxu1 %v2839_v25  ;;  %6247 = vmatmul.msk.bf16.gmra.mxu2 %vm1138_vm1, %v6833_v41 }
 0x56f   : > { %v2670_v44 = vpop.f32.mrf.mxu0 }
 0x570   : > { %v2514_v59 = vpack.c.bf16 %v2460_v40, %v2459_v37  ;;  %v3394_v33 = vpack.c.bf16 %v3317_v39, %v3316_v36  ;;  %v2671_v49 = vadd.f32 %v7502_v16, %v2670_v44  ;;  %v6836_v44 = vld [vmem:[%s7028_s1 + $0x70] sm:$0xff] }
 0x571   : > { %v3103_v50 = vpop.f32.mrf.mxu2 }
 0x572   : > { %2709 = vmatmul.bf16.gmra.mxu0 %v2514_v59  ;;  %3497 = vmatmul.bf16.gmra.mxu3 %v3394_v33  ;;  %v3104_v46 = vadd.f32 %v3103_v50, %v7648_v31  ;;  %v2776_v54 = vmax.f32 %v2671_v49, 0.0 }
 0x573   : > { %v2382_v9 = vpop.f32.mrf.mxu3  ;;  %v7737_v1 = vpop.f32.mrf.mxu1 }
 0x574   : > { %v3254_v56 = vadd.f32 %v7677_v19, %v3104_v46  ;;  %v2383_v23 = vadd.f32 %v7661_v24, %v2382_v9 }
 0x576   : > { %v2461_v12 = vmax.f32 %v2383_v23, 0.0 }
 0x577   : > { %v2672_v53 = vpop.f32.mrf.mxu0 }
 0x578   : > { %v2673_v51 = vadd.f32 %v7502_v16, %v2672_v53  ;;  %v3318_v16 = vmax.f32 %v3254_v56, 0.0 }
 0x579   : > { %v3105_v55 = vpop.f32.mrf.mxu2 }
 0x57a   : > { %v2777_v57 = vmax.f32 %v2673_v51, 0.0  ;;  %v3106_v61 = vadd.f32 %v3105_v55, %v7653_v22 }
 0x57b   : > { %v2384_v62 = vpop.f32.mrf.mxu3  ;;  %v7748_v31 = vpop.f32.mrf.mxu1 }
 0x57c   : > { %v3255_v20 = vadd.f32 %v7677_v19, %v3106_v61  ;;  %v2385_v60 = vadd.f32 %v7661_v24, %v2384_v62  ;;  %v2840_v7 = vpack.c.bf16 %v2777_v57, %v2776_v54 }
 0x57e   : > { %v3319_v3 = vmax.f32 %v3255_v20, 0.0  ;;  %v2462_v5 = vmax.f32 %v2385_v60, 0.0  ;;  %3000 = vmatmul.bf16.gmra.mxu1 %v2840_v7  ;;  %6248 = vmatmul.msk.bf16.gmra.mxu2 %vm1138_vm1, %v6834_v6  ;;  %v6837_v6 = vld [vmem:[%s7028_s1 + $0x78] sm:$0xff] }
 0x57f   : > { %v2675_v4 = vpop.f32.mrf.mxu0 }
 0x580   : > { %v2515_v8 = vpack.c.bf16 %v2462_v5, %v2461_v12  ;;  %v3395_v11 = vpack.c.bf16 %v3319_v3, %v3318_v16  ;;  %v2676_v21 = vadd.f32 %v7762_v17, %v2675_v4 }
 0x581   : > { %v3108_v22 = vpop.f32.mrf.mxu2 }
 0x582   : > { %2714 = vmatmul.bf16.gmra.mxu0 %v2515_v8  ;;  %3502 = vmatmul.bf16.gmra.mxu3 %v3395_v11  ;;  %v3109_v0 = vadd.f32 %v3108_v22, %v7665_v29  ;;  %v2778_v42 = vmax.f32 %v2676_v21, 0.0 }
 0x583   : > { %v2387_v30 = vpop.f32.mrf.mxu3  ;;  %v7757_v38 = vpop.f32.mrf.mxu1 }
 0x584   : > { %v3256_v32 = vadd.f32 %v7677_v19, %v3109_v0  ;;  %v2388_v26 = vadd.f32 %v7661_v24, %v2387_v30 }
 0x586   : > { %v3320_v37 = vmax.f32 %v3256_v32, 0.0  ;;  %v2463_v39 = vmax.f32 %v2388_v26, 0.0 }
 0x587   : > { %v2677_v43 = vpop.f32.mrf.mxu0 }
 0x588   : > { %v2678_v45 = vadd.f32 %v7762_v17, %v2677_v43 }
 0x589   : > { %v3110_v15 = vpop.f32.mrf.mxu2 }
 0x58a   : > { %v2779_v27 = vmax.f32 %v2678_v45, 0.0  ;;  %v3111_v58 = vadd.f32 %v3110_v15, %v7670_v47 }
 0x58b   : > { %v2389_v35 = vpop.f32.mrf.mxu3  ;;  %v7770_v28 = vpop.f32.mrf.mxu1 }
 0x58c   : > { %v3257_v25 = vadd.f32 %v7677_v19, %v3111_v58  ;;  %v2390_v29 = vadd.f32 %v7661_v24, %v2389_v35  ;;  %v2841_v36 = vpack.c.bf16 %v2779_v27, %v2778_v42 }
 0x58e   : > { %v3321_v40 = vmax.f32 %v3257_v25, 0.0  ;;  %v2464_v41 = vmax.f32 %v2390_v29, 0.0  ;;  %3005 = vmatmul.bf16.gmra.mxu1 %v2841_v36  ;;  %6249 = vmatmul.msk.bf16.gmra.mxu2 %vm1138_vm1, %v6836_v44  ;;  %v6776_v44 = vld [vmem:[%s9335_s21 + $0x38] sm:$0xff] }
 0x58f   : > { %v2680_v59 = vpop.f32.mrf.mxu0  ;;  %4840 = vmatpush.bf16.msrb.mxu3 %v6776_v44 }
 0x590   : > { %v2516_v33 = vpack.c.bf16 %v2464_v41, %v2463_v39  ;;  %v3396_v50 = vpack.c.bf16 %v3321_v40, %v3320_v37  ;;  %v2681_v46 = vadd.f32 %v7762_v17, %v2680_v59  ;;  %v6838_v41 = vld [vmem:[%s7028_s1 + $0x80] sm:$0xff] }
 0x591   : > { %v3113_v47 = vpop.f32.mrf.mxu2 }
 0x592   : > { %2719 = vmatmul.bf16.gmra.mxu0 %v2516_v33  ;;  %3507 = vmatmul.bf16.gmra.mxu3 %v3396_v50  ;;  %v3114_v52 = vadd.f32 %v3113_v47, %v7686_v63  ;;  %v2780_v54 = vmax.f32 %v2681_v46, 0.0 }
 0x593   : > { %v2392_v9 = vpop.f32.mrf.mxu3  ;;  %v7776_v49 = vpop.f32.mrf.mxu1 }
 0x594   : > { %v3258_v56 = vadd.f32 %v7677_v19, %v3114_v52  ;;  %v2393_v23 = vadd.f32 %v7661_v24, %v2392_v9 }
 0x596   : > { %v3322_v16 = vmax.f32 %v3258_v56, 0.0  ;;  %v2465_v12 = vmax.f32 %v2393_v23, 0.0 }
 0x597   : > { %v2682_v53 = vpop.f32.mrf.mxu0 }
 0x598   : > { %v2683_v51 = vadd.f32 %v7762_v17, %v2682_v53 }
 0x599   : > { %v3115_v55 = vpop.f32.mrf.mxu2 }
 0x59a   : > { %v2781_v57 = vmax.f32 %v2683_v51, 0.0  ;;  %v3116_v61 = vadd.f32 %v3115_v55, %v7695_v18 }
 0x59b   : > { %v2394_v62 = vpop.f32.mrf.mxu3  ;;  %v7784_v20 = vpop.f32.mrf.mxu1 }
 0x59c   : > { %v3259_v60 = vadd.f32 %v7677_v19, %v3116_v61  ;;  %v2395_v63 = vadd.f32 %v7661_v24, %v2394_v62  ;;  %v2842_v7 = vpack.c.bf16 %v2781_v57, %v2780_v54 }
 0x59e   : > { %v3323_v3 = vmax.f32 %v3259_v60, 0.0  ;;  %v2466_v5 = vmax.f32 %v2395_v63, 0.0  ;;  %3010 = vmatmul.bf16.gmra.mxu1 %v2842_v7  ;;  %6250 = vmatmul.msk.bf16.gmra.mxu2 %vm1138_vm1, %v6837_v6 }
 0x59f   : > { %v2685_v4 = vpop.f32.mrf.mxu0 }
 0x5a0   : > { %v2517_v8 = vpack.c.bf16 %v2466_v5, %v2465_v12  ;;  %v3397_v11 = vpack.c.bf16 %v3323_v3, %v3322_v16  ;;  %v2686_v30 = vadd.f32 %v7762_v17, %v2685_v4  ;;  %v6839_v4 = vld [vmem:[%s7028_s1 + $0x88] sm:$0xff] }
 0x5a1   : > { %v3118_v18 = vpop.f32.mrf.mxu2 }
 0x5a2   : > { %2724 = vmatmul.bf16.gmra.mxu0 %v2517_v8  ;;  %3512 = vmatmul.bf16.gmra.mxu3 %v3397_v11  ;;  %v3119_v21 = vadd.f32 %v3118_v18, %v7703_v34  ;;  %v2782_v45 = vmax.f32 %v2686_v30, 0.0 }
 0x5a3   : > { %v2397_v22 = vpop.f32.mrf.mxu3  ;;  %v7790_v13 = vpop.f32.mrf.mxu1 }
 0x5a4   : > { %v3260_v15 = vadd.f32 %v7677_v19, %v3119_v21  ;;  %v2398_v32 = vadd.f32 %v7661_v24, %v2397_v22  ;;  %v6762_v22 = vld [vmem:[%s9333_s19 + $0x8] sm:$0xff] }
 0x5a5   : > { %4146 = vmatpush.bf16.msra.mxu1 %v6762_v22 }
 0x5a6   : > { %v3324_v36 = vmax.f32 %v3260_v15, 0.0  ;;  %v2467_v37 = vmax.f32 %v2398_v32, 0.0 }
 0x5a7   : > { %v2687_v0 = vpop.f32.mrf.mxu0 }
 0x5a8   : > { %v2688_v43 = vadd.f32 %v7762_v17, %v2687_v0 }
 0x5a9   : > { %v3120_v42 = vpop.f32.mrf.mxu2 }
 0x5aa   : > { %v2783_v26 = vmax.f32 %v2688_v43, 0.0  ;;  %v3121_v27 = vadd.f32 %v3120_v42, %v7709_v48  ;;  %v6777_v48 = vld [vmem:[%s9336_s22] sm:$0xff] }
 0x5ab   : > { %v2399_v58 = vpop.f32.mrf.mxu3  ;;  %v7798_v35 = vpop.f32.mrf.mxu1  ;;  %4630 = vmatpush.bf16.msrb.mxu2 %v6777_v48 }
 0x5ac   : > { %v3261_v25 = vadd.f32 %v7677_v19, %v3121_v27  ;;  %v2400_v34 = vadd.f32 %v7661_v24, %v2399_v58  ;;  %v2843_v29 = vpack.c.bf16 %v2783_v26, %v2782_v45  ;;  %v7834_v45 = vld [vmem:[%s9330_s16] ss:$0 sm:$0xff] }
 0x5ae   : > { %v3325_v39 = vmax.f32 %v3261_v25, 0.0  ;;  %v2468_v40 = vmax.f32 %v2400_v34, 0.0  ;;  %3015 = vmatmul.bf16.gmra.mxu1 %v2843_v29  ;;  %6251 = vmatmul.msk.bf16.gmra.mxu2 %vm1138_vm1, %v6838_v41  ;;  %v6840_v41 = vld [vmem:[%s7028_s1 + $0x90] sm:$0xff] }
 0x5af   : > { %v2690_v59 = vpop.f32.mrf.mxu0 }
 0x5b0   : > { %v2518_v33 = vpack.c.bf16 %v2468_v40, %v2467_v37  ;;  %v3398_v50 = vpack.c.bf16 %v3325_v39, %v3324_v36  ;;  %v2691_v52 = vadd.f32 %v7762_v17, %v2690_v59 }
 0x5b1   : > { %v3123_v47 = vpop.f32.mrf.mxu2 }
 0x5b2   : > { %2729 = vmatmul.bf16.gmra.mxu0 %v2518_v33  ;;  %3517 = vmatmul.bf16.gmra.mxu3 %v3398_v50  ;;  %v3124_v53 = vadd.f32 %v3123_v47, %v7717_v2  ;;  %v2784_v55 = vmax.f32 %v2691_v52, 0.0 }
 0x5b3   : > { %v2402_v9 = vpop.f32.mrf.mxu3  ;;  %v7810_v46 = vpop.f32.mrf.mxu1 }
 0x5b4   : > { %v3262_v23 = vadd.f32 %v7677_v19, %v3124_v53  ;;  %v2403_v57 = vadd.f32 %v7661_v24, %v2402_v9 }
 0x5b6   : > { %v3326_v12 = vmax.f32 %v3262_v23, 0.0  ;;  %v2469_v3 = vmax.f32 %v2403_v57, 0.0 }
 0x5b7   : > { %v2692_v51 = vpop.f32.mrf.mxu0 }
 0x5b8   : > { %v2693_v54 = vadd.f32 %v7762_v17, %v2692_v51 }
 0x5b9   : > { %v3125_v56 = vpop.f32.mrf.mxu2 }
 0x5ba   : > { %v2785_v61 = vmax.f32 %v2693_v54, 0.0  ;;  %v3126_v62 = vadd.f32 %v3125_v56, %v7723_v14 }
 0x5bb   : > { %v2404_v60 = vpop.f32.mrf.mxu3  ;;  %v7818_v63 = vpop.f32.mrf.mxu1 }
 0x5bc   : > { %v3263_v7 = vadd.f32 %v7677_v19, %v3126_v62  ;;  %v2405_v2 = vadd.f32 %v7661_v24, %v2404_v60  ;;  %v2844_v16 = vpack.c.bf16 %v2785_v61, %v2784_v55 }
 0x5be   : > { %v3327_v5 = vmax.f32 %v3263_v7, 0.0  ;;  %v2470_v6 = vmax.f32 %v2405_v2, 0.0  ;;  %3020 = vmatmul.bf16.gmra.mxu1 %v2844_v16  ;;  %6252 = vmatmul.msk.bf16.gmra.mxu2 %vm1138_vm1, %v6839_v4 }
 0x5bf   : > { %v2695_v8 = vpop.f32.mrf.mxu0 }
 0x5c0   : > { %v2519_v11 = vpack.c.bf16 %v2470_v6, %v2469_v3  ;;  %v3399_v18 = vpack.c.bf16 %v3327_v5, %v3326_v12  ;;  %v2696_v21 = vadd.f32 %v7762_v17, %v2695_v8  ;;  %v6841_v5 = vld [vmem:[%s7028_s1 + $0x98] sm:$0xff] }
 0x5c1   : > { %v3128_v14 = vpop.f32.mrf.mxu2 }
 0x5c2   : > { %2734 = vmatmul.bf16.gmra.mxu0 %v2519_v11  ;;  %3522 = vmatmul.bf16.gmra.mxu3 %v3399_v18  ;;  %v3129_v0 = vadd.f32 %v3128_v14, %v7731_v10  ;;  %v2786_v32 = vmax.f32 %v2696_v21, 0.0 }
 0x5c3   : > { %v7827_v24 = vpop.f32.mrf.mxu1 }
 0x5c4   : > { %v3264_v26 = vadd.f32 %v7677_v19, %v3129_v0 }
 0x5c5   : > { %v3483_v30 = vpop.f32.mrf.mxu3 }
 0x5c6   : > { %v3484_v10 = vadd.f32 %v7834_v45, %v3483_v30  ;;  %v3328_v37 = vmax.f32 %v3264_v26, 0.0 }
 0x5c7   : > { %v2697_v43 = vpop.f32.mrf.mxu0 }
 0x5c8   : > { %v2698_v42 = vadd.f32 %v7762_v17, %v2697_v43  ;;  %v3643_v44 = vmax.f32 %v3484_v10, 0.0 }
 0x5c9   : > { %v3130_v15 = vpop.f32.mrf.mxu2 }
 0x5ca   : > { %v2787_v27 = vmax.f32 %v2698_v42, 0.0  ;;  %v3131_v58 = vadd.f32 %v3130_v15, %v7737_v1 }
 0x5cb   : > { %v7839_v25 = vpop.f32.mrf.mxu1 }
 0x5cc   : > { %v3265_v34 = vadd.f32 %v7677_v19, %v3131_v58  ;;  %v2845_v29 = vpack.c.bf16 %v2787_v27, %v2786_v32 }
 0x5cd   : > { %v3485_v36 = vpop.f32.mrf.mxu3 }
 0x5ce   : > { %v3329_v39 = vmax.f32 %v3265_v34, 0.0  ;;  %v3486_v40 = vadd.f32 %v7834_v45, %v3485_v36  ;;  %3025 = vmatmul.bf16.gmra.mxu1 %v2845_v29  ;;  %6253 = vmatmul.msk.bf16.gmra.mxu2 %vm1138_vm1, %v6840_v41 }
 0x5cf   : > { %v2700_v48 = vpop.f32.mrf.mxu0 }
 0x5d0   : > { %v3644_v59 = vmax.f32 %v3486_v40, 0.0  ;;  %v3400_v1 = vpack.c.bf16 %v3329_v39, %v3328_v37  ;;  %v2701_v52 = vadd.f32 %v7762_v17, %v2700_v48  ;;  %v6842_v40 = vld [vmem:[%s7028_s1 + $0xa0] sm:$0xff] }
 0x5d1   : > { %v3133_v33 = vpop.f32.mrf.mxu2 }
 0x5d2   : > { %v3724_v50 = vpack.c.bf16 %v3644_v59, %v3643_v44  ;;  %3527 = vmatmul.bf16.gmra.mxu3 %v3400_v1  ;;  %v3134_v53 = vadd.f32 %v3133_v33, %v7748_v31  ;;  %v2788_v56 = vmax.f32 %v2701_v52, 0.0 }
 0x5d3   : > { %v7846_v47 = vpop.f32.mrf.mxu1 }
 0x5d4   : > { %3815 = vmatmul.bf16.vlgmr.msra.gmra.mxu0 %v3724_v50  ;;  %v3266_v23 = vadd.f32 %v7677_v19, %v3134_v53 }
 0x5d5   : > { %v3488_v9 = vpop.f32.mrf.mxu3 }
 0x5d6   : > { %v3489_v60 = vadd.f32 %v7834_v45, %v3488_v9  ;;  %v3330_v31 = vmax.f32 %v3266_v23, 0.0 }
 0x5d7   : > { %v2702_v51 = vpop.f32.mrf.mxu0 }
 0x5d8   : > { %v2703_v54 = vadd.f32 %v7762_v17, %v2702_v51  ;;  %v3645_v4 = vmax.f32 %v3489_v60, 0.0 }
 0x5d9   : > { %v3135_v55 = vpop.f32.mrf.mxu2 }
 0x5da   : > { %v2789_v57 = vmax.f32 %v2703_v54, 0.0  ;;  %v3136_v61 = vadd.f32 %v3135_v55, %v7757_v38 }
 0x5db   : > { %v7853_v62 = vpop.f32.mrf.mxu1 }
 0x5dc   : > { %v3267_v7 = vadd.f32 %v7677_v19, %v3136_v61  ;;  %v2846_v2 = vpack.c.bf16 %v2789_v57, %v2788_v56 }
 0x5dd   : > { %v3490_v16 = vpop.f32.mrf.mxu3 }
 0x5de   : > { %v3331_v12 = vmax.f32 %v3267_v7, 0.0  ;;  %v3491_v3 = vadd.f32 %v7834_v45, %v3490_v16  ;;  %3030 = vmatmul.bf16.gmra.mxu1 %v2846_v2  ;;  %6254 = vmatmul.msk.bf16.gmra.mxu2 %vm1138_vm1, %v6841_v5  ;;  %v6843_v5 = vld [vmem:[%s7028_s1 + $0xa8] sm:$0xff] }
 0x5df   : > { %v2705_v6 = vpop.f32.mrf.mxu0 }
 0x5e0   : > { %v3646_v8 = vmax.f32 %v3491_v3, 0.0  ;;  %v3401_v38 = vpack.c.bf16 %v3331_v12, %v3330_v31  ;;  %v2706_v30 = vadd.f32 %v7762_v17, %v2705_v6 }
 0x5e1   : > { %v3138_v11 = vpop.f32.mrf.mxu2 }
 0x5e2   : > { %3532 = vmatmul.bf16.gmra.mxu3 %v3401_v38  ;;  %v3725_v18 = vpack.c.bf16 %v3646_v8, %v3645_v4  ;;  %v3139_v21 = vadd.f32 %v3138_v11, %v7770_v28  ;;  %v2790_v15 = vmax.f32 %v2706_v30, 0.0 }
 0x5e3   : > { %v7860_v14 = vpop.f32.mrf.mxu1 }
 0x5e4   : > { %3820 = vmatmul.bf16.gmra.mxu0 %v3725_v18  ;;  %v3268_v32 = vadd.f32 %v7677_v19, %v3139_v21  ;;  %v6761_v18 = vld [vmem:[%s9333_s19] sm:$0xff] }
 0x5e5   : > { %v3493_v22 = vpop.f32.mrf.mxu3  ;;  %4147 = vmatpush.bf16.msra.mxu1 %v6761_v18 }
 0x5e6   : > { %v3494_v10 = vadd.f32 %v7834_v45, %v3493_v22  ;;  %v3332_v28 = vmax.f32 %v3268_v32, 0.0 }
 0x5e7   : > { %v2707_v0 = vpop.f32.mrf.mxu0 }
 0x5e8   : > { %v2708_v43 = vadd.f32 %v7762_v17, %v2707_v0  ;;  %v3647_v48 = vmax.f32 %v3494_v10, 0.0 }
 0x5e9   : > { %v3140_v42 = vpop.f32.mrf.mxu2 }
 0x5ea   : > { %v2791_v26 = vmax.f32 %v2708_v43, 0.0  ;;  %v3141_v27 = vadd.f32 %v3140_v42, %v7776_v49  ;;  %v6775_v49 = vld [vmem:[%s9335_s21 + $0x30] sm:$0xff] }
 0x5eb   : > { %v7867_v58 = vpop.f32.mrf.mxu1  ;;  %4841 = vmatpush.bf16.msrb.mxu3 %v6775_v49  ;;  %v6844_v49 = vld [vmem:[%s7028_s1 + $0xb0] sm:$0xff] }
 0x5ec   : > { %v3269_v34 = vadd.f32 %v7677_v19, %v3141_v27  ;;  %v2847_v29 = vpack.c.bf16 %v2791_v26, %v2790_v15 }
 0x5ed   : > { %v3495_v36 = vpop.f32.mrf.mxu3 }
 0x5ee   : > { %v3333_v37 = vmax.f32 %v3269_v34, 0.0  ;;  %v3496_v39 = vadd.f32 %v7834_v45, %v3495_v36  ;;  %3035 = vmatmul.bf16.gmra.mxu1 %v2847_v29  ;;  %6255 = vmatmul.msk.bf16.gmra.mxu2 %vm1138_vm1, %v6842_v40 }
 0x5ef   : > { %v2710_v41 = vpop.f32.mrf.mxu0 }
 0x5f0   : > { %v3648_v44 = vmax.f32 %v3496_v39, 0.0  ;;  %v3402_v59 = vpack.c.bf16 %v3333_v37, %v3332_v28  ;;  %v2711_v52 = vadd.f32 %v7762_v17, %v2710_v41 }
 0x5f1   : > { %v3143_v1 = vpop.f32.mrf.mxu2 }
 0x5f2   : > { %3537 = vmatmul.bf16.gmra.mxu3 %v3402_v59  ;;  %v3726_v33 = vpack.c.bf16 %v3648_v44, %v3647_v48  ;;  %v3144_v53 = vadd.f32 %v3143_v1, %v7784_v20  ;;  %v2792_v56 = vmax.f32 %v2711_v52, 0.0 }
 0x5f3   : > { %v7877_v50 = vpop.f32.mrf.mxu1 }
 0x5f4   : > { %3825 = vmatmul.bf16.gmra.mxu0 %v3726_v33  ;;  %v3270_v23 = vadd.f32 %v7677_v19, %v3144_v53 }
 0x5f5   : > { %v3498_v9 = vpop.f32.mrf.mxu3 }
 0x5f6   : > { %v3499_v7 = vadd.f32 %v7834_v45, %v3498_v9  ;;  %v3334_v20 = vmax.f32 %v3270_v23, 0.0 }
 0x5f7   : > { %v2712_v51 = vpop.f32.mrf.mxu0 }
 0x5f8   : > { %v2713_v54 = vadd.f32 %v7762_v17, %v2712_v51  ;;  %v3649_v4 = vmax.f32 %v3499_v7, 0.0 }
 0x5f9   : > { %v3145_v55 = vpop.f32.mrf.mxu2 }
 0x5fa   : > { %v2793_v57 = vmax.f32 %v2713_v54, 0.0  ;;  %v3146_v61 = vadd.f32 %v3145_v55, %v7790_v13 }
 0x5fb   : > { %v7884_v60 = vpop.f32.mrf.mxu1 }
 0x5fc   : > { %v3271_v2 = vadd.f32 %v7677_v19, %v3146_v61  ;;  %v2848_v16 = vpack.c.bf16 %v2793_v57, %v2792_v56 }
 0x5fd   : > { %v3500_v31 = vpop.f32.mrf.mxu3 }
 0x5fe   : > { %v3335_v12 = vmax.f32 %v3271_v2, 0.0  ;;  %v3501_v3 = vadd.f32 %v7834_v45, %v3500_v31  ;;  %3040 = vmatmul.bf16.gmra.mxu1 %v2848_v16  ;;  %6256 = vmatmul.msk.bf16.gmra.mxu2 %vm1138_vm1, %v6843_v5  ;;  %v6845_v5 = vld [vmem:[%s7028_s1 + $0xb8] sm:$0xff] }
 0x5ff   : > { %v2715_v6 = vpop.f32.mrf.mxu0 }
 0x600   : > { %v3650_v8 = vmax.f32 %v3501_v3, 0.0  ;;  %v3403_v13 = vpack.c.bf16 %v3335_v12, %v3334_v20  ;;  %v2716_v21 = vadd.f32 %v7762_v17, %v2715_v6 }
 0x601   : > { %v3148_v38 = vpop.f32.mrf.mxu2 }
 0x602   : > { %3542 = vmatmul.bf16.gmra.mxu3 %v3403_v13  ;;  %v3727_v11 = vpack.c.bf16 %v3650_v8, %v3649_v4  ;;  %v3149_v0 = vadd.f32 %v3148_v38, %v7798_v35  ;;  %v2794_v32 = vmax.f32 %v2716_v21, 0.0 }
 0x603   : > { %v7894_v22 = vpop.f32.mrf.mxu1 }
 0x604   : > { %3830 = vmatmul.bf16.gmra.mxu0 %v3727_v11  ;;  %v3272_v26 = vadd.f32 %v7677_v19, %v3149_v0 }
 0x605   : > { %v3503_v30 = vpop.f32.mrf.mxu3 }
 0x606   : > { %v3504_v29 = vadd.f32 %v7834_v45, %v3503_v30  ;;  %v3336_v35 = vmax.f32 %v3272_v26, 0.0 }
 0x607   : > { %v2717_v43 = vpop.f32.mrf.mxu0 }
 0x608   : > { %v2718_v42 = vadd.f32 %v7762_v17, %v2717_v43  ;;  %v3651_v48 = vmax.f32 %v3504_v29, 0.0 }
 0x609   : > { %v3150_v15 = vpop.f32.mrf.mxu2 }
 0x60a   : > { %v2795_v27 = vmax.f32 %v2718_v42, 0.0  ;;  %v3151_v10 = vadd.f32 %v3150_v15, %v7810_v46 }
 0x60b   : > { %v7901_v34 = vpop.f32.mrf.mxu1 }
 0x60c   : > { %v3273_v36 = vadd.f32 %v7677_v19, %v3151_v10  ;;  %v2849_v28 = vpack.c.bf16 %v2795_v27, %v2794_v32 }
 0x60d   : > { %v3505_v37 = vpop.f32.mrf.mxu3 }
 0x60e   : > { %v3337_v39 = vmax.f32 %v3273_v36, 0.0  ;;  %v3506_v40 = vadd.f32 %v7834_v45, %v3505_v37  ;;  %3045 = vmatmul.bf16.gmra.mxu1 %v2849_v28  ;;  %6257 = vmatmul.msk.bf16.gmra.mxu2 %vm1138_vm1, %v6844_v49 }
 0x60f   : > { %v2720_v41 = vpop.f32.mrf.mxu0 }
 0x610   : > { %v3652_v44 = vmax.f32 %v3506_v40, 0.0  ;;  %v3404_v46 = vpack.c.bf16 %v3337_v39, %v3336_v35  ;;  %v2721_v52 = vadd.f32 %v7762_v17, %v2720_v41  ;;  %v6846_v40 = vld [vmem:[%s7028_s1 + $0xc0] sm:$0xff] }
 0x611   : > { %v3153_v59 = vpop.f32.mrf.mxu2 }
 0x612   : > { %3547 = vmatmul.bf16.gmra.mxu3 %v3404_v46  ;;  %v3728_v1 = vpack.c.bf16 %v3652_v44, %v3651_v48  ;;  %v3154_v53 = vadd.f32 %v3153_v59, %v7818_v63  ;;  %v2796_v56 = vmax.f32 %v2721_v52, 0.0 }
 0x613   : > { %v7908_v33 = vpop.f32.mrf.mxu1 }
 0x614   : > { %3835 = vmatmul.bf16.gmra.mxu0 %v3728_v1  ;;  %v3274_v23 = vadd.f32 %v7677_v19, %v3154_v53 }
 0x615   : > { %v3508_v9 = vpop.f32.mrf.mxu3 }
 0x616   : > { %v3509_v2 = vadd.f32 %v7834_v45, %v3508_v9  ;;  %v3338_v63 = vmax.f32 %v3274_v23, 0.0 }
 0x617   : > { %v2722_v51 = vpop.f32.mrf.mxu0 }
 0x618   : > { %v2723_v54 = vadd.f32 %v7762_v17, %v2722_v51  ;;  %v3653_v4 = vmax.f32 %v3509_v2, 0.0 }
 0x619   : > { %v3155_v55 = vpop.f32.mrf.mxu2 }
 0x61a   : > { %v2797_v57 = vmax.f32 %v2723_v54, 0.0  ;;  %v3156_v61 = vadd.f32 %v3155_v55, %v7827_v24 }
 0x61b   : > { %v7915_v7 = vpop.f32.mrf.mxu1 }
 0x61c   : > { %v3275_v16 = vadd.f32 %v7677_v19, %v3156_v61  ;;  %v2850_v31 = vpack.c.bf16 %v2797_v57, %v2796_v56 }
 0x61d   : > { %v3510_v20 = vpop.f32.mrf.mxu3 }
 0x61e   : > { %v3339_v12 = vmax.f32 %v3275_v16, 0.0  ;;  %v3511_v3 = vadd.f32 %v7834_v45, %v3510_v20  ;;  %3050 = vmatmul.bf16.gmra.mxu1 %v2850_v31  ;;  %6258 = vmatmul.msk.bf16.gmra.mxu2 %vm1138_vm1, %v6845_v5  ;;  %v6847_v5 = vld [vmem:[%s7028_s1 + $0xc8] sm:$0xff] }
 0x61f   : > { %v2725_v6 = vpop.f32.mrf.mxu0 }
 0x620   : > { %v3654_v8 = vmax.f32 %v3511_v3, 0.0  ;;  %v3405_v24 = vpack.c.bf16 %v3339_v12, %v3338_v63  ;;  %v2726_v30 = vadd.f32 %v7762_v17, %v2725_v6 }
 0x621   : > { %v3158_v13 = vpop.f32.mrf.mxu2 }
 0x622   : > { %3552 = vmatmul.bf16.gmra.mxu3 %v3405_v24  ;;  %v3729_v38 = vpack.c.bf16 %v3654_v8, %v3653_v4  ;;  %v3159_v21 = vadd.f32 %v3158_v13, %v7839_v25  ;;  %v2798_v15 = vmax.f32 %v2726_v30, 0.0  ;;  %v6789_v24 = vld [vmem:[%s9339_s25 + $0x38] sm:$0xff] }
 0x623   : > { %v7922_v11 = vpop.f32.mrf.mxu1  ;;  %5245 = vmatpush.bf16.msrb.mxu0 %v6789_v24 }
 0x624   : > { %3840 = vmatmul.bf16.gmra.mxu0 %v3729_v38  ;;  %v3276_v32 = vadd.f32 %v7677_v19, %v3159_v21 }
 0x625   : > { %v3513_v18 = vpop.f32.mrf.mxu3 }
 0x626   : > { %v3514_v29 = vadd.f32 %v7834_v45, %v3513_v18  ;;  %v3340_v25 = vmax.f32 %v3276_v32, 0.0 }
 0x627   : > { %v2727_v0 = vpop.f32.mrf.mxu0 }
 0x628   : > { %v2728_v43 = vadd.f32 %v7762_v17, %v2727_v0  ;;  %v3655_v41 = vmax.f32 %v3514_v29, 0.0 }
 0x629   : > { %v3160_v42 = vpop.f32.mrf.mxu2 }
 0x62a   : > { %v2799_v26 = vmax.f32 %v2728_v43, 0.0  ;;  %v3161_v27 = vadd.f32 %v3160_v42, %v7846_v47  ;;  %v6774_v47 = vld [vmem:[%s9335_s21 + $0x28] sm:$0xff] }
 0x62b   : > { %v7929_v10 = vpop.f32.mrf.mxu1  ;;  %4842 = vmatpush.bf16.msrb.mxu3 %v6774_v47  ;;  %v6849_v47 = vld [vmem:[%s7028_s1 + $0xd0] sm:$0xff] }
 0x62c   : > { %v3277_v36 = vadd.f32 %v7677_v19, %v3161_v27  ;;  %v2851_v28 = vpack.c.bf16 %v2799_v26, %v2798_v15  ;;  %v7967_v26 = vld [vmem:[%s9328_s14] ss:$0 sm:$0xff] }
 0x62d   : > { %v3515_v37 = vpop.f32.mrf.mxu3 }
 0x62e   : > { %v3341_v35 = vmax.f32 %v3277_v36, 0.0  ;;  %v3516_v39 = vadd.f32 %v7834_v45, %v3515_v37  ;;  %3055 = vmatmul.bf16.gmra.mxu1 %v2851_v28  ;;  %6259 = vmatmul.msk.bf16.gmra.mxu2 %vm1138_vm1, %v6846_v40 }
 0x62f   : > { %v2730_v49 = vpop.f32.mrf.mxu0 }
 0x630   : > { %v3656_v48 = vmax.f32 %v3516_v39, 0.0  ;;  %v3406_v44 = vpack.c.bf16 %v3341_v35, %v3340_v25  ;;  %v2731_v52 = vadd.f32 %v7762_v17, %v2730_v49 }
 0x631   : > { %v3163_v46 = vpop.f32.mrf.mxu2 }
 0x632   : > { %3557 = vmatmul.bf16.gmra.mxu3 %v3406_v44  ;;  %v3730_v59 = vpack.c.bf16 %v3656_v48, %v3655_v41  ;;  %v3164_v53 = vadd.f32 %v3163_v46, %v7853_v62  ;;  %v2800_v56 = vmax.f32 %v2731_v52, 0.0 }
 0x633   : > { %v7939_v1 = vpop.f32.mrf.mxu1 }
 0x634   : > { %3845 = vmatmul.bf16.gmra.mxu0 %v3730_v59  ;;  %v3278_v23 = vadd.f32 %v7677_v19, %v3164_v53 }
 0x635   : > { %v3518_v9 = vpop.f32.mrf.mxu3 }
 0x636   : > { %v3519_v16 = vadd.f32 %v7834_v45, %v3518_v9  ;;  %v3342_v62 = vmax.f32 %v3278_v23, 0.0  ;;  %v7983_v9 = vld [vmem:[%s9332_s18] ss:$0 sm:$0xff] }
 0x637   : > { %v2732_v51 = vpop.f32.mrf.mxu0 }
 0x638   : > { %v2733_v54 = vadd.f32 %v7762_v17, %v2732_v51  ;;  %v3657_v4 = vmax.f32 %v3519_v16, 0.0 }
 0x639   : > { %v3165_v55 = vpop.f32.mrf.mxu2 }
 0x63a   : > { %v2801_v57 = vmax.f32 %v2733_v54, 0.0  ;;  %v3166_v61 = vadd.f32 %v3165_v55, %v7860_v14 }
 0x63b   : > { %v7946_v2 = vpop.f32.mrf.mxu1 }
 0x63c   : > { %v3279_v31 = vadd.f32 %v7677_v19, %v3166_v61  ;;  %v2852_v20 = vpack.c.bf16 %v2801_v57, %v2800_v56  ;;  %v6781_v19 = vld [vmem:[%s9338_s24 + $0x18] sm:$0xff] }
 0x63d   : > { %v3520_v63 = vpop.f32.mrf.mxu3  ;;  %5539 = vmatpush.bf16.msrb.mxu1 %v6781_v19 }
 0x63e   : > { %v3343_v12 = vmax.f32 %v3279_v31, 0.0  ;;  %v3521_v3 = vadd.f32 %v7834_v45, %v3520_v63  ;;  %3060 = vmatmul.bf16.gmra.mxu1 %v2852_v20  ;;  %6260 = vmatmul.msk.bf16.gmra.mxu2 %vm1138_vm1, %v6847_v5 }
 0x63f   : > { %v2735_v6 = vpop.f32.mrf.mxu0 }
 0x640   : > { %v3658_v8 = vmax.f32 %v3521_v3, 0.0  ;;  %v3407_v14 = vpack.c.bf16 %v3343_v12, %v3342_v62  ;;  %v2736_v21 = vadd.f32 %v7762_v17, %v2735_v6  ;;  %v6850_v6 = vld [vmem:[%s7028_s1 + $0xd8] sm:$0xff] }
 0x641   : > { %v3168_v13 = vpop.f32.mrf.mxu2 }
 0x642   : > { %3562 = vmatmul.bf16.gmra.mxu3 %v3407_v14  ;;  %v3731_v38 = vpack.c.bf16 %v3658_v8, %v3657_v4  ;;  %v3169_v0 = vadd.f32 %v3168_v13, %v7867_v58  ;;  %v2802_v32 = vmax.f32 %v2736_v21, 0.0 }
 0x643   : > { %v7959_v18 = vpop.f32.mrf.mxu1 }
 0x644   : > { %3850 = vmatmul.bf16.gmra.mxu0 %v3731_v38  ;;  %v3280_v27 = vadd.f32 %v7967_v26, %v3169_v0 }
 0x645   : > { %v3523_v30 = vpop.f32.mrf.mxu3 }
 0x646   : > { %v3524_v58 = vadd.f32 %v7834_v45, %v3523_v30  ;;  %v3344_v35 = vmax.f32 %v3280_v27, 0.0 }
 0x647   : > { %v2737_v43 = vpop.f32.mrf.mxu0 }
 0x648   : > { %v2738_v42 = vadd.f32 %v7762_v17, %v2737_v43  ;;  %v3659_v49 = vmax.f32 %v3524_v58, 0.0 }
 0x649   : > { %v3170_v15 = vpop.f32.mrf.mxu2 }
 0x64a   : > { %v2803_v29 = vmax.f32 %v2738_v42, 0.0  ;;  %v3171_v36 = vadd.f32 %v3170_v15, %v7877_v50 }
 0x64b   : > { %v7971_v28 = vpop.f32.mrf.mxu1 }
 0x64c   : > { %v3281_v37 = vadd.f32 %v7967_v26, %v3171_v36  ;;  %v2853_v17 = vpack.c.bf16 %v2803_v29, %v2802_v32 }
 0x64d   : > { %v3525_v25 = vpop.f32.mrf.mxu3 }
 0x64e   : > { %v3345_v39 = vmax.f32 %v3281_v37, 0.0  ;;  %v3526_v40 = vadd.f32 %v7834_v45, %v3525_v25  ;;  %3065 = vmatmul.bf16.gmra.mxu1 %v2853_v17  ;;  %6261 = vmatmul.msk.bf16.gmra.mxu2 %vm1138_vm1, %v6849_v47 }
 0x650   : > { %v3660_v41 = vmax.f32 %v3526_v40, 0.0  ;;  %v3408_v48 = vpack.c.bf16 %v3345_v39, %v3344_v35  ;;  %v6851_v39 = vld [vmem:[%s7028_s1 + $0xe0] sm:$0xff] }
 0x651   : > { %v3173_v50 = vpop.f32.mrf.mxu2  ;;  %v3816_v44 = vpop.f32.mrf.mxu0 }
 0x652   : > { %3567 = vmatmul.bf16.gmra.mxu3 %v3408_v48  ;;  %v3732_v46 = vpack.c.bf16 %v3660_v41, %v3659_v49  ;;  %v3174_v53 = vadd.f32 %v3173_v50, %v7884_v60  ;;  %v3817_v51 = vadd.f32 %v7983_v9, %v3816_v44 }
 0x653   : > { %v7978_v59 = vpop.f32.mrf.mxu1 }
 0x654   : > { %3855 = vmatmul.bf16.gmra.mxu0 %v3732_v46  ;;  %v3282_v56 = vadd.f32 %v7967_v26, %v3174_v53  ;;  %v3976_v16 = vmax.f32 %v3817_v51, 0.0 }
 0x655   : > { %v3528_v52 = vpop.f32.mrf.mxu3 }
 0x656   : > { %v3529_v31 = vadd.f32 %v7834_v45, %v3528_v52  ;;  %v3346_v62 = vmax.f32 %v3282_v56, 0.0 }
 0x659   : > { %v3175_v54 = vpop.f32.mrf.mxu2  ;;  %v3818_v55 = vpop.f32.mrf.mxu0 }
 0x65a   : > { %v3176_v23 = vadd.f32 %v3175_v54, %v7894_v22  ;;  %v3819_v57 = vadd.f32 %v7983_v9, %v3818_v55  ;;  %v3661_v22 = vmax.f32 %v3529_v31, 0.0 }
 0x65b   : > { %v7990_v61 = vpop.f32.mrf.mxu1 }
 0x65c   : > { %v3283_v20 = vadd.f32 %v7967_v26, %v3176_v23  ;;  %v3977_v63 = vmax.f32 %v3819_v57, 0.0 }
 0x65d   : > { %v3530_v60 = vpop.f32.mrf.mxu3 }
 0x65e   : > { %v3347_v12 = vmax.f32 %v3283_v20, 0.0  ;;  %v7994_v3 = vpack.c.bf16 %v3977_v63, %v3976_v16  ;;  %v3531_v5 = vadd.f32 %v7834_v45, %v3530_v60  ;;  %6262 = vmatmul.msk.bf16.gmra.mxu2 %vm1138_vm1, %v6850_v6  ;;  %v6852_v6 = vld [vmem:[%s7028_s1 + $0xe8] sm:$0xff] }
 0x660   : > { %v3662_v4 = vmax.f32 %v3531_v5, 0.0  ;;  %4148 = vmatmul.bf16.vlgmr.msra.gmra.mxu1 %v7994_v3  ;;  %v3409_v8 = vpack.c.bf16 %v3347_v12, %v3346_v62 }
 0x661   : > { %v3178_v14 = vpop.f32.mrf.mxu2  ;;  %v3821_v24 = vpop.f32.mrf.mxu0 }
 0x662   : > { %3572 = vmatmul.bf16.gmra.mxu3 %v3409_v8  ;;  %v3733_v19 = vpack.c.bf16 %v3662_v4, %v3661_v22  ;;  %v3179_v30 = vadd.f32 %v3178_v14, %v7901_v34  ;;  %v3822_v21 = vadd.f32 %v7983_v9, %v3821_v24  ;;  %v6788_v14 = vld [vmem:[%s9339_s25 + $0x30] sm:$0xff] }
 0x663   : > { %v8000_v13 = vpop.f32.mrf.mxu1  ;;  %5246 = vmatpush.bf16.msrb.mxu0 %v6788_v14 }
 0x664   : > { %3860 = vmatmul.bf16.gmra.mxu0 %v3733_v19  ;;  %v3284_v42 = vadd.f32 %v7967_v26, %v3179_v30  ;;  %v3978_v29 = vmax.f32 %v3822_v21, 0.0 }
 0x665   : > { %v3533_v38 = vpop.f32.mrf.mxu3 }
 0x666   : > { %v3534_v36 = vadd.f32 %v7834_v45, %v3533_v38  ;;  %v3348_v17 = vmax.f32 %v3284_v42, 0.0 }
 0x668   : > { %v3663_v47 = vmax.f32 %v3534_v36, 0.0 }
 0x669   : > { %v3180_v0 = vpop.f32.mrf.mxu2  ;;  %v3823_v43 = vpop.f32.mrf.mxu0 }
 0x66a   : > { %v3181_v15 = vadd.f32 %v3180_v0, %v7908_v33  ;;  %v3824_v32 = vadd.f32 %v7983_v9, %v3823_v43  ;;  %v6773_v33 = vld [vmem:[%s9335_s21 + $0x20] sm:$0xff] }
 0x66b   : > { %v8007_v27 = vpop.f32.mrf.mxu1  ;;  %4843 = vmatpush.bf16.msrb.mxu3 %v6773_v33 }
 0x66c   : > { %v3285_v58 = vadd.f32 %v7967_v26, %v3181_v15  ;;  %v3979_v37 = vmax.f32 %v3824_v32, 0.0 }
 0x66d   : > { %v3535_v34 = vpop.f32.mrf.mxu3 }
 0x66e   : > { %v3349_v25 = vmax.f32 %v3285_v58, 0.0  ;;  %v3536_v35 = vadd.f32 %v7834_v45, %v3535_v34  ;;  %6263 = vmatmul.msk.bf16.gmra.mxu2 %vm1138_vm1, %v6851_v39  ;;  %v8014_v40 = vpack.c.bf16 %v3979_v37, %v3978_v29 }
 0x670   : > { %v3664_v49 = vmax.f32 %v3536_v35, 0.0  ;;  %4153 = vmatmul.bf16.gmra.mxu1 %v8014_v40  ;;  %v3410_v41 = vpack.c.bf16 %v3349_v25, %v3348_v17 }
 0x671   : > { %v3183_v48 = vpop.f32.mrf.mxu2  ;;  %v3826_v50 = vpop.f32.mrf.mxu0 }
 0x672   : > { %3577 = vmatmul.bf16.gmra.mxu3 %v3410_v41  ;;  %v3734_v44 = vpack.c.bf16 %v3664_v49, %v3663_v47  ;;  %v3184_v53 = vadd.f32 %v3183_v48, %v7915_v7  ;;  %v3827_v51 = vadd.f32 %v7983_v9, %v3826_v50  ;;  %v6853_v47 = vld [vmem:[%s7028_s1 + $0xf0] sm:$0xff] }
 0x673   : > { %v8020_v46 = vpop.f32.mrf.mxu1 }
 0x674   : > { %3865 = vmatmul.bf16.gmra.mxu0 %v3734_v44  ;;  %v3286_v56 = vadd.f32 %v7967_v26, %v3184_v53  ;;  %v3980_v31 = vmax.f32 %v3827_v51, 0.0 }
 0x675   : > { %v3538_v52 = vpop.f32.mrf.mxu3 }
 0x676   : > { %v3539_v20 = vadd.f32 %v7834_v45, %v3538_v52  ;;  %v3350_v62 = vmax.f32 %v3286_v56, 0.0 }
 0x679   : > { %v3185_v54 = vpop.f32.mrf.mxu2  ;;  %v3828_v55 = vpop.f32.mrf.mxu0 }
 0x67a   : > { %v3186_v23 = vadd.f32 %v3185_v54, %v7922_v11  ;;  %v3829_v57 = vadd.f32 %v7983_v9, %v3828_v55  ;;  %v3665_v11 = vmax.f32 %v3539_v20, 0.0 }
 0x67b   : > { %v8027_v16 = vpop.f32.mrf.mxu1 }
 0x67c   : > { %v3287_v63 = vadd.f32 %v7967_v26, %v3186_v23  ;;  %v3981_v60 = vmax.f32 %v3829_v57, 0.0 }
 0x67d   : > { %v3540_v7 = vpop.f32.mrf.mxu3 }
 0x67e   : > { %v3351_v12 = vmax.f32 %v3287_v63, 0.0  ;;  %v3541_v5 = vadd.f32 %v7834_v45, %v3540_v7  ;;  %6264 = vmatmul.msk.bf16.gmra.mxu2 %vm1138_vm1, %v6852_v6  ;;  %v8034_v22 = vpack.c.bf16 %v3981_v60, %v3980_v31 }
 0x680   : > { %v3666_v4 = vmax.f32 %v3541_v5, 0.0  ;;  %4158 = vmatmul.bf16.gmra.mxu1 %v8034_v22  ;;  %v3411_v8 = vpack.c.bf16 %v3351_v12, %v3350_v62 }
 0x681   : > { %v3188_v24 = vpop.f32.mrf.mxu2  ;;  %v3831_v19 = vpop.f32.mrf.mxu0 }
 0x682   : > { %3582 = vmatmul.bf16.gmra.mxu3 %v3411_v8  ;;  %v3735_v38 = vpack.c.bf16 %v3666_v4, %v3665_v11  ;;  %v3189_v0 = vadd.f32 %v3188_v24, %v7929_v10  ;;  %v3832_v43 = vadd.f32 %v7983_v9, %v3831_v19  ;;  %v6854_v4 = vld [vmem:[%s7028_s1 + $0xf8] sm:$0xff]  ;;  %s8902_s1 = scalar_lea.vmem %s9341_s27, %s5914_s0 }
 0x683   : > { %v8040_v30 = vpop.f32.mrf.mxu1 }
 0x684   : > { %3870 = vmatmul.bf16.gmra.mxu0 %v3735_v38  ;;  %v3288_v32 = vadd.f32 %v7967_v26, %v3189_v0  ;;  %v3982_v37 = vmax.f32 %v3832_v43, 0.0 }
 0x685   : > { %v3543_v21 = vpop.f32.mrf.mxu3 }
 0x686   : > { %v3544_v34 = vadd.f32 %v7834_v45, %v3543_v21  ;;  %v3352_v35 = vmax.f32 %v3288_v32, 0.0 }
 0x689   : > { %v3190_v42 = vpop.f32.mrf.mxu2  ;;  %v3833_v15 = vpop.f32.mrf.mxu0 }
 0x68a   : > { %v3191_v29 = vadd.f32 %v3190_v42, %v7939_v1  ;;  %v3834_v36 = vadd.f32 %v7983_v9, %v3833_v15  ;;  %v3667_v1 = vmax.f32 %v3544_v34, 0.0 }
 0x68b   : > { %v8047_v58 = vpop.f32.mrf.mxu1 }
 0x68c   : > { %v3289_v17 = vadd.f32 %v7967_v26, %v3191_v29  ;;  %v3983_v25 = vmax.f32 %v3834_v36, 0.0 }
 0x68d   : > { %v3545_v10 = vpop.f32.mrf.mxu3 }
 0x68e   : > { %v3353_v39 = vmax.f32 %v3289_v17, 0.0  ;;  %v3546_v33 = vadd.f32 %v7834_v45, %v3545_v10  ;;  %6265 = vmatmul.msk.bf16.gmra.mxu2 %vm1138_vm1, %v6853_v47  ;;  %v8054_v49 = vpack.c.bf16 %v3983_v25, %v3982_v37 }
 0x690   : > { %v3668_v41 = vmax.f32 %v3546_v33, 0.0  ;;  %4163 = vmatmul.bf16.gmra.mxu1 %v8054_v49  ;;  %v3412_v48 = vpack.c.bf16 %v3353_v39, %v3352_v35 }
 0x691   : > { %v3193_v50 = vpop.f32.mrf.mxu2  ;;  %v3836_v44 = vpop.f32.mrf.mxu0 }
 0x692   : > { %3587 = vmatmul.bf16.gmra.mxu3 %v3412_v48  ;;  %v3736_v52 = vpack.c.bf16 %v3668_v41, %v3667_v1  ;;  %v3194_v54 = vadd.f32 %v3193_v50, %v7946_v2  ;;  %v3837_v55 = vadd.f32 %v7983_v9, %v3836_v44 }
 0x693   : > { %v8057_v53 = vpop.f32.mrf.mxu1 }
 0x694   : > { %3875 = vmatmul.bf16.gmra.mxu0 %v3736_v52  ;;  %v3290_v57 = vadd.f32 %v7967_v26, %v3194_v54  ;;  %v3984_v60 = vmax.f32 %v3837_v55, 0.0 }
 0x695   : > { %v3548_v51 = vpop.f32.mrf.mxu3 }
 0x696   : > { %v3549_v7 = vadd.f32 %v7834_v45, %v3548_v51  ;;  %v3354_v5 = vmax.f32 %v3290_v57, 0.0 }
 0x699   : > { %v3195_v56 = vpop.f32.mrf.mxu2  ;;  %v3838_v23 = vpop.f32.mrf.mxu0 }
 0x69a   : > { %v3196_v31 = vadd.f32 %v3195_v56, %v7959_v18  ;;  %v3839_v20 = vadd.f32 %v7983_v9, %v3838_v23  ;;  %v3669_v18 = vmax.f32 %v3549_v7, 0.0 }
 0x69b   : > { %v8064_v63 = vpop.f32.mrf.mxu1 }
 0x69c   : > { %v3291_v62 = vadd.f32 %v7967_v26, %v3196_v31  ;;  %v3985_v12 = vmax.f32 %v3839_v20, 0.0 }
 0x69d   : > { %v3550_v2 = vpop.f32.mrf.mxu3 }
 0x69e   : > { %v3355_v6 = vmax.f32 %v3291_v62, 0.0  ;;  %v3551_v11 = vadd.f32 %v7834_v45, %v3550_v2  ;;  %6266 = vmatmul.msk.bf16.gmra.mxu2 %vm1138_vm1, %v6854_v4  ;;  %v8071_v8 = vpack.c.bf16 %v3985_v12, %v3984_v60 }
 0x6a0   : > { %v3670_v14 = vmax.f32 %v3551_v11, 0.0  ;;  %4168 = vmatmul.bf16.gmra.mxu1 %v8071_v8  ;;  %v3413_v24 = vpack.c.bf16 %v3355_v6, %v3354_v5 }
 0x6a1   : > { %v3198_v19 = vpop.f32.mrf.mxu2  ;;  %v3841_v38 = vpop.f32.mrf.mxu0 }
 0x6a2   : > { %3592 = vmatmul.bf16.gmra.mxu3 %v3413_v24  ;;  %v3737_v21 = vpack.c.bf16 %v3670_v14, %v3669_v18  ;;  %v3199_v42 = vadd.f32 %v3198_v19, %v7971_v28  ;;  %v3842_v15 = vadd.f32 %v7983_v9, %v3841_v38 }
 0x6a3   : > { %v8074_v0 = vpop.f32.mrf.mxu1 }
 0x6a4   : > { %3880 = vmatmul.bf16.gmra.mxu0 %v3737_v21  ;;  %v3292_v36 = vadd.f32 %v7967_v26, %v3199_v42  ;;  %v3986_v25 = vmax.f32 %v3842_v15, 0.0  ;;  %v6787_v21 = vld [vmem:[%s9339_s25 + $0x28] sm:$0xff] }
 0x6a5   : > { %v3553_v43 = vpop.f32.mrf.mxu3  ;;  %5247 = vmatpush.bf16.msrb.mxu0 %v6787_v21 }
 0x6a6   : > { %v3554_v10 = vadd.f32 %v7834_v45, %v3553_v43  ;;  %v3356_v28 = vmax.f32 %v3292_v36, 0.0  ;;  %v6780_v43 = vld [vmem:[%s9338_s24 + $0x10] sm:$0xff] }
 0x6a7   : > { %5540 = vmatpush.bf16.msrb.mxu1 %v6780_v43 }
 0x6a8   : > { %v3671_v48 = vmax.f32 %v3554_v10, 0.0 }
 0x6a9   : > { %v3200_v32 = vpop.f32.mrf.mxu2  ;;  %v3843_v29 = vpop.f32.mrf.mxu0 }
 0x6aa   : > { %v3201_v37 = vadd.f32 %v3200_v32, %v7978_v59  ;;  %v3844_v34 = vadd.f32 %v7983_v9, %v3843_v29  ;;  %v6772_v59 = vld [vmem:[%s9335_s21 + $0x18] sm:$0xff] }
 0x6ab   : > { %v8081_v17 = vpop.f32.mrf.mxu1  ;;  %4844 = vmatpush.bf16.msrb.mxu3 %v6772_v59 }
 0x6ac   : > { %v3293_v35 = vadd.f32 %v7967_v26, %v3201_v37  ;;  %v3987_v39 = vmax.f32 %v3844_v34, 0.0 }
 0x6ad   : > { %v3555_v33 = vpop.f32.mrf.mxu3 }
 0x6ae   : > { %v3357_v47 = vmax.f32 %v3293_v35, 0.0  ;;  %v3556_v1 = vadd.f32 %v7834_v45, %v3555_v33  ;;  %v8086_v41 = vpack.c.bf16 %v3987_v39, %v3986_v25 }
 0x6b0   : > { %v3672_v50 = vmax.f32 %v3556_v1, 0.0  ;;  %4173 = vmatmul.bf16.gmra.mxu1 %v8086_v41  ;;  %v3414_v44 = vpack.c.bf16 %v3357_v47, %v3356_v28 }
 0x6b1   : > { %v3203_v52 = vpop.f32.mrf.mxu2  ;;  %v3846_v51 = vpop.f32.mrf.mxu0 }
 0x6b2   : > { %3597 = vmatmul.bf16.gmra.mxu3 %v3414_v44  ;;  %v3738_v54 = vpack.c.bf16 %v3672_v50, %v3671_v48  ;;  %v3204_v23 = vadd.f32 %v3203_v52, %v7990_v61  ;;  %v3847_v57 = vadd.f32 %v7983_v9, %v3846_v51 }
 0x6b3   : > { %v8092_v55 = vpop.f32.mrf.mxu1 }
 0x6b4   : > { %3885 = vmatmul.bf16.gmra.mxu0 %v3738_v54  ;;  %v3294_v60 = vadd.f32 %v7967_v26, %v3204_v23  ;;  %v3988_v2 = vmax.f32 %v3847_v57, 0.0 }
 0x6b5   : > { %v3558_v56 = vpop.f32.mrf.mxu3 }
 0x6b6   : > { %v3559_v5 = vadd.f32 %v7834_v45, %v3558_v56  ;;  %v3358_v61 = vmax.f32 %v3294_v60, 0.0 }
 0x6b8   : > { %v3673_v19 = vmax.f32 %v3559_v5, 0.0 }
 0x6b9   : > { %v3205_v31 = vpop.f32.mrf.mxu2  ;;  %v3848_v20 = vpop.f32.mrf.mxu0 }
 0x6ba   : > { %v3206_v7 = vadd.f32 %v3205_v31, %v8000_v13  ;;  %v3849_v62 = vadd.f32 %v7983_v9, %v3848_v20 }
 0x6bb   : > { %v8099_v12 = vpop.f32.mrf.mxu1 }
 0x6bc   : > { %v3295_v6 = vadd.f32 %v7967_v26, %v3206_v7  ;;  %v3989_v11 = vmax.f32 %v3849_v62, 0.0 }
 0x6bd   : > { %v3560_v4 = vpop.f32.mrf.mxu3 }
 0x6be   : > { %v3359_v18 = vmax.f32 %v3295_v6, 0.0  ;;  %v3561_v14 = vadd.f32 %v7834_v45, %v3560_v4  ;;  %v8104_v24 = vpack.c.bf16 %v3989_v11, %v3988_v2 }
 0x6c0   : > { %v3674_v38 = vmax.f32 %v3561_v14, 0.0  ;;  %4178 = vmatmul.bf16.gmra.mxu1 %v8104_v24  ;;  %v3415_v13 = vpack.c.bf16 %v3359_v18, %v3358_v61  ;;  %v8138_v61 = vld [vmem:[%s9330_s16] ss:$0 sm:$0xff] }
 0x6c1   : > { %v3208_v42 = vpop.f32.mrf.mxu2  ;;  %v3851_v15 = vpop.f32.mrf.mxu0 }
 0x6c2   : > { %3602 = vmatmul.bf16.gmra.mxu3 %v3415_v13  ;;  %v3739_v32 = vpack.c.bf16 %v3674_v38, %v3673_v19  ;;  %v3209_v37 = vadd.f32 %v3208_v42, %v8007_v27  ;;  %v3852_v34 = vadd.f32 %v7983_v9, %v3851_v15 }
 0x6c3   : > { %v8113_v29 = vpop.f32.mrf.mxu1 }
 0x6c4   : > { %3890 = vmatmul.bf16.gmra.mxu0 %v3739_v32  ;;  %v3296_v35 = vadd.f32 %v7967_v26, %v3209_v37  ;;  %v3990_v47 = vmax.f32 %v3852_v34, 0.0  ;;  %v8149_v34 = vld [vmem:[%s9334_s20] ss:$0 sm:$0xff] }
 0x6c5   : > { %v3563_v36 = vpop.f32.mrf.mxu3 }
 0x6c6   : > { %v3564_v1 = vadd.f32 %v7834_v45, %v3563_v36  ;;  %v3360_v27 = vmax.f32 %v3296_v35, 0.0 }
 0x6c8   : > { %v3675_v54 = vmax.f32 %v3564_v1, 0.0 }
 0x6c9   : > { %v3210_v25 = vpop.f32.mrf.mxu2  ;;  %v3853_v10 = vpop.f32.mrf.mxu0 }
 0x6ca   : > { %v3211_v39 = vadd.f32 %v3210_v25, %v8020_v46  ;;  %v3854_v33 = vadd.f32 %v7983_v9, %v3853_v10 }
 0x6cb   : > { %v8120_v28 = vpop.f32.mrf.mxu1 }
 0x6cc   : > { %v3297_v59 = vadd.f32 %v7967_v26, %v3211_v39  ;;  %v3991_v48 = vmax.f32 %v3854_v33, 0.0 }
 0x6cd   : > { %v3565_v50 = vpop.f32.mrf.mxu3 }
 0x6ce   : > { %v3361_v44 = vmax.f32 %v3297_v59, 0.0  ;;  %v3566_v52 = vadd.f32 %v7834_v45, %v3565_v50  ;;  %v8125_v51 = vpack.c.bf16 %v3991_v48, %v3990_v47 }
 0x6d0   : > { %v3676_v56 = vmax.f32 %v3566_v52, 0.0  ;;  %4183 = vmatmul.bf16.gmra.mxu1 %v8125_v51  ;;  %v3416_v46 = vpack.c.bf16 %v3361_v44, %v3360_v27 }
 0x6d1   : > { %v3213_v23 = vpop.f32.mrf.mxu2  ;;  %v3856_v57 = vpop.f32.mrf.mxu0 }
 0x6d2   : > { %3607 = vmatmul.bf16.gmra.mxu3 %v3416_v46  ;;  %v3740_v31 = vpack.c.bf16 %v3676_v56, %v3675_v54  ;;  %v3214_v7 = vadd.f32 %v3213_v23, %v8027_v16  ;;  %v3857_v62 = vadd.f32 %v7983_v9, %v3856_v57 }
 0x6d3   : > { %v8128_v20 = vpop.f32.mrf.mxu1 }
 0x6d4   : > { %3895 = vmatmul.bf16.gmra.mxu0 %v3740_v31  ;;  %v3298_v5 = vadd.f32 %v7967_v26, %v3214_v7  ;;  %v3992_v4 = vmax.f32 %v3857_v62, 0.0 }
 0x6d5   : > { %v3568_v60 = vpop.f32.mrf.mxu3 }
 0x6d6   : > { %v3569_v18 = vadd.f32 %v8138_v61, %v3568_v60  ;;  %v3362_v13 = vmax.f32 %v3298_v5, 0.0 }
 0x6d8   : > { %v3677_v42 = vmax.f32 %v3569_v18, 0.0 }
 0x6d9   : > { %v3215_v45 = vpop.f32.mrf.mxu2  ;;  %v3858_v2 = vpop.f32.mrf.mxu0 }
 0x6da   : > { %v3216_v6 = vadd.f32 %v3215_v45, %v8040_v30  ;;  %v3859_v11 = vadd.f32 %v7983_v9, %v3858_v2 }
 0x6dc   : > { %v3299_v16 = vadd.f32 %v7967_v26, %v3216_v6  ;;  %v3993_v14 = vmax.f32 %v3859_v11, 0.0 }
 0x6dd   : > { %v3570_v19 = vpop.f32.mrf.mxu3  ;;  %v4149_v38 = vpop.f32.mrf.mxu1 }
 0x6de   : > { %v3363_v21 = vmax.f32 %v3299_v16, 0.0  ;;  %v3571_v43 = vadd.f32 %v8138_v61, %v3570_v19  ;;  %v8143_v30 = vpack.c.bf16 %v3993_v14, %v3992_v4  ;;  %v8152_v39 = vadd.f32 %v8149_v34, %v4149_v38 }
 0x6e0   : > { %v3678_v15 = vmax.f32 %v3571_v43, 0.0  ;;  %4188 = vmatmul.bf16.gmra.mxu1 %v8143_v30  ;;  %v3417_v32 = vpack.c.bf16 %v3363_v21, %v3362_v13 }
 0x6e1   : > { %v3218_v36 = vpop.f32.mrf.mxu2  ;;  %v3861_v37 = vpop.f32.mrf.mxu0 }
 0x6e2   : > { %3612 = vmatmul.bf16.gmra.mxu3 %v3417_v32  ;;  %v3741_v25 = vpack.c.bf16 %v3678_v15, %v3677_v42  ;;  %v3219_v33 = vadd.f32 %v3218_v36, %v8047_v58  ;;  %v3862_v1 = vadd.f32 %v7983_v9, %v3861_v37 }
 0x6e4   : > { %3900 = vmatmul.bf16.gmra.mxu0 %v3741_v25  ;;  %v3300_v27 = vadd.f32 %v7967_v26, %v3219_v33  ;;  %v3994_v54 = vmax.f32 %v3862_v1, 0.0 }
 0x6e5   : > { %v3573_v10 = vpop.f32.mrf.mxu3  ;;  %v4151_v35 = vpop.f32.mrf.mxu1 }
 0x6e6   : > { %v8156_v47 = vadd.f32 %v8149_v34, %v4151_v35  ;;  %v3574_v56 = vadd.f32 %v8138_v61, %v3573_v10  ;;  %v3364_v31 = vmax.f32 %v3300_v27, 0.0 }
 0x6e8   : > { %v4328_v59 = vpack.c.bf16 %v8156_v47, %v8152_v39  ;;  %v3679_v45 = vmax.f32 %v3574_v56, 0.0 }
 0x6e9   : > { %v3220_v48 = vpop.f32.mrf.mxu2  ;;  %v3863_v50 = vpop.f32.mrf.mxu0 }
 0x6ea   : > { %v3221_v44 = vadd.f32 %v3220_v48, %v8057_v53  ;;  %v3864_v52 = vadd.f32 %v7983_v9, %v3863_v50  ;;  %v6771_v53 = vld [vmem:[%s9335_s21 + $0x10] sm:$0xff] }
 0x6eb   : > { %4845 = vmatpush.bf16.msrb.mxu3 %v6771_v53 }
 0x6ec   : > { %v3301_v58 = vadd.f32 %v7967_v26, %v3221_v44  ;;  %v3995_v46 = vmax.f32 %v3864_v52, 0.0 }
 0x6ed   : > { %v3575_v23 = vpop.f32.mrf.mxu3  ;;  %v4154_v57 = vpop.f32.mrf.mxu1 }
 0x6ee   : > { %v3365_v60 = vmax.f32 %v3301_v58, 0.0  ;;  %v3576_v7 = vadd.f32 %v8138_v61, %v3575_v23  ;;  %v8167_v62 = vpack.c.bf16 %v3995_v46, %v3994_v54  ;;  %v8174_v14 = vadd.f32 %v8149_v34, %v4154_v57  ;;  %v6786_v54 = vld [vmem:[%s9339_s25 + $0x20] sm:$0xff] }
 0x6ef   : > { %5248 = vmatpush.bf16.msrb.mxu0 %v6786_v54 }
 0x6f0   : > { %v3680_v2 = vmax.f32 %v3576_v7, 0.0  ;;  %4193 = vmatmul.bf16.gmra.mxu1 %v8167_v62  ;;  %v3418_v5 = vpack.c.bf16 %v3365_v60, %v3364_v31 }
 0x6f1   : > { %v3223_v6 = vpop.f32.mrf.mxu2  ;;  %v3866_v11 = vpop.f32.mrf.mxu0 }
 0x6f2   : > { %3617 = vmatmul.bf16.gmra.mxu3 %v3418_v5  ;;  %v3742_v4 = vpack.c.bf16 %v3680_v2, %v3679_v45  ;;  %v3224_v19 = vadd.f32 %v3223_v6, %v8064_v63  ;;  %v3867_v13 = vadd.f32 %v7983_v9, %v3866_v11 }
 0x6f4   : > { %3905 = vmatmul.bf16.gmra.mxu0 %v3742_v4  ;;  %v3302_v15 = vadd.f32 %v7967_v26, %v3224_v19  ;;  %v3996_v37 = vmax.f32 %v3867_v13, 0.0 }
 0x6f5   : > { %v3578_v18 = vpop.f32.mrf.mxu3  ;;  %v4156_v16 = vpop.f32.mrf.mxu1 }
 0x6f6   : > { %v8178_v38 = vadd.f32 %v8149_v34, %v4156_v16  ;;  %v3579_v25 = vadd.f32 %v8138_v61, %v3578_v18  ;;  %v3366_v1 = vmax.f32 %v3302_v15, 0.0 }
 0x6f8   : > { %v4329_v21 = vpack.c.bf16 %v8178_v38, %v8174_v14  ;;  %v3681_v44 = vmax.f32 %v3579_v25, 0.0 }
 0x6f9   : > { %v3225_v43 = vpop.f32.mrf.mxu2  ;;  %v3868_v42 = vpop.f32.mrf.mxu0 }
 0x6fa   : > { %v3226_v32 = vadd.f32 %v3225_v43, %v8074_v0  ;;  %v3869_v36 = vadd.f32 %v7983_v9, %v3868_v42 }
 0x6fc   : > { %v3303_v63 = vadd.f32 %v7967_v26, %v3226_v32  ;;  %v3997_v10 = vmax.f32 %v3869_v36, 0.0 }
 0x6fd   : > { %v3580_v35 = vpop.f32.mrf.mxu3  ;;  %v4159_v33 = vpop.f32.mrf.mxu1 }
 0x6fe   : > { %v3367_v48 = vmax.f32 %v3303_v63, 0.0  ;;  %v3581_v50 = vadd.f32 %v8138_v61, %v3580_v35  ;;  %v8189_v27 = vpack.c.bf16 %v3997_v10, %v3996_v37  ;;  %v8196_v31 = vadd.f32 %v8149_v34, %v4159_v33 }
 0x700   : > { %v3682_v52 = vmax.f32 %v3581_v50, 0.0  ;;  %4198 = vmatmul.bf16.gmra.mxu1 %v8189_v27  ;;  %v3419_v0 = vpack.c.bf16 %v3367_v48, %v3366_v1 }
 0x701   : > { %v3228_v56 = vpop.f32.mrf.mxu2  ;;  %v3871_v58 = vpop.f32.mrf.mxu0 }
 0x702   : > { %3622 = vmatmul.bf16.gmra.mxu3 %v3419_v0  ;;  %v3743_v46 = vpack.c.bf16 %v3682_v52, %v3681_v44  ;;  %v3229_v60 = vadd.f32 %v3228_v56, %v8081_v17  ;;  %v3872_v53 = vadd.f32 %v7983_v9, %v3871_v58  ;;  %v6770_v58 = vld [vmem:[%s9335_s21 + $0x8] sm:$0xff] }
 0x703   : > { %4846 = vmatpush.bf16.msrb.mxu3 %v6770_v58 }
 0x704   : > { %3910 = vmatmul.bf16.gmra.mxu0 %v3743_v46  ;;  %v3304_v6 = vadd.f32 %v7967_v26, %v3229_v60  ;;  %v3998_v18 = vmax.f32 %v3872_v53, 0.0 }
 0x705   : > { %v3583_v23 = vpop.f32.mrf.mxu3  ;;  %v4161_v57 = vpop.f32.mrf.mxu1 }
 0x706   : > { %v8200_v7 = vadd.f32 %v8149_v34, %v4161_v57  ;;  %v3584_v16 = vadd.f32 %v8138_v61, %v3583_v23  ;;  %v3368_v42 = vmax.f32 %v3304_v6, 0.0 }
 0x708   : > { %v4330_v45 = vpack.c.bf16 %v8200_v7, %v8196_v31  ;;  %v3683_v37 = vmax.f32 %v3584_v16, 0.0 }
 0x709   : > { %v3230_v2 = vpop.f32.mrf.mxu2  ;;  %v3873_v5 = vpop.f32.mrf.mxu0 }
 0x70a   : > { %v3231_v11 = vadd.f32 %v3230_v2, %v8092_v55  ;;  %v3874_v4 = vadd.f32 %v7983_v9, %v3873_v5 }
 0x70c   : > { %v3305_v17 = vadd.f32 %v7967_v26, %v3231_v11  ;;  %v3999_v19 = vmax.f32 %v3874_v4, 0.0 }
 0x70d   : > { %v3585_v13 = vpop.f32.mrf.mxu3  ;;  %v4164_v43 = vpop.f32.mrf.mxu1 }
 0x70e   : > { %v3369_v15 = vmax.f32 %v3305_v17, 0.0  ;;  %v3586_v32 = vadd.f32 %v8138_v61, %v3585_v13  ;;  %v8211_v36 = vpack.c.bf16 %v3999_v19, %v3998_v18  ;;  %v8215_v48 = vadd.f32 %v8149_v34, %v4164_v43  ;;  %v6673_v43 = vld [vmem:[%s8237_s2] sm:$0xff] }
 0x70f   : > { %6495 = vmatmul.msk.bf16.vlgmr.msrb.gmra.mxu2 %vm4526_vm2, %v6673_v43 }
 0x710   : > { %v3684_v25 = vmax.f32 %v3586_v32, 0.0  ;;  %4203 = vmatmul.bf16.gmra.mxu1 %v8211_v36  ;;  %v3420_v55 = vpack.c.bf16 %v3369_v15, %v3368_v42 }
 0x711   : > { %v3233_v63 = vpop.f32.mrf.mxu2  ;;  %v3876_v10 = vpop.f32.mrf.mxu0 }
 0x712   : > { %3627 = vmatmul.bf16.gmra.mxu3 %v3420_v55  ;;  %v3744_v35 = vpack.c.bf16 %v3684_v25, %v3683_v37  ;;  %v3234_v50 = vadd.f32 %v3233_v63, %v8099_v12  ;;  %v3877_v52 = vadd.f32 %v7983_v9, %v3876_v10 }
 0x714   : > { %3915 = vmatmul.bf16.gmra.mxu0 %v3744_v35  ;;  %v3306_v46 = vadd.f32 %v7967_v26, %v3234_v50  ;;  %v4000_v57 = vmax.f32 %v3877_v52, 0.0 }
 0x715   : > { %v3588_v33 = vpop.f32.mrf.mxu3  ;;  %v4166_v1 = vpop.f32.mrf.mxu1 }
 0x716   : > { %v8219_v44 = vadd.f32 %v8149_v34, %v4166_v1  ;;  %v3589_v60 = vadd.f32 %v8138_v61, %v3588_v33  ;;  %v3370_v11 = vmax.f32 %v3306_v46, 0.0 }
 0x718   : > { %v4331_v0 = vpack.c.bf16 %v8219_v44, %v8215_v48  ;;  %v3685_v17 = vmax.f32 %v3589_v60, 0.0 }
 0x719   : > { %v3235_v54 = vpop.f32.mrf.mxu2  ;;  %v3878_v56 = vpop.f32.mrf.mxu0 }
 0x71a   : > { %v3236_v23 = vadd.f32 %v3235_v54, %v8113_v29  ;;  %v3879_v12 = vadd.f32 %v7983_v9, %v3878_v56  ;;  %v6769_v29 = vld [vmem:[%s9335_s21] sm:$0xff] }
 0x71b   : > { %4847 = vmatpush.bf16.msrb.mxu3 %v6769_v29 }
 0x71c   : > { %v3307_v53 = vadd.f32 %v7967_v26, %v3236_v23  ;;  %v4001_v2 = vmax.f32 %v3879_v12, 0.0 }
 0x71d   : > { %v3590_v5 = vpop.f32.mrf.mxu3  ;;  %v4169_v6 = vpop.f32.mrf.mxu1 }
 0x71e   : > { %v3371_v4 = vmax.f32 %v3307_v53, 0.0  ;;  %v3591_v18 = vadd.f32 %v8138_v61, %v3590_v5  ;;  %v8243_v16 = vpack.c.bf16 %v4001_v2, %v4000_v57  ;;  %v8249_v55 = vadd.f32 %v8149_v34, %v4169_v6 }
 0x720   : > { %v3686_v19 = vmax.f32 %v3591_v18, 0.0  ;;  %4208 = vmatmul.bf16.gmra.mxu1 %v8243_v16  ;;  %v3421_v13 = vpack.c.bf16 %v3371_v4, %v3370_v11  ;;  %v6674_v11 = vld [vmem:[%s8237_s2 + $0x8] sm:$0xff] }
 0x721   : > { %v3238_v42 = vpop.f32.mrf.mxu2  ;;  %v3881_v15 = vpop.f32.mrf.mxu0  ;;  %6496 = vmatmul.msk.bf16.gmra.mxu2 %vm4526_vm2, %v6674_v11 }
 0x722   : > { %3632 = vmatmul.bf16.gmra.mxu3 %v3421_v13  ;;  %v3745_v32 = vpack.c.bf16 %v3686_v19, %v3685_v17  ;;  %v3239_v63 = vadd.f32 %v3238_v42, %v8120_v28  ;;  %v3882_v35 = vadd.f32 %v7983_v9, %v3881_v15 }
 0x724   : > { %3920 = vmatmul.bf16.gmra.mxu0 %v3745_v32  ;;  %v3308_v52 = vadd.f32 %v7967_v26, %v3239_v63  ;;  %v4002_v58 = vmax.f32 %v3882_v35, 0.0 }
 0x725   : > { %v3593_v37 = vpop.f32.mrf.mxu3  ;;  %v4171_v25 = vpop.f32.mrf.mxu1 }
 0x726   : > { %v8253_v10 = vadd.f32 %v8149_v34, %v4171_v25  ;;  %v3594_v28 = vadd.f32 %v8138_v61, %v3593_v37  ;;  %v3372_v60 = vmax.f32 %v3308_v52, 0.0 }
 0x728   : > { %v4332_v33 = vpack.c.bf16 %v8253_v10, %v8249_v55  ;;  %v3687_v6 = vmax.f32 %v3594_v28, 0.0  ;;  %v6779_v28 = vld [vmem:[%s9338_s24 + $0x8] sm:$0xff] }
 0x729   : > { %v3240_v1 = vpop.f32.mrf.mxu2  ;;  %v3883_v50 = vpop.f32.mrf.mxu0  ;;  %5541 = vmatpush.bf16.msrb.mxu1 %v6779_v28 }
 0x72a   : > { %v3241_v54 = vadd.f32 %v3240_v1, %v8128_v20  ;;  %v3884_v56 = vadd.f32 %v7983_v9, %v3883_v50 }
 0x72c   : > { %v3309_v46 = vadd.f32 %v7967_v26, %v3241_v54  ;;  %v4003_v23 = vmax.f32 %v3884_v56, 0.0 }
 0x72d   : > { %v3595_v12 = vpop.f32.mrf.mxu3  ;;  %v4174_v57 = vpop.f32.mrf.mxu1 }
 0x72e   : > { %v3373_v53 = vmax.f32 %v3309_v46, 0.0  ;;  %v3596_v2 = vadd.f32 %v8138_v61, %v3595_v12  ;;  %v8264_v5 = vpack.c.bf16 %v4003_v23, %v4002_v58  ;;  %v8270_v19 = vadd.f32 %v8149_v34, %v4174_v57  ;;  %v6785_v58 = vld [vmem:[%s9339_s25 + $0x18] sm:$0xff]  ;;  %v6675_v46 = vld [vmem:[%s8237_s2 + $0x10] sm:$0xff] }
 0x72f   : > { %5249 = vmatpush.bf16.msrb.mxu0 %v6785_v58 }
 0x730   : > { %v3688_v29 = vmax.f32 %v3596_v2, 0.0  ;;  %4213 = vmatmul.bf16.gmra.mxu1 %v8264_v5  ;;  %v3422_v20 = vpack.c.bf16 %v3373_v53, %v3372_v60 }
 0x731   : > { %v3886_v4 = vpop.f32.mrf.mxu0  ;;  %6497 = vmatmul.msk.bf16.gmra.mxu2 %vm4526_vm2, %v6675_v46 }
 0x732   : > { %3637 = vmatmul.bf16.gmra.mxu3 %v3422_v20  ;;  %v3746_v18 = vpack.c.bf16 %v3688_v29, %v3687_v6  ;;  %v3887_v43 = vadd.f32 %v7983_v9, %v3886_v4 }
 0x734   : > { %3925 = vmatmul.bf16.gmra.mxu0 %v3746_v18  ;;  %v4004_v37 = vmax.f32 %v3887_v43, 0.0 }
 0x735   : > { %v3598_v26 = vpop.f32.mrf.mxu3  ;;  %v4176_v17 = vpop.f32.mrf.mxu1 }
 0x736   : > { %v8273_v13 = vadd.f32 %v8149_v34, %v4176_v17  ;;  %v3599_v25 = vadd.f32 %v8138_v61, %v3598_v26 }
 0x738   : > { %v4333_v42 = vpack.c.bf16 %v8273_v13, %v8270_v19  ;;  %v3689_v54 = vmax.f32 %v3599_v25, 0.0 }
 0x739   : > { %v3888_v15 = vpop.f32.mrf.mxu0 }
 0x73a   : > { %v3889_v32 = vadd.f32 %v7983_v9, %v3888_v15 }
 0x73c   : > { %v4005_v63 = vmax.f32 %v3889_v32, 0.0  ;;  %v6676_v32 = vld [vmem:[%s8237_s2 + $0x18] sm:$0xff] }
 0x73d   : > { %v3600_v35 = vpop.f32.mrf.mxu3  ;;  %v4179_v1 = vpop.f32.mrf.mxu1 }
 0x73e   : > { %v3601_v50 = vadd.f32 %v8138_v61, %v3600_v35  ;;  %v8281_v52 = vpack.c.bf16 %v4005_v63, %v4004_v37  ;;  %v8296_v53 = vadd.f32 %v8149_v34, %v4179_v1 }
 0x740   : > { %v3690_v56 = vmax.f32 %v3601_v50, 0.0  ;;  %4218 = vmatmul.bf16.gmra.mxu1 %v8281_v52 }
 0x741   : > { %v3891_v23 = vpop.f32.mrf.mxu0  ;;  %6498 = vmatmul.msk.bf16.gmra.mxu2 %vm4526_vm2, %v6676_v32 }
 0x742   : > { %4848 = vmatmul.bf16.vlgmr.msrb.gmra.mxu3 %v4328_v59  ;;  %v3747_v12 = vpack.c.bf16 %v3690_v56, %v3689_v54  ;;  %v3892_v6 = vadd.f32 %v7983_v9, %v3891_v23 }
 0x744   : > { %3930 = vmatmul.bf16.gmra.mxu0 %v3747_v12  ;;  %v4006_v29 = vmax.f32 %v3892_v6, 0.0 }
 0x745   : > { %v3603_v57 = vpop.f32.mrf.mxu3  ;;  %v4181_v60 = vpop.f32.mrf.mxu1 }
 0x746   : > { %v8299_v2 = vadd.f32 %v8149_v34, %v4181_v60  ;;  %v3604_v20 = vadd.f32 %v8138_v61, %v3603_v57 }
 0x748   : > { %v4334_v39 = vpack.c.bf16 %v8299_v2, %v8296_v53  ;;  %v3691_v43 = vmax.f32 %v3604_v20, 0.0 }
 0x749   : > { %v3893_v47 = vpop.f32.mrf.mxu0 }
 0x74a   : > { %v3894_v59 = vadd.f32 %v7983_v9, %v3893_v47  ;;  %v6677_v47 = vld [vmem:[%s8237_s2 + $0x20] sm:$0xff] }
 0x74c   : > { %v4007_v11 = vmax.f32 %v3894_v59, 0.0 }
 0x74d   : > { %v3605_v4 = vpop.f32.mrf.mxu3  ;;  %v4184_v18 = vpop.f32.mrf.mxu1 }
 0x74e   : > { %v3606_v26 = vadd.f32 %v8138_v61, %v3605_v4  ;;  %v8307_v17 = vpack.c.bf16 %v4007_v11, %v4006_v29  ;;  %v8316_v1 = vadd.f32 %v8149_v34, %v4184_v18  ;;  %v8344_v18 = vld [vmem:[%s9332_s18] ss:$0 sm:$0xff] }
 0x750   : > { %v3692_v15 = vmax.f32 %v3606_v26, 0.0  ;;  %4223 = vmatmul.bf16.gmra.mxu1 %v8307_v17 }
 0x751   : > { %v3896_v37 = vpop.f32.mrf.mxu0  ;;  %6499 = vmatmul.msk.bf16.gmra.mxu2 %vm4526_vm2, %v6677_v47 }
 0x752   : > { %4853 = vmatmul.bf16.gmra.mxu3 %v4329_v21  ;;  %v3748_v25 = vpack.c.bf16 %v3692_v15, %v3691_v43  ;;  %v3897_v54 = vadd.f32 %v7983_v9, %v3896_v37 }
 0x754   : > { %3935 = vmatmul.bf16.gmra.mxu0 %v3748_v25  ;;  %v4008_v21 = vmax.f32 %v3897_v54, 0.0 }
 0x755   : > { %v3608_v63 = vpop.f32.mrf.mxu3  ;;  %v4186_v35 = vpop.f32.mrf.mxu1 }
 0x756   : > { %v8319_v50 = vadd.f32 %v8149_v34, %v4186_v35  ;;  %v3609_v58 = vadd.f32 %v8138_v61, %v3608_v63 }
 0x758   : > { %v4335_v56 = vpack.c.bf16 %v8319_v50, %v8316_v1  ;;  %v3693_v60 = vmax.f32 %v3609_v58, 0.0 }
 0x759   : > { %v3898_v14 = vpop.f32.mrf.mxu0 }
 0x75a   : > { %v3899_v38 = vadd.f32 %v7983_v9, %v3898_v14 }
 0x75c   : > { %v4009_v28 = vmax.f32 %v3899_v38, 0.0  ;;  %v6678_v38 = vld [vmem:[%s8237_s2 + $0x28] sm:$0xff] }
 0x75d   : > { %v3610_v46 = vpop.f32.mrf.mxu3  ;;  %v4189_v23 = vpop.f32.mrf.mxu1 }
 0x75e   : > { %v3611_v12 = vadd.f32 %v8138_v61, %v3610_v46  ;;  %v8327_v57 = vpack.c.bf16 %v4009_v28, %v4008_v21  ;;  %v8336_v11 = vadd.f32 %v8149_v34, %v4189_v23 }
 0x760   : > { %v3694_v6 = vmax.f32 %v3611_v12, 0.0  ;;  %4228 = vmatmul.bf16.gmra.mxu1 %v8327_v57 }
 0x761   : > { %v3901_v59 = vpop.f32.mrf.mxu0  ;;  %6500 = vmatmul.msk.bf16.gmra.mxu2 %vm4526_vm2, %v6678_v38 }
 0x762   : > { %4858 = vmatmul.bf16.gmra.mxu3 %v4330_v45  ;;  %v3749_v9 = vpack.c.bf16 %v3694_v6, %v3693_v60  ;;  %v3902_v31 = vadd.f32 %v8344_v18, %v3901_v59 }
 0x764   : > { %3940 = vmatmul.bf16.gmra.mxu0 %v3749_v9  ;;  %v4010_v43 = vmax.f32 %v3902_v31, 0.0 }
 0x765   : > { %v3613_v29 = vpop.f32.mrf.mxu3  ;;  %v4191_v20 = vpop.f32.mrf.mxu1 }
 0x766   : > { %v8339_v4 = vadd.f32 %v8149_v34, %v4191_v20  ;;  %v3614_v15 = vadd.f32 %v8138_v61, %v3613_v29 }
 0x768   : > { %v4336_v7 = vpack.c.bf16 %v8339_v4, %v8336_v11  ;;  %v3695_v54 = vmax.f32 %v3614_v15, 0.0  ;;  %v6679_v15 = vld [vmem:[%s8237_s2 + $0x30] sm:$0xff] }
 0x769   : > { %v3903_v45 = vpop.f32.mrf.mxu0 }
 0x76a   : > { %v3904_v26 = vadd.f32 %v8344_v18, %v3903_v45 }
 0x76c   : > { %v4011_v32 = vmax.f32 %v3904_v26, 0.0 }
 0x76d   : > { %v3615_v37 = vpop.f32.mrf.mxu3  ;;  %v4194_v25 = vpop.f32.mrf.mxu1 }
 0x76e   : > { %v3616_v63 = vadd.f32 %v8138_v61, %v3615_v37  ;;  %v8352_v35 = vpack.c.bf16 %v4011_v32, %v4010_v43  ;;  %v8361_v23 = vadd.f32 %v8149_v34, %v4194_v25  ;;  %v6784_v43 = vld [vmem:[%s9339_s25 + $0x10] sm:$0xff] }
 0x76f   : > { %5250 = vmatpush.bf16.msrb.mxu0 %v6784_v43 }
 0x770   : > { %v3696_v14 = vmax.f32 %v3616_v63, 0.0  ;;  %4233 = vmatmul.bf16.gmra.mxu1 %v8352_v35 }
 0x771   : > { %v3906_v21 = vpop.f32.mrf.mxu0  ;;  %6501 = vmatmul.msk.bf16.gmra.mxu2 %vm4526_vm2, %v6679_v15 }
 0x772   : > { %4863 = vmatmul.bf16.gmra.mxu3 %v4331_v0  ;;  %v3750_v58 = vpack.c.bf16 %v3696_v14, %v3695_v54  ;;  %v3907_v60 = vadd.f32 %v8344_v18, %v3906_v21 }
 0x774   : > { %3945 = vmatmul.bf16.gmra.mxu0 %v3750_v58  ;;  %v4012_v0 = vmax.f32 %v3907_v60, 0.0 }
 0x775   : > { %v3618_v28 = vpop.f32.mrf.mxu3  ;;  %v4196_v46 = vpop.f32.mrf.mxu1 }
 0x776   : > { %v8364_v12 = vadd.f32 %v8149_v34, %v4196_v46  ;;  %v3619_v47 = vadd.f32 %v8138_v61, %v3618_v28 }
 0x778   : > { %v4337_v6 = vpack.c.bf16 %v8364_v12, %v8361_v23  ;;  %v3697_v45 = vmax.f32 %v3619_v47, 0.0 }
 0x779   : > { %v3908_v48 = vpop.f32.mrf.mxu0 }
 0x77a   : > { %v3909_v44 = vadd.f32 %v8344_v18, %v3908_v48 }
 0x77c   : > { %v4013_v59 = vmax.f32 %v3909_v44, 0.0 }
 0x77d   : > { %v3620_v9 = vpop.f32.mrf.mxu3  ;;  %v4199_v29 = vpop.f32.mrf.mxu1 }
 0x77e   : > { %v3621_v20 = vadd.f32 %v8138_v61, %v3620_v9  ;;  %v8372_v31 = vpack.c.bf16 %v4013_v59, %v4012_v0  ;;  %v8384_v54 = vadd.f32 %v8149_v34, %v4199_v29  ;;  %v6680_v59 = vld [vmem:[%s8237_s2 + $0x38] sm:$0xff] }
 0x780   : > { %v3698_v26 = vmax.f32 %v3621_v20, 0.0  ;;  %4238 = vmatmul.bf16.gmra.mxu1 %v8372_v31 }
 0x781   : > { %v3911_v32 = vpop.f32.mrf.mxu0  ;;  %6502 = vmatmul.msk.bf16.gmra.mxu2 %vm4526_vm2, %v6680_v59 }
 0x782   : > { %4868 = vmatmul.bf16.gmra.mxu3 %v4332_v33  ;;  %v3751_v37 = vpack.c.bf16 %v3698_v26, %v3697_v45  ;;  %v3912_v38 = vadd.f32 %v8344_v18, %v3911_v32 }
 0x784   : > { %3950 = vmatmul.bf16.gmra.mxu0 %v3751_v37  ;;  %v4014_v21 = vmax.f32 %v3912_v38, 0.0 }
 0x785   : > { %v3623_v25 = vpop.f32.mrf.mxu3  ;;  %v4201_v63 = vpop.f32.mrf.mxu1 }
 0x786   : > { %v8387_v14 = vadd.f32 %v8149_v34, %v4201_v63  ;;  %v3624_v58 = vadd.f32 %v8138_v61, %v3623_v25 }
 0x788   : > { %v4338_v55 = vpack.c.bf16 %v8387_v14, %v8384_v54  ;;  %v3699_v0 = vmax.f32 %v3624_v58, 0.0 }
 0x789   : > { %v3913_v10 = vpop.f32.mrf.mxu0 }
 0x78a   : > { %v3914_v33 = vadd.f32 %v8344_v18, %v3913_v10 }
 0x78c   : > { %v4015_v28 = vmax.f32 %v3914_v33, 0.0 }
 0x78d   : > { %v3625_v46 = vpop.f32.mrf.mxu3  ;;  %v4204_v60 = vpop.f32.mrf.mxu1 }
 0x78e   : > { %v3626_v48 = vadd.f32 %v8138_v61, %v3625_v46  ;;  %v8395_v44 = vpack.c.bf16 %v4015_v28, %v4014_v21  ;;  %v8404_v26 = vadd.f32 %v8149_v34, %v4204_v60  ;;  %v6681_v28 = vld [vmem:[%s8237_s2 + $0x40] sm:$0xff] }
 0x790   : > { %v3700_v47 = vmax.f32 %v3626_v48, 0.0  ;;  %4243 = vmatmul.bf16.gmra.mxu1 %v8395_v44 }
 0x791   : > { %v3916_v9 = vpop.f32.mrf.mxu0  ;;  %6503 = vmatmul.msk.bf16.gmra.mxu2 %vm4526_vm2, %v6681_v28 }
 0x792   : > { %4873 = vmatmul.bf16.gmra.mxu3 %v4333_v42  ;;  %v3752_v29 = vpack.c.bf16 %v3700_v47, %v3699_v0  ;;  %v3917_v15 = vadd.f32 %v8344_v18, %v3916_v9  ;;  %v4632_v9 = vpop.f32.mrf.mxu2 }
 0x794   : > { %3955 = vmatmul.bf16.gmra.mxu0 %v3752_v29  ;;  %v4016_v42 = vmax.f32 %v3917_v15, 0.0 }
 0x795   : > { %v3628_v20 = vpop.f32.mrf.mxu3  ;;  %v4206_v45 = vpop.f32.mrf.mxu1 }
 0x796   : > { %v8407_v43 = vadd.f32 %v8149_v34, %v4206_v45  ;;  %v3629_v37 = vadd.f32 %v8138_v61, %v3628_v20 }
 0x798   : > { %v4339_v32 = vpack.c.bf16 %v8407_v43, %v8404_v26  ;;  %v3701_v21 = vmax.f32 %v3629_v37, 0.0 }
 0x799   : > { %v3918_v19 = vpop.f32.mrf.mxu0 }
 0x79a   : > { %v3919_v13 = vadd.f32 %v8344_v18, %v3918_v19 }
 0x79c   : > { %v4017_v25 = vmax.f32 %v3919_v13, 0.0 }
 0x79d   : > { %v3630_v63 = vpop.f32.mrf.mxu3  ;;  %v4209_v38 = vpop.f32.mrf.mxu1 }
 0x79e   : > { %v3631_v10 = vadd.f32 %v8138_v61, %v3630_v63  ;;  %v8415_v33 = vpack.c.bf16 %v4017_v25, %v4016_v42  ;;  %v8424_v47 = vadd.f32 %v8149_v34, %v4209_v38  ;;  %v4634_v63 = vpop.f32.mrf.mxu2  ;;  %v6782_v38 = vld [vmem:[%s9339_s25] sm:$0xff] }
 0x7a0   : > { %v3702_v58 = vmax.f32 %v3631_v10, 0.0  ;;  %4248 = vmatmul.bf16.gmra.mxu1 %v8415_v33 }
 0x7a1   : > { %v3921_v46 = vpop.f32.mrf.mxu0 }
 0x7a2   : > { %4878 = vmatmul.bf16.gmra.mxu3 %v4334_v39  ;;  %v3753_v60 = vpack.c.bf16 %v3702_v58, %v3701_v21  ;;  %v3922_v29 = vadd.f32 %v8344_v18, %v3921_v46  ;;  %v6783_v39 = vld [vmem:[%s9339_s25 + $0x8] sm:$0xff] }
 0x7a3   : > { %5251 = vmatpush.bf16.msrb.mxu0 %v6783_v39  ;;  %v6682_v58 = vld [vmem:[%s8237_s2 + $0x48] sm:$0xff] }
 0x7a4   : > { %3960 = vmatmul.bf16.gmra.mxu0 %v3753_v60  ;;  %v4018_v45 = vmax.f32 %v3922_v29, 0.0  ;;  %6504 = vmatmul.msk.bf16.gmra.mxu2 %vm4526_vm2, %v6682_v58  ;;  %v6683_v58 = vld [vmem:[%s8237_s2 + $0x50] sm:$0xff] }
 0x7a5   : > { %v3633_v48 = vpop.f32.mrf.mxu3  ;;  %v4211_v0 = vpop.f32.mrf.mxu1 }
 0x7a6   : > { %v8427_v59 = vadd.f32 %v8149_v34, %v4211_v0  ;;  %v3634_v15 = vadd.f32 %v8138_v61, %v3633_v48 }
 0x7a7   : > { %5252 = vmatpush.bf16.msrb.mxu0 %v6782_v38 }
 0x7a8   : > { %v4340_v20 = vpack.c.bf16 %v8427_v59, %v8424_v47  ;;  %v3703_v10 = vmax.f32 %v3634_v15, 0.0 }
 0x7a9   : > { %v3923_v53 = vpop.f32.mrf.mxu0 }
 0x7aa   : > { %v3924_v2 = vadd.f32 %v8344_v18, %v3923_v53  ;;  %v4637_v53 = vpop.f32.mrf.mxu2 }
 0x7ac   : > { %v4019_v19 = vmax.f32 %v3924_v2, 0.0 }
 0x7ad   : > { %v3635_v13 = vpop.f32.mrf.mxu3  ;;  %v4214_v42 = vpop.f32.mrf.mxu1 }
 0x7ae   : > { %v3636_v37 = vadd.f32 %v8138_v61, %v3635_v13  ;;  %v8438_v25 = vpack.c.bf16 %v4019_v19, %v4018_v45  ;;  %v8450_v0 = vadd.f32 %v8149_v34, %v4214_v42 }
 0x7b0   : > { %v3704_v21 = vmax.f32 %v3636_v37, 0.0  ;;  %4253 = vmatmul.bf16.gmra.mxu1 %v8438_v25 }
 0x7b1   : > { %v3926_v28 = vpop.f32.mrf.mxu0 }
 0x7b2   : > { %4883 = vmatmul.bf16.gmra.mxu3 %v4335_v56  ;;  %v3754_v46 = vpack.c.bf16 %v3704_v21, %v3703_v10  ;;  %v3927_v2 = vadd.f32 %v8344_v18, %v3926_v28  ;;  %v4639_v38 = vpop.f32.mrf.mxu2 }
 0x7b4   : > { %3965 = vmatmul.bf16.gmra.mxu0 %v3754_v46  ;;  %v4020_v39 = vmax.f32 %v3927_v2, 0.0  ;;  %6505 = vmatmul.msk.bf16.gmra.mxu2 %vm4526_vm2, %v6683_v58 }
 0x7b5   : > { %v3638_v60 = vpop.f32.mrf.mxu3  ;;  %v4216_v48 = vpop.f32.mrf.mxu1 }
 0x7b6   : > { %v8453_v29 = vadd.f32 %v8149_v34, %v4216_v48  ;;  %v3639_v45 = vadd.f32 %v8138_v61, %v3638_v60 }
 0x7b8   : > { %v4341_v1 = vpack.c.bf16 %v8453_v29, %v8450_v0  ;;  %v3705_v10 = vmax.f32 %v3639_v45, 0.0  ;;  %v8484_v45 = vld [vmem:[%s9337_s23] ss:$0 sm:$0xff] }
 0x7b9   : > { %v3928_v50 = vpop.f32.mrf.mxu0 }
 0x7ba   : > { %v3929_v56 = vadd.f32 %v8344_v18, %v3928_v50  ;;  %v4642_v11 = vpop.f32.mrf.mxu2 }
 0x7bc   : > { %v4021_v15 = vmax.f32 %v3929_v56, 0.0 }
 0x7bd   : > { %v3640_v19 = vpop.f32.mrf.mxu3  ;;  %v4219_v13 = vpop.f32.mrf.mxu1 }
 0x7be   : > { %v3641_v42 = vadd.f32 %v8138_v61, %v3640_v19  ;;  %v8461_v37 = vpack.c.bf16 %v4021_v15, %v4020_v39  ;;  %v6778_v61 = vld [vmem:[%s9338_s24] sm:$0xff]  ;;  %v8473_v2 = vadd.f32 %v8149_v34, %v4219_v13 }
 0x7bf   : > { %5542 = vmatpush.bf16.msrb.mxu1 %v6778_v61  ;;  %v6684_v61 = vld [vmem:[%s8237_s2 + $0x58] sm:$0xff] }
 0x7c0   : > { %v3706_v21 = vmax.f32 %v3641_v42, 0.0  ;;  %4258 = vmatmul.bf16.gmra.mxu1 %v8461_v37 }
 0x7c1   : > { %v3931_v28 = vpop.f32.mrf.mxu0 }
 0x7c2   : > { %4888 = vmatmul.bf16.gmra.mxu3 %v4336_v7  ;;  %v3755_v46 = vpack.c.bf16 %v3706_v21, %v3705_v10  ;;  %v3932_v4 = vadd.f32 %v8344_v18, %v3931_v28  ;;  %v4644_v28 = vpop.f32.mrf.mxu2 }
 0x7c4   : > { %3970 = vmatmul.bf16.gmra.mxu0 %v3755_v46  ;;  %v4022_v19 = vmax.f32 %v3932_v4, 0.0  ;;  %6506 = vmatmul.msk.bf16.gmra.mxu2 %vm4526_vm2, %v6684_v61 }
 0x7c5   : > { %v4221_v60 = vpop.f32.mrf.mxu1  ;;  %v4849_v48 = vpop.f32.mrf.mxu3 }
 0x7c6   : > { %v8476_v50 = vadd.f32 %v8149_v34, %v4221_v60  ;;  %v4850_v56 = vadd.f32 %v4849_v48, %v4632_v9 }
 0x7c8   : > { %v5012_v10 = vadd.f32 %v8484_v45, %v4850_v56 }
 0x7c9   : > { %v3933_v39 = vpop.f32.mrf.mxu0 }
 0x7ca   : > { %v3934_v15 = vadd.f32 %v8344_v18, %v3933_v39  ;;  %v5076_v48 = vmax.f32 %v5012_v10, 0.0 }
 0x7cc   : > { %v4023_v13 = vmax.f32 %v3934_v15, 0.0 }
 0x7cd   : > { %v4224_v42 = vpop.f32.mrf.mxu1  ;;  %v4851_v9 = vpop.f32.mrf.mxu3 }
 0x7ce   : > { %v4852_v21 = vadd.f32 %v4851_v9, %v4634_v63  ;;  %v8488_v58 = vpack.c.bf16 %v4023_v13, %v4022_v19  ;;  %v8501_v39 = vadd.f32 %v8149_v34, %v4224_v42  ;;  %v4647_v13 = vpop.f32.mrf.mxu2 }
 0x7d0   : > { %v5013_v46 = vadd.f32 %v8484_v45, %v4852_v21  ;;  %4263 = vmatmul.bf16.gmra.mxu1 %v8488_v58 }
 0x7d1   : > { %v3936_v60 = vpop.f32.mrf.mxu0 }
 0x7d2   : > { %v5077_v7 = vmax.f32 %v5013_v46, 0.0  ;;  %4893 = vmatmul.bf16.gmra.mxu3 %v4337_v6  ;;  %v3937_v23 = vadd.f32 %v8344_v18, %v3936_v60  ;;  %v6685_v60 = vld [vmem:[%s8237_s2 + $0x60] sm:$0xff] }
 0x7d4   : > { %v8497_v4 = vpack.c.bf16 %v5077_v7, %v5076_v48  ;;  %5253 = vmatmul.bf16.vlgmr.msrb.gmra.mxu0 %v7994_v3  ;;  %v4024_v3 = vmax.f32 %v3937_v23, 0.0  ;;  %6507 = vmatmul.msk.bf16.gmra.mxu2 %vm4526_vm2, %v6685_v60 }
 0x7d5   : > { %v4226_v63 = vpop.f32.mrf.mxu1  ;;  %v4854_v56 = vpop.f32.mrf.mxu3 }
 0x7d6   : > { %v8504_v15 = vadd.f32 %v8149_v34, %v4226_v63  ;;  %v4855_v19 = vadd.f32 %v4854_v56, %v4637_v53  ;;  %v4649_v53 = vpop.f32.mrf.mxu2 }
 0x7d8   : > { %v5014_v42 = vadd.f32 %v8484_v45, %v4855_v19 }
 0x7d9   : > { %v3938_v6 = vpop.f32.mrf.mxu0 }
 0x7da   : > { %v3939_v7 = vadd.f32 %v8344_v18, %v3938_v6  ;;  %v5078_v56 = vmax.f32 %v5014_v42, 0.0 }
 0x7dc   : > { %v4025_v9 = vmax.f32 %v3939_v7, 0.0 }
 0x7dd   : > { %v4229_v10 = vpop.f32.mrf.mxu1  ;;  %v4856_v21 = vpop.f32.mrf.mxu3 }
 0x7de   : > { %v4857_v46 = vadd.f32 %v4856_v21, %v4639_v38  ;;  %v8511_v61 = vpack.c.bf16 %v4025_v9, %v4024_v3  ;;  %v8524_v6 = vadd.f32 %v8149_v34, %v4229_v10  ;;  %v4652_v9 = vpop.f32.mrf.mxu2 }
 0x7e0   : > { %v5015_v48 = vadd.f32 %v8484_v45, %v4857_v46  ;;  %4268 = vmatmul.bf16.gmra.mxu1 %v8511_v61 }
 0x7e1   : > { %v3941_v63 = vpop.f32.mrf.mxu0 }
 0x7e2   : > { %v5079_v12 = vmax.f32 %v5015_v48, 0.0  ;;  %4898 = vmatmul.bf16.gmra.mxu3 %v4338_v55  ;;  %v3942_v54 = vadd.f32 %v8344_v18, %v3941_v63  ;;  %v6686_v63 = vld [vmem:[%s8237_s2 + $0x68] sm:$0xff] }
 0x7e4   : > { %v8520_v23 = vpack.c.bf16 %v5079_v12, %v5078_v56  ;;  %5258 = vmatmul.bf16.gmra.mxu0 %v8014_v40  ;;  %v4026_v40 = vmax.f32 %v3942_v54, 0.0  ;;  %6508 = vmatmul.msk.bf16.gmra.mxu2 %vm4526_vm2, %v6686_v63 }
 0x7e5   : > { %v4231_v38 = vpop.f32.mrf.mxu1  ;;  %v4859_v19 = vpop.f32.mrf.mxu3 }
 0x7e6   : > { %v8527_v7 = vadd.f32 %v8149_v34, %v4231_v38  ;;  %v4860_v3 = vadd.f32 %v4859_v19, %v4642_v11  ;;  %v4654_v11 = vpop.f32.mrf.mxu2 }
 0x7e8   : > { %v5016_v10 = vadd.f32 %v8484_v45, %v4860_v3 }
 0x7e9   : > { %v3943_v55 = vpop.f32.mrf.mxu0 }
 0x7ea   : > { %v3944_v12 = vadd.f32 %v8344_v18, %v3943_v55  ;;  %v5080_v19 = vmax.f32 %v5016_v10, 0.0 }
 0x7ec   : > { %v4027_v21 = vmax.f32 %v3944_v12, 0.0 }
 0x7ed   : > { %v4234_v42 = vpop.f32.mrf.mxu1  ;;  %v4861_v46 = vpop.f32.mrf.mxu3 }
 0x7ee   : > { %v4862_v48 = vadd.f32 %v4861_v46, %v4644_v28  ;;  %v8534_v60 = vpack.c.bf16 %v4027_v21, %v4026_v40  ;;  %v8547_v55 = vadd.f32 %v8149_v34, %v4234_v42  ;;  %v4657_v21 = vpop.f32.mrf.mxu2 }
 0x7f0   : > { %v5017_v56 = vadd.f32 %v8484_v45, %v4862_v48  ;;  %4273 = vmatmul.bf16.gmra.mxu1 %v8534_v60 }
 0x7f1   : > { %v3946_v38 = vpop.f32.mrf.mxu0 }
 0x7f2   : > { %v5081_v14 = vmax.f32 %v5017_v56, 0.0  ;;  %4903 = vmatmul.bf16.gmra.mxu3 %v4339_v32  ;;  %v3947_v26 = vadd.f32 %v8344_v18, %v3946_v38  ;;  %v6687_v38 = vld [vmem:[%s8237_s2 + $0x70] sm:$0xff] }
 0x7f4   : > { %v8543_v54 = vpack.c.bf16 %v5081_v14, %v5080_v19  ;;  %5263 = vmatmul.bf16.gmra.mxu0 %v8034_v22  ;;  %v4028_v22 = vmax.f32 %v3947_v26, 0.0  ;;  %6509 = vmatmul.msk.bf16.gmra.mxu2 %vm4526_vm2, %v6687_v38 }
 0x7f5   : > { %v4236_v28 = vpop.f32.mrf.mxu1  ;;  %v4864_v3 = vpop.f32.mrf.mxu3 }
 0x7f6   : > { %v8550_v12 = vadd.f32 %v8149_v34, %v4236_v28  ;;  %v4865_v40 = vadd.f32 %v4864_v3, %v4647_v13  ;;  %v4659_v13 = vpop.f32.mrf.mxu2 }
 0x7f8   : > { %v5018_v42 = vadd.f32 %v8484_v45, %v4865_v40 }
 0x7f9   : > { %v3948_v32 = vpop.f32.mrf.mxu0 }
 0x7fa   : > { %v3949_v14 = vadd.f32 %v8344_v18, %v3948_v32  ;;  %v5082_v28 = vmax.f32 %v5018_v42, 0.0  ;;  %v8572_v32 = vld [vmem:[%s9334_s20] ss:$0 sm:$0xff] }
 0x7fc   : > { %v4029_v46 = vmax.f32 %v3949_v14, 0.0 }
 0x7fd   : > { %v4239_v10 = vpop.f32.mrf.mxu1  ;;  %v4866_v48 = vpop.f32.mrf.mxu3 }
 0x7fe   : > { %v4867_v56 = vadd.f32 %v4866_v48, %v4649_v53  ;;  %v8557_v34 = vpack.c.bf16 %v4029_v46, %v4028_v22  ;;  %v8575_v14 = vadd.f32 %v8572_v32, %v4239_v10  ;;  %v4662_v59 = vpop.f32.mrf.mxu2 }
 0x800   : > { %v5019_v63 = vadd.f32 %v8484_v45, %v4867_v56  ;;  %4278 = vmatmul.bf16.gmra.mxu1 %v8557_v34 }
 0x801   : > { %v3951_v19 = vpop.f32.mrf.mxu0 }
 0x802   : > { %v5083_v3 = vmax.f32 %v5019_v63, 0.0  ;;  %4908 = vmatmul.bf16.gmra.mxu3 %v4340_v20  ;;  %v3952_v20 = vadd.f32 %v8344_v18, %v3951_v19  ;;  %v6688_v19 = vld [vmem:[%s8237_s2 + $0x78] sm:$0xff] }
 0x804   : > { %v8566_v26 = vpack.c.bf16 %v5083_v3, %v5082_v28  ;;  %5268 = vmatmul.bf16.gmra.mxu0 %v8054_v49  ;;  %v4030_v42 = vmax.f32 %v3952_v20, 0.0  ;;  %6510 = vmatmul.msk.bf16.gmra.mxu2 %vm4526_vm2, %v6688_v19 }
 0x805   : > { %v4241_v53 = vpop.f32.mrf.mxu1  ;;  %v4869_v40 = vpop.f32.mrf.mxu3 }
 0x806   : > { %v8578_v22 = vadd.f32 %v8572_v32, %v4241_v53  ;;  %v4870_v47 = vadd.f32 %v4869_v40, %v4652_v9  ;;  %v4664_v9 = vpop.f32.mrf.mxu2 }
 0x808   : > { %v5020_v10 = vadd.f32 %v8484_v45, %v4870_v47 }
 0x809   : > { %v3953_v46 = vpop.f32.mrf.mxu0 }
 0x80a   : > { %v3954_v48 = vadd.f32 %v8344_v18, %v3953_v46  ;;  %v5084_v49 = vmax.f32 %v5020_v10, 0.0 }
 0x80c   : > { %v4031_v56 = vmax.f32 %v3954_v48, 0.0 }
 0x80d   : > { %v4244_v63 = vpop.f32.mrf.mxu1  ;;  %v4871_v38 = vpop.f32.mrf.mxu3 }
 0x80e   : > { %v4872_v28 = vadd.f32 %v4871_v38, %v4654_v11  ;;  %v8585_v3 = vpack.c.bf16 %v4031_v56, %v4030_v42  ;;  %v8598_v46 = vadd.f32 %v8572_v32, %v4244_v63  ;;  %v4667_v56 = vpop.f32.mrf.mxu2 }
 0x810   : > { %9383 = vst [vmem:[#allocation2_spill] sm:$0xff] %v8585_v3  ;;  %v5021_v53 = vadd.f32 %v8484_v45, %v4872_v28  ;;  %4283 = vmatmul.bf16.gmra.mxu1 %v8585_v3 }
 0x811   : > { %v3956_v40 = vpop.f32.mrf.mxu0 }
 0x812   : > { %v5085_v43 = vmax.f32 %v5021_v53, 0.0  ;;  %4913 = vmatmul.bf16.gmra.mxu3 %v4341_v1  ;;  %v3957_v0 = vadd.f32 %v8344_v18, %v3956_v40  ;;  %v6689_v40 = vld [vmem:[%s8237_s2 + $0x80] sm:$0xff] }
 0x814   : > { %v8594_v20 = vpack.c.bf16 %v5085_v43, %v5084_v49  ;;  %5273 = vmatmul.bf16.gmra.mxu0 %v8071_v8  ;;  %v4032_v8 = vmax.f32 %v3957_v0, 0.0  ;;  %v9385_v0 = vpack.c.bf16 %v8476_v50, %v8473_v2  ;;  %6511 = vmatmul.msk.bf16.gmra.mxu2 %vm4526_vm2, %v6689_v40 }
 0x815   : > { %v4246_v11 = vpop.f32.mrf.mxu1  ;;  %v4874_v47 = vpop.f32.mrf.mxu3 }
 0x816   : > { %v8601_v48 = vadd.f32 %v8572_v32, %v4246_v11  ;;  %v4875_v42 = vadd.f32 %v4874_v47, %v4657_v21  ;;  %v4669_v21 = vpop.f32.mrf.mxu2 }
 0x818   : > { %v5022_v63 = vadd.f32 %v8484_v45, %v4875_v42 }
 0x819   : > { %v3958_v1 = vpop.f32.mrf.mxu0 }
 0x81a   : > { %v3959_v43 = vadd.f32 %v8344_v18, %v3958_v1  ;;  %v5086_v47 = vmax.f32 %v5022_v63, 0.0 }
 0x81c   : > { %v4033_v49 = vmax.f32 %v3959_v43, 0.0 }
 0x81d   : > { %v4249_v38 = vpop.f32.mrf.mxu1  ;;  %v4876_v10 = vpop.f32.mrf.mxu3 }
 0x81e   : > { %v4877_v28 = vadd.f32 %v4876_v10, %v4659_v13  ;;  %v8608_v53 = vpack.c.bf16 %v4033_v49, %v4032_v8  ;;  %v8621_v43 = vadd.f32 %v8572_v32, %v4249_v38  ;;  %v4672_v10 = vpop.f32.mrf.mxu2 }
 0x820   : > { %9384 = vst [vmem:[#allocation3_spill] sm:$0xff] %v8608_v53  ;;  %v5023_v19 = vadd.f32 %v8484_v45, %v4877_v28  ;;  %4288 = vmatmul.bf16.gmra.mxu1 %v8608_v53 }
 0x821   : > { %v3961_v11 = vpop.f32.mrf.mxu0 }
 0x822   : > { %v5087_v29 = vmax.f32 %v5023_v19, 0.0  ;;  %4918 = vmatmul.bf16.gmra.mxu3 %v9385_v0  ;;  %v3962_v2 = vadd.f32 %v8344_v18, %v3961_v11  ;;  %v6690_v11 = vld [vmem:[%s8237_s2 + $0x88] sm:$0xff] }
 0x824   : > { %v8617_v1 = vpack.c.bf16 %v5087_v29, %v5086_v47  ;;  %5278 = vmatmul.bf16.gmra.mxu0 %v8086_v41  ;;  %v4034_v41 = vmax.f32 %v3962_v2, 0.0  ;;  %v9387_v2 = vpack.c.bf16 %v8504_v15, %v8501_v39  ;;  %6512 = vmatmul.msk.bf16.gmra.mxu2 %vm4526_vm2, %v6690_v11 }
 0x825   : > { %v4251_v13 = vpop.f32.mrf.mxu1  ;;  %v4879_v42 = vpop.f32.mrf.mxu3 }
 0x826   : > { %v8624_v8 = vadd.f32 %v8572_v32, %v4251_v13  ;;  %v4880_v49 = vadd.f32 %v4879_v42, %v4662_v59  ;;  %v4674_v59 = vpop.f32.mrf.mxu2 }
 0x828   : > { %v5024_v38 = vadd.f32 %v8484_v45, %v4880_v49 }
 0x829   : > { %v3963_v29 = vpop.f32.mrf.mxu0 }
 0x82a   : > { %v3964_v63 = vadd.f32 %v8344_v18, %v3963_v29  ;;  %v5088_v50 = vmax.f32 %v5024_v38, 0.0 }
 0x82c   : > { %v4035_v28 = vmax.f32 %v3964_v63, 0.0 }
 0x82d   : > { %v4254_v19 = vpop.f32.mrf.mxu1  ;;  %v4881_v40 = vpop.f32.mrf.mxu3 }
 0x82e   : > { %v4882_v47 = vadd.f32 %v4881_v40, %v4664_v9  ;;  %v8631_v0 = vpack.c.bf16 %v4035_v28, %v4034_v41  ;;  %v8644_v63 = vadd.f32 %v8572_v32, %v4254_v19  ;;  %v4677_v40 = vpop.f32.mrf.mxu2 }
 0x830   : > { %9386 = vst [vmem:[#allocation4_spill] sm:$0xff] %v8631_v0  ;;  %v5025_v13 = vadd.f32 %v8484_v45, %v4882_v47  ;;  %4293 = vmatmul.bf16.gmra.mxu1 %v8631_v0 }
 0x831   : > { %v3966_v42 = vpop.f32.mrf.mxu0 }
 0x832   : > { %v5089_v53 = vmax.f32 %v5025_v13, 0.0  ;;  %4923 = vmatmul.bf16.gmra.mxu3 %v9387_v2  ;;  %v3967_v39 = vadd.f32 %v8344_v18, %v3966_v42  ;;  %v6691_v42 = vld [vmem:[%s8237_s2 + $0x90] sm:$0xff] }
 0x834   : > { %v8640_v29 = vpack.c.bf16 %v5089_v53, %v5088_v50  ;;  %5283 = vmatmul.bf16.gmra.mxu0 %v8104_v24  ;;  %v4036_v24 = vmax.f32 %v3967_v39, 0.0  ;;  %v9389_v39 = vpack.c.bf16 %v8527_v7, %v8524_v6  ;;  %6513 = vmatmul.msk.bf16.gmra.mxu2 %vm4526_vm2, %v6691_v42 }
 0x835   : > { %v4256_v9 = vpop.f32.mrf.mxu1  ;;  %v4884_v49 = vpop.f32.mrf.mxu3 }
 0x836   : > { %v8647_v41 = vadd.f32 %v8572_v32, %v4256_v9  ;;  %v4885_v28 = vadd.f32 %v4884_v49, %v4667_v56  ;;  %v4679_v56 = vpop.f32.mrf.mxu2 }
 0x838   : > { %v5026_v19 = vadd.f32 %v8484_v45, %v4885_v28 }
 0x839   : > { %v3968_v53 = vpop.f32.mrf.mxu0 }
 0x83a   : > { %v3969_v50 = vadd.f32 %v8344_v18, %v3968_v53  ;;  %v5090_v15 = vmax.f32 %v5026_v19, 0.0 }
 0x83c   : > { %v4037_v38 = vmax.f32 %v3969_v50, 0.0 }
 0x83d   : > { %v4259_v47 = vpop.f32.mrf.mxu1  ;;  %v4886_v13 = vpop.f32.mrf.mxu3 }
 0x83e   : > { %v4887_v11 = vadd.f32 %v4886_v13, %v4669_v21  ;;  %v8654_v2 = vpack.c.bf16 %v4037_v38, %v4036_v24  ;;  %v8667_v50 = vadd.f32 %v8572_v32, %v4259_v47  ;;  %v4682_v13 = vpop.f32.mrf.mxu2 }
 0x840   : > { %9388 = vst [vmem:[#allocation5_spill] sm:$0xff] %v8654_v2  ;;  %v5027_v9 = vadd.f32 %v8484_v45, %v4887_v11  ;;  %4298 = vmatmul.bf16.gmra.mxu1 %v8654_v2 }
 0x841   : > { %v3971_v49 = vpop.f32.mrf.mxu0 }
 0x842   : > { %v5091_v0 = vmax.f32 %v5027_v9, 0.0  ;;  %4928 = vmatmul.bf16.gmra.mxu3 %v9389_v39  ;;  %v3972_v6 = vadd.f32 %v8344_v18, %v3971_v49  ;;  %v6692_v49 = vld [vmem:[%s8237_s2 + $0x98] sm:$0xff] }
 0x844   : > { %v8663_v53 = vpack.c.bf16 %v5091_v0, %v5090_v15  ;;  %5288 = vmatmul.bf16.gmra.mxu0 %v8125_v51  ;;  %v4038_v51 = vmax.f32 %v3972_v6, 0.0  ;;  %6514 = vmatmul.msk.bf16.gmra.mxu2 %vm4526_vm2, %v6692_v49 }
 0x845   : > { %v4261_v21 = vpop.f32.mrf.mxu1  ;;  %v4889_v28 = vpop.f32.mrf.mxu3 }
 0x846   : > { %v8670_v24 = vadd.f32 %v8572_v32, %v4261_v21  ;;  %v4890_v38 = vadd.f32 %v4889_v28, %v4672_v10  ;;  %v4684_v10 = vpop.f32.mrf.mxu2 }
 0x848   : > { %v5028_v47 = vadd.f32 %v8484_v45, %v4890_v38 }
 0x849   : > { %v3973_v0 = vpop.f32.mrf.mxu0 }
 0x84a   : > { %v3974_v15 = vadd.f32 %v8344_v18, %v3973_v0  ;;  %v5092_v7 = vmax.f32 %v5028_v47, 0.0  ;;  %v9391_v18 = vpack.c.bf16 %v8550_v12, %v8547_v55 }
 0x84c   : > { %v4039_v19 = vmax.f32 %v3974_v15, 0.0 }
 0x84d   : > { %v4264_v11 = vpop.f32.mrf.mxu1  ;;  %v4891_v9 = vpop.f32.mrf.mxu3 }
 0x84e   : > { %v4892_v42 = vadd.f32 %v4891_v9, %v4674_v59  ;;  %v8677_v39 = vpack.c.bf16 %v4039_v19, %v4038_v51  ;;  %v8692_v0 = vadd.f32 %v8572_v32, %v4264_v11  ;;  %v4687_v19 = vpop.f32.mrf.mxu2 }
 0x850   : > { %9390 = vst [vmem:[#allocation6_spill] sm:$0xff] %v8677_v39  ;;  %v5029_v21 = vadd.f32 %v8484_v45, %v4892_v42  ;;  %4303 = vmatmul.bf16.gmra.mxu1 %v8677_v39  ;;  %v6693_v42 = vld [vmem:[%s8237_s2 + $0xa0] sm:$0xff] }
 0x851   : > { %v8682_v28 = vpop.f32.mrf.mxu0 }
 0x852   : > { %v5093_v2 = vmax.f32 %v5029_v21, 0.0  ;;  %4933 = vmatmul.bf16.gmra.mxu3 %v9391_v18  ;;  %v9392_v18 = vpack.c.bf16 %v8578_v22, %v8575_v14 }
 0x854   : > { %v8688_v38 = vpack.c.bf16 %v5093_v2, %v5092_v7  ;;  %5293 = vmatmul.bf16.gmra.mxu0 %v8143_v30  ;;  %6515 = vmatmul.msk.bf16.gmra.mxu2 %vm4526_vm2, %v6693_v42 }
 0x855   : > { %v4266_v59 = vpop.f32.mrf.mxu1  ;;  %v4894_v6 = vpop.f32.mrf.mxu3 }
 0x856   : > { %v8695_v15 = vadd.f32 %v8572_v32, %v4266_v59  ;;  %v4895_v51 = vadd.f32 %v4894_v6, %v4677_v40  ;;  %v4689_v47 = vpop.f32.mrf.mxu2 }
 0x858   : > { %v5030_v30 = vadd.f32 %v8484_v45, %v4895_v51 }
 0x859   : > { %v8699_v12 = vpop.f32.mrf.mxu0 }
 0x85a   : > { %v5094_v21 = vmax.f32 %v5030_v30, 0.0 }
 0x85d   : > { %v4269_v2 = vpop.f32.mrf.mxu1  ;;  %v4896_v7 = vpop.f32.mrf.mxu3 }
 0x85e   : > { %v4897_v9 = vadd.f32 %v4896_v7, %v4679_v56  ;;  %v4692_v30 = vpop.f32.mrf.mxu2 }
 0x860   : > { %v5031_v11 = vadd.f32 %v8484_v45, %v4897_v9  ;;  %6607 = vmatmul.msk.bf16.vlgmr.msrb.gmra.mxu1 %vm5438_vm3, %v8497_v4  ;;  %v8716_v4 = vadd.f32 %v8572_v32, %v4269_v2  ;;  %v6694_v2 = vld [vmem:[%s8237_s2 + $0xa8] sm:$0xff] }
 0x861   : > { %v8706_v40 = vpop.f32.mrf.mxu0 }
 0x862   : > { %v5095_v49 = vmax.f32 %v5031_v11, 0.0  ;;  %4938 = vmatmul.bf16.gmra.mxu3 %v9392_v18 }
 0x864   : > { %v8712_v59 = vpack.c.bf16 %v5095_v49, %v5094_v21  ;;  %5298 = vmatmul.bf16.gmra.mxu0 %v8167_v62  ;;  %6516 = vmatmul.msk.bf16.gmra.mxu2 %vm4526_vm2, %v6694_v2 }
 0x865   : > { %v4271_v56 = vpop.f32.mrf.mxu1  ;;  %v4899_v6 = vpop.f32.mrf.mxu3 }
 0x866   : > { %v8719_v51 = vadd.f32 %v8572_v32, %v4271_v56  ;;  %v4900_v7 = vadd.f32 %v4899_v6, %v4682_v13  ;;  %v4694_v21 = vpop.f32.mrf.mxu2  ;;  %v9393_v6 = vpack.c.bf16 %v8601_v48, %v8598_v46 }
 0x868   : > { %v5032_v62 = vadd.f32 %v8484_v45, %v4900_v7 }
 0x869   : > { %v8723_v22 = vpop.f32.mrf.mxu0 }
 0x86a   : > { %v5096_v13 = vmax.f32 %v5032_v62, 0.0 }
 0x86d   : > { %v4274_v9 = vpop.f32.mrf.mxu1  ;;  %v4901_v11 = vpop.f32.mrf.mxu3 }
 0x86e   : > { %v4902_v42 = vadd.f32 %v4901_v11, %v4684_v10  ;;  %v4697_v48 = vpop.f32.mrf.mxu2 }
 0x870   : > { %v5033_v49 = vadd.f32 %v8484_v45, %v4902_v42  ;;  %6608 = vmatmul.msk.bf16.gmra.mxu1 %vm5438_vm3, %v8520_v23  ;;  %v8740_v23 = vadd.f32 %v8572_v32, %v4274_v9  ;;  %v6695_v9 = vld [vmem:[%s8237_s2 + $0xb0] sm:$0xff] }
 0x871   : > { %v8730_v18 = vpop.f32.mrf.mxu0 }
 0x872   : > { %v5097_v56 = vmax.f32 %v5033_v49, 0.0  ;;  %4943 = vmatmul.bf16.gmra.mxu3 %v9393_v6 }
 0x874   : > { %v8736_v14 = vpack.c.bf16 %v5097_v56, %v5096_v13  ;;  %5303 = vmatmul.bf16.gmra.mxu0 %v8189_v27  ;;  %6517 = vmatmul.msk.bf16.gmra.mxu2 %vm4526_vm2, %v6695_v9 }
 0x875   : > { %v4276_v10 = vpop.f32.mrf.mxu1  ;;  %v4904_v7 = vpop.f32.mrf.mxu3 }
 0x876   : > { %v8743_v11 = vadd.f32 %v8572_v32, %v4276_v10  ;;  %v4905_v62 = vadd.f32 %v4904_v7, %v4687_v19  ;;  %v9394_v7 = vpack.c.bf16 %v8624_v8, %v8621_v43  ;;  %v4699_v46 = vpop.f32.mrf.mxu2 }
 0x878   : > { %v5034_v13 = vadd.f32 %v8484_v45, %v4905_v62 }
 0x879   : > { %v8747_v42 = vpop.f32.mrf.mxu0 }
 0x87a   : > { %v5098_v19 = vmax.f32 %v5034_v13, 0.0 }
 0x87d   : > { %v4279_v49 = vpop.f32.mrf.mxu1  ;;  %v4906_v2 = vpop.f32.mrf.mxu3 }
 0x87e   : > { %v4907_v27 = vadd.f32 %v4906_v2, %v4689_v47 }
 0x880   : > { %v5035_v56 = vadd.f32 %v8484_v45, %v4907_v27  ;;  %6609 = vmatmul.msk.bf16.gmra.mxu1 %vm5438_vm3, %v8543_v54  ;;  %v8764_v54 = vadd.f32 %v8572_v32, %v4279_v49  ;;  %v4702_v27 = vpop.f32.mrf.mxu2  ;;  %v6696_v49 = vld [vmem:[%s8237_s2 + $0xb8] sm:$0xff] }
 0x881   : > { %v8754_v6 = vpop.f32.mrf.mxu0 }
 0x882   : > { %v5099_v10 = vmax.f32 %v5035_v56, 0.0  ;;  %4948 = vmatmul.bf16.gmra.mxu3 %v9394_v7 }
 0x884   : > { %v8760_v55 = vpack.c.bf16 %v5099_v10, %v5098_v19  ;;  %5308 = vmatmul.bf16.gmra.mxu0 %v8211_v36  ;;  %6518 = vmatmul.msk.bf16.gmra.mxu2 %vm4526_vm2, %v6696_v49 }
 0x885   : > { %v4281_v47 = vpop.f32.mrf.mxu1  ;;  %v4909_v62 = vpop.f32.mrf.mxu3 }
 0x886   : > { %v8767_v2 = vadd.f32 %v8572_v32, %v4281_v47  ;;  %v4910_v13 = vadd.f32 %v4909_v62, %v4692_v30  ;;  %v9395_v62 = vpack.c.bf16 %v8647_v41, %v8644_v63  ;;  %v9396_v63 = vpack.c.bf16 %v8670_v24, %v8667_v50  ;;  %v6699_v50 = vld [vmem:[%s8237_s2 + $0xd0] sm:$0xff] }
 0x888   : > { %v5036_v19 = vadd.f32 %v8484_v45, %v4910_v13 }
 0x889   : > { %v8771_v8 = vpop.f32.mrf.mxu0 }
 0x88a   : > { %v5100_v30 = vmax.f32 %v5036_v19, 0.0 }
 0x88d   : > { %v4284_v56 = vpop.f32.mrf.mxu1  ;;  %v4911_v9 = vpop.f32.mrf.mxu3 }
 0x88e   : > { %v4912_v36 = vadd.f32 %v4911_v9, %v4694_v21 }
 0x890   : > { %v5037_v10 = vadd.f32 %v8484_v45, %v4912_v36  ;;  %6610 = vmatmul.msk.bf16.gmra.mxu1 %vm5438_vm3, %v8566_v26  ;;  %v8788_v26 = vadd.f32 %v8572_v32, %v4284_v56  ;;  %v4704_v36 = vpop.f32.mrf.mxu2 }
 0x891   : > { %v8778_v7 = vpop.f32.mrf.mxu0 }
 0x892   : > { %v5101_v47 = vmax.f32 %v5037_v10, 0.0  ;;  %4953 = vmatmul.bf16.gmra.mxu3 %v9395_v62  ;;  %v6697_v62 = vld [vmem:[%s8237_s2 + $0xc0] sm:$0xff] }
 0x894   : > { %v8784_v43 = vpack.c.bf16 %v5101_v47, %v5100_v30  ;;  %5313 = vmatmul.bf16.gmra.mxu0 %v8243_v16  ;;  %6519 = vmatmul.msk.bf16.gmra.mxu2 %vm4526_vm2, %v6697_v62 }
 0x895   : > { %v4286_v21 = vpop.f32.mrf.mxu1  ;;  %v4914_v13 = vpop.f32.mrf.mxu3 }
 0x896   : > { %v8791_v9 = vadd.f32 %v8572_v32, %v4286_v21  ;;  %v4915_v19 = vadd.f32 %v4914_v13, %v4697_v48 }
 0x898   : > { %v5038_v16 = vadd.f32 %v8484_v45, %v4915_v19  ;;  %v4707_v56 = vpop.f32.mrf.mxu2 }
 0x899   : > { %v8795_v41 = vpop.f32.mrf.mxu0 }
 0x89a   : > { %v5102_v21 = vmax.f32 %v5038_v16, 0.0 }
 0x89d   : > { %v4289_v10 = vpop.f32.mrf.mxu1  ;;  %v4916_v49 = vpop.f32.mrf.mxu3 }
 0x89e   : > { %v4917_v30 = vadd.f32 %v4916_v49, %v4699_v46 }
 0x8a0   : > { %v5039_v47 = vadd.f32 %v8484_v45, %v4917_v30  ;;  %6611 = vmatmul.msk.bf16.gmra.mxu1 %vm5438_vm3, %v8594_v20  ;;  %v8812_v20 = vadd.f32 %v8572_v32, %v4289_v10  ;;  %v4709_v24 = vpop.f32.mrf.mxu2  ;;  %v6698_v10 = vld [vmem:[%s8237_s2 + $0xc8] sm:$0xff] }
 0x8a1   : > { %v8802_v13 = vpop.f32.mrf.mxu0 }
 0x8a2   : > { %v5103_v48 = vmax.f32 %v5039_v47, 0.0  ;;  %4958 = vmatmul.bf16.gmra.mxu3 %v9396_v63 }
 0x8a4   : > { %v8808_v39 = vpack.c.bf16 %v5103_v48, %v5102_v21  ;;  %5318 = vmatmul.bf16.gmra.mxu0 %v8264_v5  ;;  %6520 = vmatmul.msk.bf16.gmra.mxu2 %vm4526_vm2, %v6698_v10 }
 0x8a5   : > { %v4291_v46 = vpop.f32.mrf.mxu1  ;;  %v4919_v19 = vpop.f32.mrf.mxu3 }
 0x8a6   : > { %v8815_v49 = vadd.f32 %v8572_v32, %v4291_v46  ;;  %v4920_v16 = vadd.f32 %v4919_v19, %v4702_v27  ;;  %v9397_v27 = vpack.c.bf16 %v8695_v15, %v8692_v0 }
 0x8a8   : > { %v5040_v62 = vadd.f32 %v8484_v45, %v4920_v16  ;;  %v4712_v16 = vpop.f32.mrf.mxu2 }
 0x8a9   : > { %v8819_v63 = vpop.f32.mrf.mxu0 }
 0x8aa   : > { %v5104_v48 = vmax.f32 %v5040_v62, 0.0 }
 0x8ad   : > { %v4294_v30 = vpop.f32.mrf.mxu1  ;;  %v4921_v47 = vpop.f32.mrf.mxu3 }
 0x8ae   : > { %v4922_v5 = vadd.f32 %v4921_v47, %v4704_v36 }
 0x8b0   : > { %v5041_v21 = vadd.f32 %v8484_v45, %v4922_v5  ;;  %6612 = vmatmul.msk.bf16.gmra.mxu1 %vm5438_vm3, %v8617_v1  ;;  %v8834_v5 = vadd.f32 %v8572_v32, %v4294_v30 }
 0x8b1   : > { %v8836_v1 = vpop.f32.mrf.mxu0 }
 0x8b2   : > { %v5105_v46 = vmax.f32 %v5041_v21, 0.0  ;;  %4963 = vmatmul.bf16.gmra.mxu3 %v9397_v27 }
 0x8b4   : > { %v8830_v19 = vpack.c.bf16 %v5105_v46, %v5104_v48  ;;  %5323 = vmatmul.bf16.gmra.mxu0 %v8281_v52  ;;  %v4714_v46 = vpop.f32.mrf.mxu2  ;;  %6521 = vmatmul.msk.bf16.gmra.mxu2 %vm4526_vm2, %v6699_v50 }
 0x8b5   : > { %v4296_v36 = vpop.f32.mrf.mxu1  ;;  %v4924_v47 = vpop.f32.mrf.mxu3 }
 0x8b6   : > { %v8839_v62 = vadd.f32 %v8572_v32, %v4296_v36  ;;  %v4925_v0 = vadd.f32 %v4924_v47, %v4707_v56  ;;  %v9398_v56 = vpack.c.bf16 %v8719_v51, %v8716_v4 }
 0x8b8   : > { %v4357_v15 = vpack.c.bf16 %v8839_v62, %v8834_v5  ;;  %v5042_v52 = vadd.f32 %v8484_v45, %v4925_v0 }
 0x8b9   : > { %v8844_v27 = vpop.f32.mrf.mxu0 }
 0x8ba   : > { %v5106_v36 = vmax.f32 %v5042_v52, 0.0 }
 0x8bc   : > { %v4717_v51 = vpop.f32.mrf.mxu2 }
 0x8bd   : > { %v4299_v21 = vpop.f32.mrf.mxu1  ;;  %v4926_v10 = vpop.f32.mrf.mxu3 }
 0x8be   : > { %v4927_v48 = vadd.f32 %v4926_v10, %v4709_v24  ;;  %v8858_v10 = vadd.f32 %v8572_v32, %v4299_v21  ;;  %v6700_v21 = vld [vmem:[%s8237_s2 + $0xd8] sm:$0xff] }
 0x8c0   : > { %v5043_v30 = vadd.f32 %v8484_v45, %v4927_v48  ;;  %6613 = vmatmul.msk.bf16.gmra.mxu1 %vm5438_vm3, %v8640_v29 }
 0x8c1   : > { %v8865_v48 = vpop.f32.mrf.mxu0 }
 0x8c2   : > { %v5107_v3 = vmax.f32 %v5043_v30, 0.0  ;;  %4968 = vmatmul.bf16.gmra.mxu3 %v9398_v56 }
 0x8c4   : > { %v8854_v47 = vpack.c.bf16 %v5107_v3, %v5106_v36  ;;  %5328 = vmatmul.bf16.gmra.mxu0 %v8307_v17  ;;  %6522 = vmatmul.msk.bf16.gmra.mxu2 %vm4526_vm2, %v6700_v21 }
 0x8c5   : > { %v4301_v24 = vpop.f32.mrf.mxu1  ;;  %v4929_v0 = vpop.f32.mrf.mxu3 }
 0x8c6   : > { %v8861_v29 = vadd.f32 %v8572_v32, %v4301_v24  ;;  %v4930_v52 = vadd.f32 %v4929_v0, %v4712_v16  ;;  %v9399_v24 = vpack.c.bf16 %v8743_v11, %v8740_v23  ;;  %v4719_v0 = vpop.f32.mrf.mxu2  ;;  %v8893_v11 = vld [vmem:[%s9340_s26] ss:$0 sm:$0xff] }
 0x8c8   : > { %v5044_v30 = vadd.f32 %v8484_v45, %v4930_v52 }
 0x8c9   : > { %v8876_v4 = vpop.f32.mrf.mxu0 }
 0x8ca   : > { %v5108_v56 = vmax.f32 %v5044_v30, 0.0 }
 0x8cd   : > { %v4304_v3 = vpop.f32.mrf.mxu1  ;;  %v4931_v50 = vpop.f32.mrf.mxu3 }
 0x8ce   : > { %v4932_v17 = vadd.f32 %v4931_v50, %v4714_v46 }
 0x8d0   : > { %v5045_v36 = vadd.f32 %v8484_v45, %v4932_v17  ;;  %6614 = vmatmul.msk.bf16.gmra.mxu1 %vm5438_vm3, %v8663_v53  ;;  %v8882_v53 = vadd.f32 %v8572_v32, %v4304_v3 }
 0x8d2   : > { %v5109_v16 = vmax.f32 %v5045_v36, 0.0  ;;  %4973 = vmatmul.bf16.gmra.mxu3 %v9399_v24 }
 0x8d4   : > { %v8878_v52 = vpack.c.bf16 %v5109_v16, %v5108_v56  ;;  %5333 = vmatmul.bf16.gmra.mxu0 %v8327_v57  ;;  %v4722_v57 = vpop.f32.mrf.mxu2  ;;  %v8895_v56 = vpop.f32.mrf.mxu0 }
 0x8d5   : > { %v4306_v46 = vpop.f32.mrf.mxu1  ;;  %v4934_v50 = vpop.f32.mrf.mxu3 }
 0x8d6   : > { %v8885_v30 = vadd.f32 %v8572_v32, %v4306_v46  ;;  %v4935_v17 = vadd.f32 %v4934_v50, %v4717_v51  ;;  %v6701_v46 = vld [vmem:[%s8237_s2 + $0xe0] sm:$0xff] }
 0x8d7   : > { %6523 = vmatmul.msk.bf16.gmra.mxu2 %vm4526_vm2, %v6701_v46 }
 0x8d8   : > { %v4359_v23 = vpack.c.bf16 %v8885_v30, %v8882_v53  ;;  %v5046_v3 = vadd.f32 %v8484_v45, %v4935_v17 }
 0x8da   : > { %v5110_v50 = vmax.f32 %v5046_v3, 0.0 }
 0x8dc   : > { %v4724_v3 = vpop.f32.mrf.mxu2 }
 0x8dd   : > { %v4936_v36 = vpop.f32.mrf.mxu3  ;;  %v5544_v21 = vpop.f32.mrf.mxu1 }
 0x8de   : > { %v4937_v32 = vadd.f32 %v4936_v36, %v4719_v0  ;;  %v5545_v51 = vadd.f32 %v5544_v21, %v8682_v28  ;;  %v9400_v28 = vpack.c.bf16 %v8767_v2, %v8764_v54 }
 0x8e0   : > { %v5047_v16 = vadd.f32 %v8484_v45, %v4937_v32  ;;  %v5707_v24 = vadd.f32 %v8893_v11, %v5545_v51  ;;  %6615 = vmatmul.msk.bf16.gmra.mxu1 %vm5438_vm3, %v8688_v38  ;;  %v8919_v51 = vpop.f32.mrf.mxu0 }
 0x8e2   : > { %v5111_v0 = vmax.f32 %v5047_v16, 0.0  ;;  %5772 = vst.msk [vmem:[%s8902_s1] sm:$0xff] %vm5771_vm4, %v5707_v24  ;;  %4978 = vmatmul.bf16.gmra.mxu3 %v9400_v28 }
 0x8e4   : > { %v8915_v17 = vpack.c.bf16 %v5111_v0, %v5110_v50  ;;  %5338 = vmatmul.bf16.gmra.mxu0 %v8352_v35  ;;  %v4727_v0 = vpop.f32.mrf.mxu2 }
 0x8e5   : > { %v4939_v36 = vpop.f32.mrf.mxu3  ;;  %v5546_v21 = vpop.f32.mrf.mxu1 }
 0x8e6   : > { %v4940_v38 = vadd.f32 %v4939_v36, %v4722_v57  ;;  %v5547_v32 = vadd.f32 %v5546_v21, %v8699_v12  ;;  %v6702_v12 = vld [vmem:[%s8237_s2 + $0xe8] sm:$0xff] }
 0x8e7   : > { %6524 = vmatmul.msk.bf16.gmra.mxu2 %vm4526_vm2, %v6702_v12 }
 0x8e8   : > { %v5708_v16 = vadd.f32 %v8893_v11, %v5547_v32  ;;  %v5048_v24 = vadd.f32 %v8484_v45, %v4940_v38  ;;  %v8931_v28 = vpop.f32.mrf.mxu0  ;;  %v9401_v38 = vpack.c.bf16 %v8791_v9, %v8788_v26 }
 0x8ea   : > { %5773 = vst.msk [vmem:[%s8902_s1 + $0x8] sm:$0xff] %vm5771_vm4, %v5708_v16  ;;  %v5112_v36 = vmax.f32 %v5048_v24, 0.0 }
 0x8ed   : > { %v4941_v54 = vpop.f32.mrf.mxu3  ;;  %v5549_v2 = vpop.f32.mrf.mxu1 }
 0x8ee   : > { %v4942_v46 = vadd.f32 %v4941_v54, %v4724_v3  ;;  %v5550_v35 = vadd.f32 %v5549_v2, %v8706_v40  ;;  %v4729_v2 = vpop.f32.mrf.mxu2 }
 0x8f0   : > { %v5049_v50 = vadd.f32 %v8484_v45, %v4942_v46  ;;  %v5709_v57 = vadd.f32 %v8893_v11, %v5550_v35  ;;  %6616 = vmatmul.msk.bf16.gmra.mxu1 %vm5438_vm3, %v8712_v59  ;;  %v8946_v26 = vpop.f32.mrf.mxu0 }
 0x8f2   : > { %v5113_v21 = vmax.f32 %v5049_v50, 0.0  ;;  %5774 = vst.msk [vmem:[%s8902_s1 + $0x10] sm:$0xff] %vm5771_vm4, %v5709_v57  ;;  %4983 = vmatmul.bf16.gmra.mxu3 %v9401_v38  ;;  %v6703_v57 = vld [vmem:[%s8237_s2 + $0xf0] sm:$0xff] }
 0x8f4   : > { %v8939_v40 = vpack.c.bf16 %v5113_v21, %v5112_v36  ;;  %5343 = vmatmul.bf16.gmra.mxu0 %v8372_v31  ;;  %v9402_v36 = vpack.c.bf16 %v8815_v49, %v8812_v20 }
 0x8f5   : > { %v4944_v59 = vpop.f32.mrf.mxu3  ;;  %v5551_v32 = vpop.f32.mrf.mxu1 }
 0x8f6   : > { %v4945_v3 = vadd.f32 %v4944_v59, %v4727_v0  ;;  %v5552_v16 = vadd.f32 %v5551_v32, %v8723_v22 }
 0x8f7   : > { %6525 = vmatmul.msk.bf16.gmra.mxu2 %vm4526_vm2, %v6703_v57 }
 0x8f8   : > { %v5710_v54 = vadd.f32 %v8893_v11, %v5552_v16  ;;  %v5050_v46 = vadd.f32 %v8484_v45, %v4945_v3  ;;  %v8964_v21 = vpop.f32.mrf.mxu0 }
 0x8fa   : > { %5775 = vst.msk [vmem:[%s8902_s1 + $0x18] sm:$0xff] %vm5771_vm4, %v5710_v54  ;;  %v5114_v12 = vmax.f32 %v5050_v46, 0.0 }
 0x8fd   : > { %v4946_v9 = vpop.f32.mrf.mxu3  ;;  %v5554_v24 = vpop.f32.mrf.mxu1 }
 0x8fe   : > { %v4947_v35 = vadd.f32 %v4946_v9, %v4729_v2  ;;  %v5555_v31 = vadd.f32 %v5554_v24, %v8730_v18 }
 0x900   : > { %v5051_v50 = vadd.f32 %v8484_v45, %v4947_v35  ;;  %v5711_v22 = vadd.f32 %v8893_v11, %v5555_v31  ;;  %6617 = vmatmul.msk.bf16.gmra.mxu1 %vm5438_vm3, %v8736_v14  ;;  %v8971_v49 = vpop.f32.mrf.mxu0 }
 0x902   : > { %v5115_v0 = vmax.f32 %v5051_v50, 0.0  ;;  %5776 = vst.msk [vmem:[%s8902_s1 + $0x20] sm:$0xff] %vm5771_vm4, %v5711_v22  ;;  %4988 = vmatmul.bf16.gmra.mxu3 %v9402_v36  ;;  %v4732_v50 = vpop.f32.mrf.mxu2 }
 0x904   : > { %v8961_v18 = vpack.c.bf16 %v5115_v0, %v5114_v12  ;;  %5348 = vmatmul.bf16.gmra.mxu0 %v8395_v44  ;;  %v6704_v44 = vld [vmem:[%s8237_s2 + $0xf8] sm:$0xff] }
 0x905   : > { %v5556_v45 = vpop.f32.mrf.mxu1  ;;  %v4949_v22 = vpop.f32.mrf.mxu3 }
 0x906   : > { %v5557_v14 = vadd.f32 %v5556_v45, %v8747_v42 }
 0x907   : > { %6526 = vmatmul.msk.bf16.gmra.mxu2 %vm4526_vm2, %v6704_v44 }
 0x908   : > { %v5712_v38 = vadd.f32 %v8893_v11, %v5557_v14  ;;  %v8986_v16 = vpop.f32.mrf.mxu0 }
 0x90a   : > { %5777 = vst.msk [vmem:[%s8902_s1 + $0x28] sm:$0xff] %vm5771_vm4, %v5712_v38 }
 0x90d   : > { %v5559_v59 = vpop.f32.mrf.mxu1 }
 0x90e   : > { %v5560_v20 = vadd.f32 %v5559_v59, %v8754_v6 }
 0x910   : > { %v5713_v32 = vadd.f32 %v8893_v11, %v5560_v20  ;;  %6618 = vmatmul.msk.bf16.gmra.mxu1 %vm5438_vm3, %v8760_v55 }
 0x912   : > { %5778 = vst.msk [vmem:[%s8902_s1 + $0x30] sm:$0xff] %vm5771_vm4, %v5713_v32  ;;  %4993 = vmatmul.bf16.gmra.mxu3 %v4357_v15 }
 0x914   : > { %5353 = vmatmul.bf16.gmra.mxu0 %v8415_v33  ;;  %v9403_v33 = vpack.c.bf16 %v8861_v29, %v8858_v10 }
 0x915   : > { %v5561_v42 = vpop.f32.mrf.mxu1 }
 0x916   : > { %v5562_v6 = vadd.f32 %v5561_v42, %v8771_v8  ;;  %v8999_v8 = vpop.f32.mrf.mxu0 }
 0x918   : > { %v5714_v3 = vadd.f32 %v8893_v11, %v5562_v6 }
 0x91a   : > { %5779 = vst.msk [vmem:[%s8902_s1 + $0x38] sm:$0xff] %vm5771_vm4, %v5714_v3 }
 0x91d   : > { %v5564_v55 = vpop.f32.mrf.mxu1 }
 0x91e   : > { %v5565_v54 = vadd.f32 %v5564_v55, %v8778_v7 }
 0x920   : > { %v5715_v5 = vadd.f32 %v8893_v11, %v5565_v54  ;;  %6619 = vmatmul.msk.bf16.gmra.mxu1 %vm5438_vm3, %v8784_v43  ;;  %v9006_v43 = vpop.f32.mrf.mxu0 }
 0x922   : > { %5780 = vst.msk [vmem:[%s8902_s1 + $0x40] sm:$0xff] %vm5771_vm4, %v5715_v5  ;;  %4998 = vmatmul.bf16.gmra.mxu3 %v9403_v33 }
 0x924   : > { %5358 = vmatmul.bf16.gmra.mxu0 %v8438_v25 }
 0x925   : > { %v5566_v62 = vpop.f32.mrf.mxu1 }
 0x926   : > { %v5567_v7 = vadd.f32 %v5566_v62, %v8795_v41 }
 0x928   : > { %v5716_v15 = vadd.f32 %v8893_v11, %v5567_v7  ;;  %v9019_v29 = vpop.f32.mrf.mxu0 }
 0x92a   : > { %5781 = vst.msk [vmem:[%s8902_s1 + $0x48] sm:$0xff] %vm5771_vm4, %v5716_v15 }
 0x92d   : > { %v5569_v2 = vpop.f32.mrf.mxu1 }
 0x92e   : > { %v5570_v9 = vadd.f32 %v5569_v2, %v8802_v13 }
 0x930   : > { %v5717_v10 = vadd.f32 %v8893_v11, %v5570_v9  ;;  %6620 = vmatmul.msk.bf16.gmra.mxu1 %vm5438_vm3, %v8808_v39 }
 0x932   : > { %5782 = vst.msk [vmem:[%s8902_s1 + $0x50] sm:$0xff] %vm5771_vm4, %v5717_v10  ;;  %5003 = vmatmul.bf16.gmra.mxu3 %v4359_v23 }
 0x934   : > { %5363 = vmatmul.bf16.gmra.mxu0 %v8461_v37  ;;  %v9028_v37 = vpop.f32.mrf.mxu0 }
 0x935   : > { %v5571_v25 = vpop.f32.mrf.mxu1 }
 0x936   : > { %v5572_v41 = vadd.f32 %v5571_v25, %v8819_v63 }
 0x938   : > { %v5718_v13 = vadd.f32 %v8893_v11, %v5572_v41 }
 0x93a   : > { %5783 = vst.msk [vmem:[%s8902_s1 + $0x58] sm:$0xff] %vm5771_vm4, %v5718_v13 }
 0x93d   : > { %v5574_v24 = vpop.f32.mrf.mxu1 }
 0x93e   : > { %v5575_v39 = vadd.f32 %v5574_v24, %v8836_v1  ;;  %v9037_v1 = vpop.f32.mrf.mxu0 }
 0x940   : > { %v5719_v46 = vadd.f32 %v8893_v11, %v5575_v39  ;;  %6621 = vmatmul.msk.bf16.gmra.mxu1 %vm5438_vm3, %v8830_v19  ;;  %v9405_v39 = vld [vmem:[#allocation3_spill] sm:$0xff] }
 0x942   : > { %5784 = vst.msk [vmem:[%s8902_s1 + $0x60] sm:$0xff] %vm5771_vm4, %v5719_v46 }
 0x944   : > { %5368 = vmatmul.bf16.gmra.mxu0 %v8488_v58 }
 0x945   : > { %v5576_v63 = vpop.f32.mrf.mxu1 }
 0x946   : > { %v5577_v53 = vadd.f32 %v5576_v63, %v8844_v27  ;;  %v9046_v27 = vpop.f32.mrf.mxu0 }
 0x948   : > { %v5720_v30 = vadd.f32 %v8893_v11, %v5577_v53 }
 0x94a   : > { %5785 = vst.msk [vmem:[%s8902_s1 + $0x68] sm:$0xff] %vm5771_vm4, %v5720_v30 }
 0x94d   : > { %v5579_v23 = vpop.f32.mrf.mxu1 }
 0x94e   : > { %v5580_v35 = vadd.f32 %v5579_v23, %v8865_v48  ;;  %v9053_v12 = vpop.f32.mrf.mxu0 }
 0x950   : > { %v5721_v19 = vadd.f32 %v8893_v11, %v5580_v35  ;;  %6622 = vmatmul.msk.bf16.gmra.mxu1 %vm5438_vm3, %v8854_v47 }
 0x952   : > { %5786 = vst.msk [vmem:[%s8902_s1 + $0x70] sm:$0xff] %vm5771_vm4, %v5721_v19 }
 0x954   : > { %5373 = vmatmul.bf16.gmra.mxu0 %v8511_v61  ;;  %v4734_v61 = vpop.f32.mrf.mxu2 }
 0x955   : > { %v5581_v58 = vpop.f32.mrf.mxu1 }
 0x956   : > { %v5582_v31 = vadd.f32 %v5581_v58, %v8876_v4  ;;  %v4951_v4 = vpop.f32.mrf.mxu3 }
 0x957   : > { %v4952_v25 = vadd.f32 %v4951_v4, %v4734_v61 }
 0x958   : > { %v5722_v48 = vadd.f32 %v8893_v11, %v5582_v31 }
 0x95a   : > { %5787 = vst.msk [vmem:[%s8902_s1 + $0x78] sm:$0xff] %vm5771_vm4, %v5722_v48 }
 0x95c   : > { %v4737_v38 = vpop.f32.mrf.mxu2 }
 0x95d   : > { %v5584_v57 = vpop.f32.mrf.mxu1 }
 0x95e   : > { %v5585_v47 = vadd.f32 %v5584_v57, %v8895_v56  ;;  %v9063_v56 = vpop.f32.mrf.mxu0  ;;  %v4954_v59 = vpop.f32.mrf.mxu3 }
 0x960   : > { %v5723_v0 = vadd.f32 %v8893_v11, %v5585_v47  ;;  %6623 = vmatmul.msk.bf16.gmra.mxu1 %vm5438_vm3, %v8878_v52  ;;  %v4955_v47 = vadd.f32 %v4954_v59, %v4737_v38 }
 0x962   : > { %5788 = vst.msk [vmem:[%s8902_s1 + $0x80] sm:$0xff] %vm5771_vm4, %v5723_v0  ;;  %v9406_v0 = vld [vmem:[#allocation4_spill] sm:$0xff] }
 0x964   : > { %5378 = vmatmul.bf16.gmra.mxu0 %v8534_v60  ;;  %v4739_v44 = vpop.f32.mrf.mxu2 }
 0x965   : > { %v5586_v36 = vpop.f32.mrf.mxu1 }
 0x966   : > { %v5587_v45 = vadd.f32 %v5586_v36, %v8919_v51  ;;  %v9073_v60 = vpop.f32.mrf.mxu0  ;;  %v4956_v42 = vpop.f32.mrf.mxu3 }
 0x968   : > { %v5724_v14 = vadd.f32 %v8893_v11, %v5587_v45 }
 0x96a   : > { %5789 = vst.msk [vmem:[%s8902_s1 + $0x88] sm:$0xff] %vm5771_vm4, %v5724_v14 }
 0x96c   : > { %v9083_v54 = vpop.f32.mrf.mxu2 }
 0x96d   : > { %v5589_v52 = vpop.f32.mrf.mxu1 }
 0x96e   : > { %v5590_v20 = vadd.f32 %v5589_v52, %v8931_v28  ;;  %v9080_v55 = vpop.f32.mrf.mxu0  ;;  %v9085_v5 = vpop.f32.mrf.mxu3 }
 0x970   : > { %v5725_v32 = vadd.f32 %v8893_v11, %v5590_v20  ;;  %6624 = vmatmul.msk.bf16.gmra.mxu1 %vm5438_vm3, %v8915_v17 }
 0x972   : > { %5790 = vst.msk [vmem:[%s8902_s1 + $0x90] sm:$0xff] %vm5771_vm4, %v5725_v32 }
 0x974   : > { %5383 = vmatmul.bf16.gmra.mxu0 %v8557_v34  ;;  %v4744_v15 = vpop.f32.mrf.mxu2 }
 0x975   : > { %v5591_v51 = vpop.f32.mrf.mxu1 }
 0x976   : > { %v5592_v6 = vadd.f32 %v5591_v51, %v8946_v26  ;;  %v9404_v26 = vld [vmem:[#allocation2_spill] sm:$0xff]  ;;  %v9094_v7 = vpop.f32.mrf.mxu0  ;;  %v4961_v2 = vpop.f32.mrf.mxu3 }
 0x978   : > { %v5726_v3 = vadd.f32 %v8893_v11, %v5592_v6  ;;  %v4962_v6 = vadd.f32 %v4961_v2, %v4744_v15 }
 0x97a   : > { %5791 = vst.msk [vmem:[%s8902_s1 + $0x98] sm:$0xff] %vm5771_vm4, %v5726_v3 }
 0x97c   : > { %v9107_v13 = vpop.f32.mrf.mxu2 }
 0x97d   : > { %v5594_v28 = vpop.f32.mrf.mxu1 }
 0x97e   : > { %v5595_v17 = vadd.f32 %v5594_v28, %v8964_v21  ;;  %v9103_v41 = vpop.f32.mrf.mxu0  ;;  %v9109_v24 = vpop.f32.mrf.mxu3 }
 0x980   : > { %v5727_v34 = vadd.f32 %v8893_v11, %v5595_v17  ;;  %6625 = vmatmul.msk.bf16.gmra.mxu1 %vm5438_vm3, %v8939_v40  ;;  %v4960_v17 = vadd.f32 %v9085_v5, %v9083_v54 }
 0x982   : > { %5792 = vst.msk [vmem:[%s8902_s1 + $0xa0] sm:$0xff] %vm5771_vm4, %v5727_v34  ;;  %v9407_v34 = vld [vmem:[#allocation5_spill] sm:$0xff] }
 0x984   : > { %5388 = vmatmul.bf16.gmra.mxu0 %v9404_v26 }
 0x985   : > { %v5596_v33 = vpop.f32.mrf.mxu1 }
 0x986   : > { %v5597_v62 = vadd.f32 %v5596_v33, %v8971_v49  ;;  %v4950_v49 = vadd.f32 %v4949_v22, %v4732_v50  ;;  %v9123_v19 = vpop.f32.mrf.mxu0  ;;  %v4749_v50 = vpop.f32.mrf.mxu2 }
 0x987   : > { %v4966_v22 = vpop.f32.mrf.mxu3 }
 0x988   : > { %v5728_v21 = vadd.f32 %v8893_v11, %v5597_v62 }
 0x98a   : > { %5793 = vst.msk [vmem:[%s8902_s1 + $0xa8] sm:$0xff] %vm5771_vm4, %v5728_v21 }
 0x98d   : > { %v5599_v9 = vpop.f32.mrf.mxu1 }
 0x98e   : > { %v5600_v10 = vadd.f32 %v5599_v9, %v8986_v16  ;;  %v9115_v16 = vld [vmem:[%s9337_s23] ss:$0 sm:$0xff]  ;;  %v9132_v36 = vpop.f32.mrf.mxu0  ;;  %v4752_v14 = vpop.f32.mrf.mxu2 }
 0x98f   : > { %v5052_v53 = vadd.f32 %v9115_v16, %v4950_v49  ;;  %v4969_v52 = vpop.f32.mrf.mxu3  ;;  %v5056_v62 = vadd.f32 %v9115_v16, %v4960_v17 }
 0x990   : > { %v5729_v40 = vadd.f32 %v8893_v11, %v5600_v10  ;;  %6626 = vmatmul.msk.bf16.gmra.mxu1 %vm5438_vm3, %v8961_v18  ;;  %v5053_v18 = vadd.f32 %v9115_v16, %v4952_v25 }
 0x991   : > { %v5116_v35 = vmax.f32 %v5052_v53, 0.0  ;;  %v5120_v9 = vmax.f32 %v5056_v62, 0.0 }
 0x992   : > { %5794 = vst.msk [vmem:[%s8902_s1 + $0xb0] sm:$0xff] %vm5771_vm4, %v5729_v40  ;;  %v5117_v23 = vmax.f32 %v5053_v18, 0.0  ;;  %v9408_v18 = vld [vmem:[#allocation6_spill] sm:$0xff] }
 0x994   : > { %5393 = vmatmul.bf16.gmra.mxu0 %v9405_v39  ;;  %v5185_v31 = vpack.c.bf16 %v5117_v23, %v5116_v35  ;;  %v4965_v39 = vadd.f32 %v9109_v24, %v9107_v13 }
 0x995   : > { %v5601_v46 = vpop.f32.mrf.mxu1 }
 0x996   : > { %v5602_v63 = vadd.f32 %v5601_v46, %v8999_v8  ;;  %v4957_v8 = vadd.f32 %v4956_v42, %v4739_v44  ;;  %v9140_v42 = vpop.f32.mrf.mxu0  ;;  %v4754_v3 = vpop.f32.mrf.mxu2  ;;  %v5058_v35 = vadd.f32 %v9115_v16, %v4965_v39 }
 0x997   : > { %v4971_v28 = vpop.f32.mrf.mxu3 }
 0x998   : > { %v5730_v30 = vadd.f32 %v8893_v11, %v5602_v63  ;;  %v5055_v4 = vadd.f32 %v9115_v16, %v4957_v8  ;;  %v5122_v13 = vmax.f32 %v5058_v35, 0.0 }
 0x99a   : > { %5795 = vst.msk [vmem:[%s8902_s1 + $0xb8] sm:$0xff] %vm5771_vm4, %v5730_v30  ;;  %v5119_v32 = vmax.f32 %v5055_v4, 0.0 }
 0x99d   : > { %v5604_v58 = vpop.f32.mrf.mxu1 }
 0x99e   : > { %v5605_v48 = vadd.f32 %v5604_v58, %v9006_v43  ;;  %v5054_v43 = vadd.f32 %v9115_v16, %v4955_v47  ;;  %v9153_v2 = vpop.f32.mrf.mxu0  ;;  %v4757_v10 = vpop.f32.mrf.mxu2  ;;  %v4970_v47 = vadd.f32 %v4969_v52, %v4752_v14 }
 0x99f   : > { %v4974_v54 = vpop.f32.mrf.mxu3 }
 0x9a0   : > { %v5731_v57 = vadd.f32 %v8893_v11, %v5605_v48  ;;  %6627 = vmatmul.msk.bf16.gmra.mxu1 %vm5438_vm3, %v5185_v31  ;;  %v5118_v38 = vmax.f32 %v5054_v43, 0.0 }
 0x9a2   : > { %5796 = vst.msk [vmem:[%s8902_s1 + $0xc0] sm:$0xff] %vm5771_vm4, %v5731_v57  ;;  %v5186_v51 = vpack.c.bf16 %v5119_v32, %v5118_v38 }
 0x9a4   : > { %5398 = vmatmul.bf16.gmra.mxu0 %v9406_v0 }
 0x9a5   : > { %v5606_v61 = vpop.f32.mrf.mxu1 }
 0x9a6   : > { %v5607_v45 = vadd.f32 %v5606_v61, %v9019_v29  ;;  %v9164_v46 = vpop.f32.mrf.mxu0  ;;  %v4759_v30 = vpop.f32.mrf.mxu2 }
 0x9a8   : > { %v5732_v20 = vadd.f32 %v8893_v11, %v5607_v45  ;;  %v5060_v45 = vadd.f32 %v9115_v16, %v4970_v47 }
 0x9aa   : > { %5797 = vst.msk [vmem:[%s8902_s1 + $0xc8] sm:$0xff] %vm5771_vm4, %v5732_v20  ;;  %v5124_v38 = vmax.f32 %v5060_v45, 0.0 }
 0x9ad   : > { %v5609_v59 = vpop.f32.mrf.mxu1 }
 0x9ae   : > { %v5610_v44 = vadd.f32 %v5609_v59, %v9028_v37  ;;  %v5057_v37 = vadd.f32 %v9115_v16, %v4962_v6  ;;  %v4762_v48 = vpop.f32.mrf.mxu2 }
 0x9b0   : > { %v5733_v29 = vadd.f32 %v8893_v11, %v5610_v44  ;;  %6628 = vmatmul.msk.bf16.gmra.mxu1 %vm5438_vm3, %v5186_v51  ;;  %v5121_v15 = vmax.f32 %v5057_v37, 0.0  ;;  %v4975_v44 = vadd.f32 %v4974_v54, %v4757_v10  ;;  %v5354_v10 = vpop.f32.mrf.mxu0 }
 0x9b2   : > { %5798 = vst.msk [vmem:[%s8902_s1 + $0xd0] sm:$0xff] %vm5771_vm4, %v5733_v29  ;;  %v5187_v40 = vpack.c.bf16 %v5121_v15, %v5120_v9 }
 0x9b4   : > { %5403 = vmatmul.bf16.gmra.mxu0 %v9407_v34  ;;  %v5062_v34 = vadd.f32 %v9115_v16, %v4975_v44 }
 0x9b5   : > { %v5611_v26 = vpop.f32.mrf.mxu1 }
 0x9b6   : > { %v5612_v33 = vadd.f32 %v5611_v26, %v9037_v1  ;;  %v4967_v1 = vadd.f32 %v4966_v22, %v4749_v50  ;;  %v4764_v20 = vpop.f32.mrf.mxu2  ;;  %v5126_v37 = vmax.f32 %v5062_v34, 0.0 }
 0x9b8   : > { %v5734_v21 = vadd.f32 %v8893_v11, %v5612_v33  ;;  %v5059_v53 = vadd.f32 %v9115_v16, %v4967_v1 }
 0x9ba   : > { %5799 = vst.msk [vmem:[%s8902_s1 + $0xd8] sm:$0xff] %vm5771_vm4, %v5734_v21  ;;  %v5123_v31 = vmax.f32 %v5059_v53, 0.0 }
 0x9bc   : > { %v5188_v50 = vpack.c.bf16 %v5123_v31, %v5122_v13 }
 0x9bd   : > { %v5614_v5 = vpop.f32.mrf.mxu1 }
 0x9be   : > { %v5615_v25 = vadd.f32 %v5614_v5, %v9046_v27  ;;  %v4976_v27 = vpop.f32.mrf.mxu3  ;;  %v4767_v29 = vpop.f32.mrf.mxu2 }
 0x9c0   : > { %v5735_v49 = vadd.f32 %v8893_v11, %v5615_v25  ;;  %6629 = vmatmul.msk.bf16.gmra.mxu1 %vm5438_vm3, %v5187_v40 }
 0x9c2   : > { %5800 = vst.msk [vmem:[%s8902_s1 + $0xe0] sm:$0xff] %vm5771_vm4, %v5735_v49 }
 0x9c4   : > { %5408 = vmatmul.bf16.gmra.mxu0 %v9408_v18 }
 0x9c5   : > { %v5616_v63 = vpop.f32.mrf.mxu1 }
 0x9c6   : > { %v5617_v23 = vadd.f32 %v5616_v63, %v9053_v12  ;;  %v4979_v57 = vpop.f32.mrf.mxu3  ;;  %v4972_v12 = vadd.f32 %v4971_v28, %v4754_v3  ;;  %v4769_v21 = vpop.f32.mrf.mxu2 }
 0x9c7   : > { %v4980_v5 = vadd.f32 %v4979_v57, %v4762_v48  ;;  %v5356_v63 = vpop.f32.mrf.mxu0 }
 0x9c8   : > { %v5736_v58 = vadd.f32 %v8893_v11, %v5617_v23  ;;  %v5061_v61 = vadd.f32 %v9115_v16, %v4972_v12 }
 0x9c9   : > { %v5064_v1 = vadd.f32 %v9115_v16, %v4980_v5 }
 0x9ca   : > { %5801 = vst.msk [vmem:[%s8902_s1 + $0xe8] sm:$0xff] %vm5771_vm4, %v5736_v58  ;;  %v5125_v43 = vmax.f32 %v5061_v61, 0.0 }
 0x9cc   : > { %v5189_v51 = vpack.c.bf16 %v5125_v43, %v5124_v38 }
 0x9cd   : > { %v5619_v24 = vpop.f32.mrf.mxu1 }
 0x9ce   : > { %v5620_v22 = vadd.f32 %v5619_v24, %v9063_v56  ;;  %v4981_v32 = vpop.f32.mrf.mxu3  ;;  %v4772_v39 = vpop.f32.mrf.mxu2 }
 0x9cf   : > { %v5359_v24 = vpop.f32.mrf.mxu0 }
 0x9d0   : > { %v5737_v8 = vadd.f32 %v8893_v11, %v5620_v22  ;;  %6630 = vmatmul.msk.bf16.gmra.mxu1 %vm5438_vm3, %v5188_v50 }
 0x9d2   : > { %5802 = vst.msk [vmem:[%s8902_s1 + $0xf0] sm:$0xff] %vm5771_vm4, %v5737_v8 }
 0x9d5   : > { %v5621_v0 = vpop.f32.mrf.mxu1 }
 0x9d6   : > { %v5622_v4 = vadd.f32 %v5621_v0, %v9073_v60  ;;  %v4977_v60 = vadd.f32 %v4976_v27, %v4759_v30  ;;  %v4984_v6 = vpop.f32.mrf.mxu3  ;;  %v5128_v30 = vmax.f32 %v5064_v1, 0.0  ;;  %v4774_v31 = vpop.f32.mrf.mxu2 }
 0x9d7   : > { %v4985_v50 = vadd.f32 %v4984_v6, %v4767_v29 }
 0x9d8   : > { %v5738_v56 = vadd.f32 %v8893_v11, %v5622_v4  ;;  %v5063_v28 = vadd.f32 %v9115_v16, %v4977_v60  ;;  %v5361_v4 = vpop.f32.mrf.mxu0 }
 0x9d9   : > { %v5066_v8 = vadd.f32 %v9115_v16, %v4985_v50 }
 0x9da   : > { %5803 = vst.msk [vmem:[%s8902_s1 + $0xf8] sm:$0xff] %vm5771_vm4, %v5738_v56  ;;  %v5127_v26 = vmax.f32 %v5063_v28, 0.0 }
 0x9db   : > { %v5130_v47 = vmax.f32 %v5066_v8, 0.0 }
 0x9dc   : > { %v5190_v62 = vpack.c.bf16 %v5127_v26, %v5126_v37 }
 0x9dd   : > { %v5624_v59 = vpop.f32.mrf.mxu1 }
 0x9de   : > { %v5625_v14 = vadd.f32 %v5624_v59, %v9080_v55  ;;  %v4986_v15 = vpop.f32.mrf.mxu3  ;;  %v4777_v0 = vpop.f32.mrf.mxu2 }
 0x9e0   : > { %v5739_v52 = vadd.f32 %v8893_v11, %v5625_v14  ;;  %6631 = vmatmul.msk.bf16.gmra.mxu1 %vm5438_vm3, %v5189_v51  ;;  %v5364_v60 = vpop.f32.mrf.mxu0 }
 0x9e2   : > { %5804 = vst.msk [vmem:[%s8902_s1 + $0x100] sm:$0xff] %vm5771_vm4, %v5739_v52 }
 0x9e5   : > { %v5626_v3 = vpop.f32.mrf.mxu1 }
 0x9e6   : > { %v5627_v17 = vadd.f32 %v5626_v3, %v9094_v7  ;;  %v4982_v7 = vadd.f32 %v4981_v32, %v4764_v20  ;;  %v4779_v51 = vpop.f32.mrf.mxu2 }
 0x9e8   : > { %v5740_v55 = vadd.f32 %v8893_v11, %v5627_v17  ;;  %v5065_v25 = vadd.f32 %v9115_v16, %v4982_v7 }
 0x9ea   : > { %5805 = vst.msk [vmem:[%s8902_s1 + $0x108] sm:$0xff] %vm5771_vm4, %v5740_v55  ;;  %v5129_v53 = vmax.f32 %v5065_v25, 0.0 }
 0x9ec   : > { %v5191_v23 = vpack.c.bf16 %v5129_v53, %v5128_v30 }
 0x9ed   : > { %v5629_v33 = vpop.f32.mrf.mxu1 }
 0x9ee   : > { %v5630_v9 = vadd.f32 %v5629_v33, %v9103_v41  ;;  %v4989_v41 = vpop.f32.mrf.mxu3  ;;  %v4782_v34 = vpop.f32.mrf.mxu2 }
 0x9ef   : > { %v4990_v32 = vadd.f32 %v4989_v41, %v4772_v39 }
 0x9f0   : > { %v5741_v54 = vadd.f32 %v8893_v11, %v5630_v9  ;;  %6632 = vmatmul.msk.bf16.gmra.mxu1 %vm5438_vm3, %v5190_v62 }
 0x9f1   : > { %v5068_v44 = vadd.f32 %v9115_v16, %v4990_v32 }
 0x9f2   : > { %5806 = vst.msk [vmem:[%s8902_s1 + $0x110] sm:$0xff] %vm5771_vm4, %v5741_v54 }
 0x9f3   : > { %v5132_v6 = vmax.f32 %v5068_v44, 0.0 }
 0x9f5   : > { %v5631_v40 = vpop.f32.mrf.mxu1 }
 0x9f6   : > { %v5632_v49 = vadd.f32 %v5631_v40, %v9123_v19  ;;  %v4987_v19 = vadd.f32 %v4986_v15, %v4769_v21  ;;  %v4991_v13 = vpop.f32.mrf.mxu3  ;;  %v4784_v7 = vpop.f32.mrf.mxu2 }
 0x9f8   : > { %v5742_v18 = vadd.f32 %v8893_v11, %v5632_v49  ;;  %v5067_v48 = vadd.f32 %v9115_v16, %v4987_v19 }
 0x9fa   : > { %5807 = vst.msk [vmem:[%s8902_s1 + $0x118] sm:$0xff] %vm5771_vm4, %v5742_v18  ;;  %v5131_v12 = vmax.f32 %v5067_v48, 0.0 }
 0x9fc   : > { %v5192_v56 = vpack.c.bf16 %v5131_v12, %v5130_v47 }
 0x9fd   : > { %v5634_v27 = vpop.f32.mrf.mxu1 }
 0x9fe   : > { %v5635_v35 = vadd.f32 %v5634_v27, %v9132_v36  ;;  %v4994_v61 = vpop.f32.mrf.mxu3  ;;  %v4787_v53 = vpop.f32.mrf.mxu2 }
 0x9ff   : > { %v4995_v33 = vadd.f32 %v4994_v61, %v4777_v0 }
 0xa00   : > { %v5743_v58 = vadd.f32 %v8893_v11, %v5635_v35  ;;  %6633 = vmatmul.msk.bf16.gmra.mxu1 %vm5438_vm3, %v5191_v23 }
 0xa01   : > { %v5070_v9 = vadd.f32 %v9115_v16, %v4995_v33 }
 0xa02   : > { %5808 = vst.msk [vmem:[%s8902_s1 + $0x120] sm:$0xff] %vm5771_vm4, %v5743_v58 }
 0xa03   : > { %v5134_v25 = vmax.f32 %v5070_v9, 0.0 }
 0xa05   : > { %v5636_v22 = vpop.f32.mrf.mxu1 }
 0xa06   : > { %v5637_v57 = vadd.f32 %v5636_v22, %v9140_v42  ;;  %v4992_v42 = vadd.f32 %v4991_v13, %v4774_v31  ;;  %v4996_v14 = vpop.f32.mrf.mxu3  ;;  %v4789_v48 = vpop.f32.mrf.mxu2 }
 0xa07   : > { %v4997_v37 = vadd.f32 %v4996_v14, %v4779_v51 }
 0xa08   : > { %v5744_v36 = vadd.f32 %v8893_v11, %v5637_v57  ;;  %v5069_v59 = vadd.f32 %v9115_v16, %v4992_v42 }
 0xa09   : > { %v5071_v21 = vadd.f32 %v9115_v16, %v4997_v37 }
 0xa0a   : > { %5809 = vst.msk [vmem:[%s8902_s1 + $0x128] sm:$0xff] %vm5771_vm4, %v5744_v36  ;;  %v5133_v29 = vmax.f32 %v5069_v59, 0.0 }
 0xa0b   : > { %v5135_v54 = vmax.f32 %v5071_v21, 0.0 }
 0xa0c   : > { %v5193_v28 = vpack.c.bf16 %v5133_v29, %v5132_v6 }
 0xa0d   : > { %v5639_v45 = vpop.f32.mrf.mxu1  ;;  %v5194_v1 = vpack.c.bf16 %v5135_v54, %v5134_v25 }
 0xa0e   : > { %v5640_v43 = vadd.f32 %v5639_v45, %v9153_v2  ;;  %v4999_v55 = vpop.f32.mrf.mxu3 }
 0xa10   : > { %v5745_v20 = vadd.f32 %v8893_v11, %v5640_v43  ;;  %6634 = vmatmul.msk.bf16.gmra.mxu1 %vm5438_vm3, %v5192_v56 }
 0xa12   : > { %5810 = vst.msk [vmem:[%s8902_s1 + $0x130] sm:$0xff] %vm5771_vm4, %v5745_v20 }
 0xa15   : > { %v5641_v38 = vpop.f32.mrf.mxu1 }
 0xa16   : > { %v5642_v52 = vadd.f32 %v5641_v38, %v9164_v46  ;;  %v5366_v46 = vpop.f32.mrf.mxu0  ;;  %v5001_v5 = vpop.f32.mrf.mxu3 }
 0xa17   : > { %v5002_v18 = vadd.f32 %v5001_v5, %v4784_v7 }
 0xa18   : > { %v5746_v2 = vadd.f32 %v8893_v11, %v5642_v52 }
 0xa19   : > { %v5073_v35 = vadd.f32 %v9115_v16, %v5002_v18 }
 0xa1a   : > { %5811 = vst.msk [vmem:[%s8902_s1 + $0x138] sm:$0xff] %vm5771_vm4, %v5746_v2 }
 0xa1b   : > { %v5137_v13 = vmax.f32 %v5073_v35, 0.0 }
 0xa1d   : > { %v5644_v3 = vpop.f32.mrf.mxu1 }
 0xa1e   : > { %v5645_v17 = vadd.f32 %v5644_v3, %v5354_v10  ;;  %v5369_v40 = vpop.f32.mrf.mxu0  ;;  %v5004_v30 = vpop.f32.mrf.mxu3 }
 0xa1f   : > { %v5005_v0 = vadd.f32 %v5004_v30, %v4787_v53 }
 0xa20   : > { %v5747_v26 = vadd.f32 %v8893_v11, %v5645_v17  ;;  %6635 = vmatmul.msk.bf16.gmra.mxu1 %vm5438_vm3, %v5193_v28 }
 0xa21   : > { %v5074_v56 = vadd.f32 %v9115_v16, %v5005_v0 }
 0xa22   : > { %5812 = vst.msk [vmem:[%s8902_s1 + $0x140] sm:$0xff] %vm5771_vm4, %v5747_v26 }
 0xa23   : > { %v5138_v32 = vmax.f32 %v5074_v56, 0.0 }
 0xa25   : > { %v5646_v62 = vpop.f32.mrf.mxu1 }
 0xa26   : > { %v5647_v15 = vadd.f32 %v5646_v62, %v5356_v63  ;;  %v5000_v63 = vadd.f32 %v4999_v55, %v4782_v34  ;;  %v5371_v27 = vpop.f32.mrf.mxu0  ;;  %v5006_v8 = vpop.f32.mrf.mxu3 }
 0xa27   : > { %v5007_v47 = vadd.f32 %v5006_v8, %v4789_v48 }
 0xa28   : > { %v5748_v10 = vadd.f32 %v8893_v11, %v5647_v15  ;;  %v5072_v19 = vadd.f32 %v9115_v16, %v5000_v63 }
 0xa2a   : > { %5813 = vst.msk [vmem:[%s8902_s1 + $0x148] sm:$0xff] %vm5771_vm4, %v5748_v10 }
 0xa2d   : > { %v5649_v49 = vpop.f32.mrf.mxu1 }
 0xa2e   : > { %v5650_v39 = vadd.f32 %v5649_v49, %v5359_v24  ;;  %v5136_v24 = vmax.f32 %v5072_v19, 0.0  ;;  %v5374_v36 = vpop.f32.mrf.mxu0 }
 0xa30   : > { %v5749_v41 = vadd.f32 %v8893_v11, %v5650_v39  ;;  %6636 = vmatmul.msk.bf16.gmra.mxu1 %vm5438_vm3, %v5194_v1  ;;  %v5195_v22 = vpack.c.bf16 %v5137_v13, %v5136_v24 }
 0xa32   : > { %5814 = vst.msk [vmem:[%s8902_s1 + $0x150] sm:$0xff] %vm5771_vm4, %v5749_v41 }
 0xa35   : > { %v5651_v23 = vpop.f32.mrf.mxu1 }
 0xa36   : > { %v5652_v58 = vadd.f32 %v5651_v23, %v5361_v4  ;;  %v5075_v4 = vadd.f32 %v9115_v16, %v5007_v47  ;;  %v5376_v20 = vpop.f32.mrf.mxu0 }
 0xa38   : > { %v5750_v31 = vadd.f32 %v8893_v11, %v5652_v58  ;;  %v5139_v42 = vmax.f32 %v5075_v4, 0.0 }
 0xa3a   : > { %5815 = vst.msk [vmem:[%s8902_s1 + $0x158] sm:$0xff] %vm5771_vm4, %v5750_v31  ;;  %v5196_v59 = vpack.c.bf16 %v5139_v42, %v5138_v32 }
 0xa3d   : > { %v5654_v50 = vpop.f32.mrf.mxu1 }
 0xa3e   : > { %v5655_v57 = vadd.f32 %v5654_v50, %v5364_v60  ;;  %v5379_v16 = vpop.f32.mrf.mxu0 }
 0xa40   : > { %v5751_v12 = vadd.f32 %v8893_v11, %v5655_v57  ;;  %6637 = vmatmul.msk.bf16.gmra.mxu1 %vm5438_vm3, %v5195_v22 }
 0xa42   : > { %5816 = vst.msk [vmem:[%s8902_s1 + $0x160] sm:$0xff] %vm5771_vm4, %v5751_v12 }
 0xa45   : > { %v5656_v61 = vpop.f32.mrf.mxu1 }
 0xa46   : > { %v5657_v45 = vadd.f32 %v5656_v61, %v5366_v46  ;;  %v5381_v2 = vpop.f32.mrf.mxu0 }
 0xa48   : > { %v5752_v43 = vadd.f32 %v8893_v11, %v5657_v45 }
 0xa4a   : > { %5817 = vst.msk [vmem:[%s8902_s1 + $0x168] sm:$0xff] %vm5771_vm4, %v5752_v43 }
 0xa4d   : > { %v5659_v38 = vpop.f32.mrf.mxu1 }
 0xa4e   : > { %v5660_v51 = vadd.f32 %v5659_v38, %v5369_v40  ;;  %v5384_v34 = vpop.f32.mrf.mxu0 }
 0xa50   : > { %v5753_v14 = vadd.f32 %v8893_v11, %v5660_v51  ;;  %6638 = vmatmul.msk.bf16.gmra.mxu1 %vm5438_vm3, %v5196_v59  ;;  %v6859_v59 = vld [vmem:[%s9340_s26] ss:$0 sm:$0xff] }
 0xa52   : > { %5818 = vst.msk [vmem:[%s8902_s1 + $0x170] sm:$0xff] %vm5771_vm4, %v5753_v14 }
 0xa55   : > { %v5661_v52 = vpop.f32.mrf.mxu1 }
 0xa56   : > { %v5662_v60 = vadd.f32 %v5661_v52, %v5371_v27  ;;  %v5386_v33 = vpop.f32.mrf.mxu0 }
 0xa58   : > { %v5754_v44 = vadd.f32 %v8893_v11, %v5662_v60 }
 0xa5a   : > { %5819 = vst.msk [vmem:[%s8902_s1 + $0x178] sm:$0xff] %vm5771_vm4, %v5754_v44 }
 0xa5d   : > { %v5664_v29 = vpop.f32.mrf.mxu1 }
 0xa5e   : > { %v5665_v6 = vadd.f32 %v5664_v29, %v5374_v36  ;;  %v5389_v9 = vpop.f32.mrf.mxu0 }
 0xa60   : > { %v5755_v3 = vadd.f32 %v8893_v11, %v5665_v6 }
 0xa62   : > { %5820 = vst.msk [vmem:[%s8902_s1 + $0x180] sm:$0xff] %vm5771_vm4, %v5755_v3 }
 0xa65   : > { %v5666_v28 = vpop.f32.mrf.mxu1 }
 0xa66   : > { %v5667_v17 = vadd.f32 %v5666_v28, %v5376_v20  ;;  %v5391_v5 = vpop.f32.mrf.mxu0 }
 0xa68   : > { %v5756_v55 = vadd.f32 %v8893_v11, %v5667_v17 }
 0xa6a   : > { %5821 = vst.msk [vmem:[%s8902_s1 + $0x188] sm:$0xff] %vm5771_vm4, %v5756_v55 }
 0xa6d   : > { %v5669_v26 = vpop.f32.mrf.mxu1 }
 0xa6e   : > { %v5670_v46 = vadd.f32 %v5669_v26, %v5379_v16  ;;  %v5394_v41 = vpop.f32.mrf.mxu0 }
 0xa70   : > { %v5757_v37 = vadd.f32 %v8893_v11, %v5670_v46 }
 0xa72   : > { %5822 = vst.msk [vmem:[%s8902_s1 + $0x190] sm:$0xff] %vm5771_vm4, %v5757_v37 }
 0xa75   : > { %v5671_v62 = vpop.f32.mrf.mxu1 }
 0xa76   : > { %v5672_v21 = vadd.f32 %v5671_v62, %v5381_v2  ;;  %v5396_v27 = vpop.f32.mrf.mxu0 }
 0xa78   : > { %v5758_v15 = vadd.f32 %v8893_v11, %v5672_v21 }
 0xa7a   : > { %5823 = vst.msk [vmem:[%s8902_s1 + $0x198] sm:$0xff] %vm5771_vm4, %v5758_v15 }
 0xa7d   : > { %v5674_v10 = vpop.f32.mrf.mxu1 }
 0xa7e   : > { %v5675_v54 = vadd.f32 %v5674_v10, %v5384_v34  ;;  %v5399_v19 = vpop.f32.mrf.mxu0 }
 0xa80   : > { %v5759_v7 = vadd.f32 %v8893_v11, %v5675_v54 }
 0xa82   : > { %5824 = vst.msk [vmem:[%s8902_s1 + $0x1a0] sm:$0xff] %vm5771_vm4, %v5759_v7 }
 0xa85   : > { %v5676_v40 = vpop.f32.mrf.mxu1 }
 0xa86   : > { %v5677_v25 = vadd.f32 %v5676_v40, %v5386_v33  ;;  %v5401_v50 = vpop.f32.mrf.mxu0 }
 0xa88   : > { %v5760_v49 = vadd.f32 %v8893_v11, %v5677_v25 }
 0xa8a   : > { %5825 = vst.msk [vmem:[%s8902_s1 + $0x1a8] sm:$0xff] %vm5771_vm4, %v5760_v49 }
 0xa8d   : > { %v5679_v1 = vpop.f32.mrf.mxu1 }
 0xa8e   : > { %v5680_v39 = vadd.f32 %v5679_v1, %v5389_v9  ;;  %v5404_v12 = vpop.f32.mrf.mxu0 }
 0xa90   : > { %v5761_v18 = vadd.f32 %v8893_v11, %v5680_v39 }
 0xa92   : > { %5826 = vst.msk [vmem:[%s8902_s1 + $0x1b0] sm:$0xff] %vm5771_vm4, %v5761_v18 }
 0xa95   : > { %v5681_v63 = vpop.f32.mrf.mxu1 }
 0xa96   : > { %v5682_v53 = vadd.f32 %v5681_v63, %v5391_v5  ;;  %v5406_v45 = vpop.f32.mrf.mxu0 }
 0xa98   : > { %v5762_v30 = vadd.f32 %v8893_v11, %v5682_v53 }
 0xa9a   : > { %5827 = vst.msk [vmem:[%s8902_s1 + $0x1b8] sm:$0xff] %vm5771_vm4, %v5762_v30 }
 0xa9d   : > { %v5684_v23 = vpop.f32.mrf.mxu1 }
 0xa9e   : > { %v5685_v35 = vadd.f32 %v5684_v23, %v5394_v41  ;;  %v5409_v42 = vpop.f32.mrf.mxu0 }
 0xaa0   : > { %v5763_v58 = vadd.f32 %v8893_v11, %v5685_v35 }
 0xaa2   : > { %5828 = vst.msk [vmem:[%s8902_s1 + $0x1c0] sm:$0xff] %vm5771_vm4, %v5763_v58 }
 0xaa5   : > { %v5686_v31 = vpop.f32.mrf.mxu1 }
 0xaa6   : > { %v5687_v13 = vadd.f32 %v5686_v31, %v5396_v27  ;;  %v5411_v14 = vpop.f32.mrf.mxu0 }
 0xaa8   : > { %v5764_v24 = vadd.f32 %v8893_v11, %v5687_v13 }
 0xaaa   : > { %5829 = vst.msk [vmem:[%s8902_s1 + $0x1c8] sm:$0xff] %vm5771_vm4, %v5764_v24 }
 0xaad   : > { %v5689_v22 = vpop.f32.mrf.mxu1 }
 0xaae   : > { %v5690_v48 = vadd.f32 %v5689_v22, %v5399_v19 }
 0xab0   : > { %v5765_v57 = vadd.f32 %v8893_v11, %v5690_v48 }
 0xab2   : > { %5830 = vst.msk [vmem:[%s8902_s1 + $0x1d0] sm:$0xff] %vm5771_vm4, %v5765_v57 }
 0xab5   : > { %v5691_v8 = vpop.f32.mrf.mxu1 }
 0xab6   : > { %v5692_v36 = vadd.f32 %v5691_v8, %v5401_v50 }
 0xab8   : > { %v5766_v47 = vadd.f32 %v8893_v11, %v5692_v36 }
 0xaba   : > { %5831 = vst.msk [vmem:[%s8902_s1 + $0x1d8] sm:$0xff] %vm5771_vm4, %v5766_v47 }
 0xabd   : > { %v5694_v0 = vpop.f32.mrf.mxu1 }
 0xabe   : > { %v5695_v61 = vadd.f32 %v5694_v0, %v5404_v12 }
 0xac0   : > { %v5767_v4 = vadd.f32 %v8893_v11, %v5695_v61 }
 0xac2   : > { %5832 = vst.msk [vmem:[%s8902_s1 + $0x1e0] sm:$0xff] %vm5771_vm4, %v5767_v4 }
 0xac5   : > { %v5696_v56 = vpop.f32.mrf.mxu1 }
 0xac6   : > { %v5697_v43 = vadd.f32 %v5696_v56, %v5406_v45 }
 0xac8   : > { %v5768_v20 = vadd.f32 %v8893_v11, %v5697_v43 }
 0xaca   : > { %5833 = vst.msk [vmem:[%s8902_s1 + $0x1e8] sm:$0xff] %vm5771_vm4, %v5768_v20 }
 0xacd   : > { %v5699_v32 = vpop.f32.mrf.mxu1 }
 0xace   : > { %v5700_v38 = vadd.f32 %v5699_v32, %v5409_v42 }
 0xad0   : > { %v5769_v51 = vadd.f32 %v6859_v59, %v5700_v38 }
 0xad2   : > { %5834 = vst.msk [vmem:[%s8902_s1 + $0x1f0] sm:$0xff] %vm5771_vm4, %v5769_v51 }
 0xad5   : > { %v5701_v16 = vpop.f32.mrf.mxu1 }
 0xad6   : > { %v5702_v52 = vadd.f32 %v5701_v16, %v5411_v14 }
 0xad8   : > { %v5770_v60 = vadd.f32 %v6859_v59, %v5702_v52 }
 0xada   : > { %5835 = vst.msk [vmem:[%s8902_s1 + $0x1f8] sm:$0xff] %vm5771_vm4, %v5770_v60 }
 0xadb PF: > { %s37_s7 = sadd.s32 1, %s6866_s7  }
 0xadc   : > { %p34_p4 = scmp.ge.s32.totalorder %s37_s7, 4  }
 0xade   :  { %36 = sbr.rel (!%p34_p4) target bundleno = 13 (0xd), region = 161 }

</bundles_post_ra>
